<compile_context>
chip_gen: v7x
topology: tpu7x:2x2x1
jax: 0.10.0
libtpu: 0.0.40
codegen_flags: <defaults>
</compile_context>

<pallas_src>
import functools

import jax
import jax.numpy as jnp
from jax.experimental import pallas as pl
from jax.experimental.pallas import tpu as pltpu

# ---------------- config ----------------
PATCH = 8
IMG = 16                       # config.image_size == s2 split size (smallest scale)
HIDDEN = 32
HEADS = 4
HD = HIDDEN // HEADS
LAYERS = 2
MLP = 4 * HIDDEN
NUM_PATCHES = (IMG // PATCH) ** 2      # 4
SEQ = NUM_PATCHES + 1                  # 5 real tokens (cls + patches)
SEQ_PAD = 8                            # sublane-aligned token count (3 masked pad tokens)
CPP = 3 * PATCH * PATCH                # flattened conv patch size (192)
S2_SCALES = [16, 32]                   # sorted; split_size = 16, image_size = 32
SPLIT = S2_SCALES[0]
SELECT_LAYER = -2                      # mm_vision_select_layer
EPS = 1e-5

# hidden_states[SELECT_LAYER] only needs this many encoder layers computed:
LAYERS_USED = (LAYERS + 1 + SELECT_LAYER) if SELECT_LAYER < 0 else SELECT_LAYER
assert 1 <= LAYERS_USED <= LAYERS

NUM_VEC_ROWS = 9   # ln1_g, ln1_b, bq(*scale), bk, bv, bo, ln2_g, ln2_b, b_fc2


# ---------------- fused ViT kernel ----------------
def _fused_vit_kernel(patches_ref, pw_ref, embbias_ref, preln_ref,
                      wq_ref, wk_ref, wv_ref, wo_ref, w1_ref, w2_ref,
                      vec_ref, bfc1_ref, o_ref, ctx_scr, *, num_heads, img_block):
    D = HIDDEN
    hd = D // num_heads
    S = SEQ_PAD
    T = img_block * S

    def ln(h, g, b):
        mu = jnp.mean(h, axis=-1, keepdims=True)
        var = jnp.mean(jnp.square(h - mu), axis=-1, keepdims=True)
        return (h - mu) * jax.lax.rsqrt(var + EPS) * g + b

    # ---- patch embedding: the patch matrix already carries one zero row per cls/pad token,
    # so the matmul output is directly in (crop, token) order (no concat / pad needed).
    pe = jnp.dot(patches_ref[...], pw_ref[...],
                 preferred_element_type=jnp.float32)                         # (T, D) f32
    emb = pe + jnp.broadcast_to(embbias_ref[...][None],
                                (img_block, S, D)).reshape(T, D)
    pln = preln_ref[...]
    x = ln(emb, pln[0], pln[1])                                              # pre_layrnorm

    # additive key mask for the padded token columns (hoisted out of all loops)
    col = jax.lax.broadcasted_iota(jnp.int32, (1, S, S), 2)
    key_mask = jnp.where(col > NUM_PATCHES, -1e30, 0.0).astype(jnp.float32)

    # ---- encoder layers (static unroll; only the layers feeding hidden_states[SELECT_LAYER])
    # TODO(synk): for a real CLIP tower (24 layers, HIDDEN=1024) move the layer index onto an
    # "arbitrary" grid axis with per-layer (1, ...) weight blocks + a VMEM activation carry
    # (and pl.Buffered(1) on grid-invariant operands) instead of keeping all layers resident;
    # the all-resident scheme does not fit v7x's 64 MiB VMEM at that scale.
    for l in range(LAYERS_USED):
        vecs = vec_ref[l]                                   # (NUM_VEC_ROWS, D) f32
        ln1g, ln1b = vecs[0], vecs[1]
        b_q, b_k, b_v, b_o = vecs[2], vecs[3], vecs[4], vecs[5]
        ln2g, ln2b, b_fc2 = vecs[6], vecs[7], vecs[8]
        b_fc1 = bfc1_ref[l]                                 # (MLP,)

        # --- self attention: full-width projections (attn scale folded into wq/bq host-side)
        hb = ln(x, ln1g, ln1b).astype(jnp.bfloat16)
        q = (jnp.dot(hb, wq_ref[l], preferred_element_type=jnp.float32)
             + b_q).astype(jnp.bfloat16)
        k = (jnp.dot(hb, wk_ref[l], preferred_element_type=jnp.float32)
             + b_k).astype(jnp.bfloat16)
        v = (jnp.dot(hb, wv_ref[l], preferred_element_type=jnp.float32)
             + b_v).astype(jnp.bfloat16)

        # per-head scores / softmax / PV; heads re-merged via lane-offset scratch stores,
        # so the out-projection is one full-width (T,D)@(D,D) matmul.
        for h0 in range(num_heads):
            sl = slice(h0 * hd, (h0 + 1) * hd)
            qh = q[:, sl].reshape(img_block, S, hd)
            kh = k[:, sl].reshape(img_block, S, hd)
            vh = v[:, sl].reshape(img_block, S, hd)
            sc = jnp.einsum('bqd,bkd->bqk', qh, kh,
                            preferred_element_type=jnp.float32)              # (blk, S, S)
            sc = sc + key_mask
            sc = sc - jnp.max(sc, axis=-1, keepdims=True)
            p = jnp.exp(sc)
            p = p / jnp.sum(p, axis=-1, keepdims=True)                       # exact softmax
            pv = jnp.einsum('bqk,bkd->bqd', p.astype(jnp.bfloat16), vh,
                            preferred_element_type=jnp.float32)              # (blk, S, hd)
            ctx_scr[:, sl] = pv.reshape(T, hd)

        attn = jnp.dot(ctx_scr[...].astype(jnp.bfloat16), wo_ref[l],
                       preferred_element_type=jnp.float32) + b_o
        x = x + attn

        # --- MLP (quick_gelu) ---
        h = ln(x, ln2g, ln2b).astype(jnp.bfloat16)
        h1 = jnp.dot(h, w1_ref[l], preferred_element_type=jnp.float32) + b_fc1
        h1 = h1 * jax.nn.sigmoid(1.702 * h1)                 # CLIP quick_gelu (f32)
        h2 = jnp.dot(h1.astype(jnp.bfloat16), w2_ref[l],
                     preferred_element_type=jnp.float32) + b_fc2
        x = x + h2

    # ---- feature_select('patch'): drop cls + pad tokens, lane-dense (blk, NP*D) output
    x3 = x.reshape(img_block, S, D)
    for j in range(NUM_PATCHES):
        o_ref[:, j * D:(j + 1) * D] = x3[:, j + 1, :].astype(o_ref.dtype)


# ---------------- grid sizing / cost ----------------
def _num_tensorcores():
    """One grid step per TensorCore: 1 on v5e/v6e, 2 on megacore chips (v4/v5p/v7x)."""
    try:
        info = pltpu.get_tpu_info()
        for name in ("num_cores", "core_count", "num_tensorcores", "tensorcore_count"):
            val = getattr(info, name, None)
            if val:
                return max(1, int(val))
    except Exception:
        pass
    try:
        kind = jax.devices()[0].device_kind.lower()
        if any(tag in kind for tag in ("v4", "v5p", "v7", "7x")):
            return 2
    except Exception:
        pass
    return 1


def _vit_cost(n_crops):
    l = LAYERS_USED
    s = SEQ_PAD
    flops_embed = 2 * s * CPP * HIDDEN
    flops_layer = (4 * 2 * s * HIDDEN * HIDDEN               # q, k, v, out projections
                   + 2 * 2 * HEADS * s * s * HD              # scores + p@v
                   + 2 * 2 * s * HIDDEN * MLP)               # fc1 + fc2
    flops = n_crops * (flops_embed + l * flops_layer)
    transc = n_crops * l * (HEADS * s * s + s * MLP + 3 * s)
    bytes_in = n_crops * s * CPP * 2
    bytes_w = (CPP * HIDDEN * 2 + SEQ_PAD * HIDDEN * 4 + 2 * HIDDEN * 4
               + l * ((4 * HIDDEN * HIDDEN + 2 * HIDDEN * MLP) * 2
                      + (NUM_VEC_ROWS * HIDDEN + MLP) * 4))
    bytes_out = n_crops * NUM_PATCHES * HIDDEN * 4
    return pl.CostEstimate(flops=int(flops), transcendentals=int(transc),
                           bytes_accessed=int(bytes_in + bytes_w + bytes_out))


# ---------------- CLIP vision tower (forward_feature, fused) ----------------
def clip_patch_features(crops, tower):
    """vision_tower(crops, output_hidden_states=True) -> hidden_states[SELECT_LAYER][:, 1:]"""
    N = crops.shape[0]
    Hp = Wp = IMG // PATCH
    # NCHW -> (N, NP, CPP) patch rows (matches Conv2d stride=kernel=PATCH + flatten(2).T)
    # TODO(synk): patch extraction stays as one XLA transpose; folding it into the kernel
    # would need a gather-style DMA that is not worth it at these sizes.
    patches = crops.reshape(N, 3, Hp, PATCH, Wp, PATCH).transpose(0, 2, 4, 1, 3, 5)
    patches = patches.reshape(N, NUM_PATCHES, CPP)

    steps = max(1, min(_num_tensorcores(), N))    # 1 step on v5e/v6e, 2 parallel on v7x
    blk = -(-N // steps)
    n_pad = blk * steps
    # one zero row per cls/pad token -> kernel matmul output already in (crop, token) layout;
    # pad the crop count so every grid step sees a full block (dummy crops sliced off below).
    tok = jnp.zeros((n_pad, SEQ_PAD, CPP), jnp.float32)
    tok = tok.at[:N, 1:NUM_PATCHES + 1, :].set(patches)
    tok = tok.reshape(n_pad * SEQ_PAD, CPP).astype(jnp.bfloat16)

    L = LAYERS_USED
    in_specs = [
        pl.BlockSpec((blk * SEQ_PAD, CPP), lambda n: (n, 0)),        # token-padded patches
        pl.BlockSpec((CPP, HIDDEN), lambda n: (0, 0)),               # conv weight
        pl.BlockSpec((SEQ_PAD, HIDDEN), lambda n: (0, 0)),           # class + pos emb
        pl.BlockSpec((2, HIDDEN), lambda n: (0, 0)),                 # pre_layrnorm
        pl.BlockSpec((L, HIDDEN, HIDDEN), lambda n: (0, 0, 0)),      # wq (scaled)
        pl.BlockSpec((L, HIDDEN, HIDDEN), lambda n: (0, 0, 0)),      # wk
        pl.BlockSpec((L, HIDDEN, HIDDEN), lambda n: (0, 0, 0)),      # wv
        pl.BlockSpec((L, HIDDEN, HIDDEN), lambda n: (0, 0, 0)),      # wo
        pl.BlockSpec((L, HIDDEN, MLP), lambda n: (0, 0, 0)),         # fc1
        pl.BlockSpec((L, MLP, HIDDEN), lambda n: (0, 0, 0)),         # fc2
        pl.BlockSpec((L, NUM_VEC_ROWS, HIDDEN), lambda n: (0, 0, 0)),  # LN affines + biases
        pl.BlockSpec((L, MLP), lambda n: (0, 0)),                    # fc1 bias
    ]
    feats = pl.pallas_call(
        functools.partial(_fused_vit_kernel, num_heads=HEADS, img_block=blk),
        out_shape=jax.ShapeDtypeStruct((n_pad, NUM_PATCHES * HIDDEN), jnp.float32),
        grid=(steps,),
        in_specs=in_specs,
        out_specs=pl.BlockSpec((blk, NUM_PATCHES * HIDDEN), lambda n: (n, 0)),
        scratch_shapes=[pltpu.VMEM((blk * SEQ_PAD, HIDDEN), jnp.float32)],
        compiler_params=pltpu.CompilerParams(
            dimension_semantics=("parallel",),
            vmem_limit_bytes=32 * 1024 * 1024),
        cost_estimate=_vit_cost(n_pad),
    )(tok, tower['patch_w'], tower['emb_bias'], tower['pre_ln'],
      tower['wq'], tower['wk'], tower['wv'], tower['wo'],
      tower['w1'], tower['w2'], tower['vec_slab'], tower['b_fc1'])
    return feats[:N].reshape(N, NUM_PATCHES, HIDDEN)


# ---------------- s2wrapper.forward (multiscale) ----------------
def multiscale_forward(images, tower):
    """s2wrapper forward with img_sizes=S2_SCALES, max_split_size=SPLIT, output 'bnc'."""
    B = images.shape[0]
    x32 = images.astype(jnp.float32)
    crop_batches, ns = [], []
    for size in S2_SCALES:
        n = -(-size // SPLIT)                        # ceil(size / max_split_size)
        if size != images.shape[-1]:
            # TODO(synk): jax cubic resize uses Keys a=-0.5 (vs torch bicubic a=-0.75);
            # coefficients differ slightly from F.interpolate(mode='bicubic').
            x = jax.image.resize(x32, (B, 3, size, size), method='cubic', antialias=False)
        else:
            x = x32
        # split_chessboard (crop-major stacking) as one reshape+transpose (no crop concat)
        xs = x.reshape(B, 3, n, SPLIT, n, SPLIT).transpose(2, 4, 0, 1, 3, 5)
        crop_batches.append(xs.reshape(n * n * B, 3, SPLIT, SPLIT))
        ns.append(n)

    # all crops of all scales are SPLITxSPLIT -> one fused ViT kernel for everything
    all_crops = jnp.concatenate(crop_batches, axis=0)
    feats = clip_patch_features(all_crops, tower)    # (total_crops, NP, D)

    hw = IMG // PATCH
    out_hw = hw                                      # feature-map size of the base scale
    pooled, off = [], 0
    for n in ns:
        cnt = n * n * B
        f = feats[off:off + cnt]
        off += cnt
        # merge_chessboard -> (B, D, n*hw, n*hw)
        m = f.reshape(n, n, B, hw, hw, HIDDEN).transpose(2, 5, 0, 3, 1, 4)
        m = m.reshape(B, HIDDEN, n * hw, n * hw)
        r = (n * hw) // out_hw
        if r > 1:                                    # F.interpolate(mode='area') == avg pool
            m = m.reshape(B, HIDDEN, out_hw, r, out_hw, r).mean(axis=(3, 5))
        pooled.append(m)
    out = jnp.concatenate(pooled, axis=1)            # concat scales on channel dim
    out = out.transpose(0, 2, 3, 1).reshape(B, out_hw * out_hw, -1)   # 'b c h w -> b (h w) c'
    return out.astype(images.dtype)                  # .to(images.dtype) in the reference


# ---------------- deterministic synthetic params ----------------
def init_params(key):
    ks = iter(jax.random.split(key, 8 + LAYERS * 16))

    def w(shape, scale=0.02):
        return scale * jax.random.normal(next(ks), shape, jnp.float32)

    params = {
        'patch_w': w((CPP, HIDDEN)),                 # Conv2d weight flattened, no bias
        'class_emb': w((HIDDEN,)),
        'pos_emb': w((SEQ, HIDDEN)),
        'pre_ln_g': jnp.ones((HIDDEN,), jnp.float32) + w((HIDDEN,), 0.1),
        'pre_ln_b': w((HIDDEN,)),
        'layers': [],
    }
    for _ in range(LAYERS):
        params['layers'].append({
            'ln1_g': jnp.ones((HIDDEN,), jnp.float32) + w((HIDDEN,), 0.1),
            'ln1_b': w((HIDDEN,)),
            'wq': w((HIDDEN, HIDDEN)), 'bq': w((HIDDEN,)),
            'wk': w((HIDDEN, HIDDEN)), 'bk': w((HIDDEN,)),
            'wv': w((HIDDEN, HIDDEN)), 'bv': w((HIDDEN,)),
            'wo': w((HIDDEN, HIDDEN)), 'bo': w((HIDDEN,)),
            'ln2_g': jnp.ones((HIDDEN,), jnp.float32) + w((HIDDEN,), 0.1),
            'ln2_b': w((HIDDEN,)),
            'w1': w((HIDDEN, MLP)), 'b1': w((MLP,)),
            'w2': w((MLP, HIDDEN)), 'b2': w((HIDDEN,)),
        })
    return params


def pack_tower_params(p):
    """Stack the used layers' weights (full-width, attn scale folded in), pack small vecs."""
    layers = p['layers'][:LAYERS_USED]
    scale = HD ** -0.5
    stk = lambda k: jnp.stack([lp[k] for lp in layers])           # (L, ...)
    wq = (stk('wq') * scale).astype(jnp.bfloat16)                 # scale folded into wq/bq
    wk = stk('wk').astype(jnp.bfloat16)
    wv = stk('wv').astype(jnp.bfloat16)
    wo = stk('wo').astype(jnp.bfloat16)
    w1 = stk('w1').astype(jnp.bfloat16)
    w2 = stk('w2').astype(jnp.bfloat16)

    vec_slab = jnp.stack([jnp.stack([lp['ln1_g'], lp['ln1_b'], lp['bq'] * scale, lp['bk'],
                                     lp['bv'], lp['bo'], lp['ln2_g'], lp['ln2_b'], lp['b2']])
                          for lp in layers])                      # (L, NUM_VEC_ROWS, D)
    b_fc1 = stk('b1')                                             # (L, MLP)

    # class token value + position embedding folded into one additive (SEQ_PAD, D) bias
    emb_bias = jnp.concatenate(
        [(p['class_emb'] + p['pos_emb'][0])[None, :],
         p['pos_emb'][1:],
         jnp.zeros((SEQ_PAD - SEQ, HIDDEN), jnp.float32)], axis=0)
    pre_ln = jnp.stack([p['pre_ln_g'], p['pre_ln_b']])
    return {'patch_w': p['patch_w'].astype(jnp.bfloat16), 'emb_bias': emb_bias,
            'pre_ln': pre_ln, 'wq': wq, 'wk': wk, 'wv': wv, 'wo': wo,
            'w1': w1, 'w2': w2, 'vec_slab': vec_slab, 'b_fc1': b_fc1}


if __name__ == "__main__":
    key = jax.random.PRNGKey(0)
    pkey, xkey = jax.random.split(key)
    params = init_params(pkey)
    tower = pack_tower_params(params)
    # images arrive at s2_image_size (largest scale), NCHW
    images = jax.random.normal(xkey, (2, 3, S2_SCALES[-1], S2_SCALES[-1]), jnp.float32)
    feats = jax.jit(multiscale_forward)(images, tower)
    jax.block_until_ready(feats)
    assert feats.shape == (2, NUM_PATCHES, HIDDEN * len(S2_SCALES)), feats.shape
    assert feats.dtype == images.dtype
    print("KERNEL_OK")
</pallas_src>

<mosaic_0001>
module attributes {stable_mosaic.version = 11 : i64} {
  func.func @_fused_vit_kernel(%arg0: i32, %arg1: memref<80x192xbf16, #tpu.memory_space<vmem>>, %arg2: memref<192x32xbf16, #tpu.memory_space<vmem>>, %arg3: memref<8x32xf32, #tpu.memory_space<vmem>>, %arg4: memref<2x32xf32, #tpu.memory_space<vmem>>, %arg5: memref<1x32x32xbf16, #tpu.memory_space<vmem>>, %arg6: memref<1x32x32xbf16, #tpu.memory_space<vmem>>, %arg7: memref<1x32x32xbf16, #tpu.memory_space<vmem>>, %arg8: memref<1x32x32xbf16, #tpu.memory_space<vmem>>, %arg9: memref<1x32x128xbf16, #tpu.memory_space<vmem>>, %arg10: memref<1x128x32xbf16, #tpu.memory_space<vmem>>, %arg11: memref<1x9x32xf32, #tpu.memory_space<vmem>>, %arg12: memref<1x128xf32, #tpu.memory_space<vmem>>, %arg13: memref<10x128xf32, #tpu.memory_space<vmem>>, %arg14: memref<80x32xf32, #tpu.memory_space<vmem>>) attributes {dimension_semantics = [#tpu.dimension_semantics<parallel>], iteration_bounds = array<i64: 1>, scalar_prefetch = 0 : i64, scratch_operands = 1 : i64, tpu.core_type = #tpu.core_type<tc>, window_params = [{transform_indices = @transform_0, window_bounds = array<i64: 80, 192>}, {pipeline_mode = #tpu.pipeline_mode<synchronous>, transform_indices = @transform_1, window_bounds = array<i64: 192, 32>}, {pipeline_mode = #tpu.pipeline_mode<synchronous>, transform_indices = @transform_2, window_bounds = array<i64: 8, 32>}, {pipeline_mode = #tpu.pipeline_mode<synchronous>, transform_indices = @transform_3, window_bounds = array<i64: 2, 32>}, {pipeline_mode = #tpu.pipeline_mode<synchronous>, transform_indices = @transform_4, window_bounds = array<i64: 1, 32, 32>}, {pipeline_mode = #tpu.pipeline_mode<synchronous>, transform_indices = @transform_5, window_bounds = array<i64: 1, 32, 32>}, {pipeline_mode = #tpu.pipeline_mode<synchronous>, transform_indices = @transform_6, window_bounds = array<i64: 1, 32, 32>}, {pipeline_mode = #tpu.pipeline_mode<synchronous>, transform_indices = @transform_7, window_bounds = array<i64: 1, 32, 32>}, {pipeline_mode = #tpu.pipeline_mode<synchronous>, transform_indices = @transform_8, window_bounds = array<i64: 1, 32, 128>}, {pipeline_mode = #tpu.pipeline_mode<synchronous>, transform_indices = @transform_9, window_bounds = array<i64: 1, 128, 32>}, {pipeline_mode = #tpu.pipeline_mode<synchronous>, transform_indices = @transform_10, window_bounds = array<i64: 1, 9, 32>}, {pipeline_mode = #tpu.pipeline_mode<synchronous>, transform_indices = @transform_11, window_bounds = array<i64: 1, 128>}, {transform_indices = @transform_12, window_bounds = array<i64: 10, 128>}]} {
    %c0 = arith.constant 0 : index
    %c0_0 = arith.constant 0 : index
    %0 = vector.load %arg1[%c0, %c0_0] : memref<80x192xbf16, #tpu.memory_space<vmem>>, vector<80x192xbf16>
    %c0_1 = arith.constant 0 : index
    %c0_2 = arith.constant 0 : index
    %1 = vector.load %arg2[%c0_1, %c0_2] : memref<192x32xbf16, #tpu.memory_space<vmem>>, vector<192x32xbf16>
    %cst = arith.constant dense<0.000000e+00> : vector<80x32xf32>
    %2 = tpu.matmul %0, %1, %cst {dimension_numbers = #tpu.dot_dimension_numbers<[1], [0], [0], [1], [0, 0, 1, 1], [], []>} : vector<80x192xbf16>, vector<192x32xbf16>, vector<80x32xf32> -> vector<80x32xf32>
    %c0_3 = arith.constant 0 : index
    %c0_4 = arith.constant 0 : index
    %3 = vector.load %arg3[%c0_3, %c0_4] : memref<8x32xf32, #tpu.memory_space<vmem>>, vector<8x32xf32>
    %4 = vector.shape_cast %3 : vector<8x32xf32> to vector<1x8x32xf32>
    %5 = vector.shape_cast %4 : vector<1x8x32xf32> to vector<1x8x32xf32>
    %6 = vector.broadcast %5 : vector<1x8x32xf32> to vector<10x8x32xf32>
    %7 = vector.shape_cast %6 : vector<10x8x32xf32> to vector<80x32xf32>
    %8 = arith.addf %2, %7 : vector<80x32xf32>
    %c0_5 = arith.constant 0 : index
    %c0_6 = arith.constant 0 : index
    %9 = vector.load %arg4[%c0_5, %c0_6] : memref<2x32xf32, #tpu.memory_space<vmem>>, vector<2x32xf32>
    %10 = vector.extract_strided_slice %9 {offsets = [0, 0], sizes = [1, 32], strides = [1, 1]} : vector<2x32xf32> to vector<1x32xf32>
    %11 = vector.shape_cast %10 : vector<1x32xf32> to vector<32xf32>
    %12 = vector.extract_strided_slice %9 {offsets = [1, 0], sizes = [1, 32], strides = [1, 1]} : vector<2x32xf32> to vector<1x32xf32>
    %13 = vector.shape_cast %12 : vector<1x32xf32> to vector<32xf32>
    %cst_7 = arith.constant dense<0.000000e+00> : vector<80xf32>
    %14 = vector.multi_reduction <add>, %8, %cst_7 [1] : vector<80x32xf32> to vector<80xf32>
    %15 = vector.shape_cast %14 : vector<80xf32> to vector<80x1xf32>
    %cst_8 = arith.constant 3.200000e+01 : f32
    %16 = vector.broadcast %cst_8 : f32 to vector<80x1xf32>
    %17 = arith.divf %15, %16 : vector<80x1xf32>
    %18 = vector.broadcast %17 : vector<80x1xf32> to vector<80x32xf32>
    %19 = arith.subf %8, %18 : vector<80x32xf32>
    %20 = arith.mulf %19, %19 : vector<80x32xf32>
    %cst_9 = arith.constant dense<0.000000e+00> : vector<80xf32>
    %21 = vector.multi_reduction <add>, %20, %cst_9 [1] : vector<80x32xf32> to vector<80xf32>
    %22 = vector.shape_cast %21 : vector<80xf32> to vector<80x1xf32>
    %cst_10 = arith.constant 3.200000e+01 : f32
    %23 = vector.broadcast %cst_10 : f32 to vector<80x1xf32>
    %24 = arith.divf %22, %23 : vector<80x1xf32>
    %25 = vector.broadcast %17 : vector<80x1xf32> to vector<80x32xf32>
    %26 = arith.subf %8, %25 : vector<80x32xf32>
    %cst_11 = arith.constant 9.99999974E-6 : f32
    %27 = vector.broadcast %cst_11 : f32 to vector<80x1xf32>
    %28 = arith.addf %24, %27 : vector<80x1xf32>
    %29 = math.rsqrt %28 : vector<80x1xf32>
    %30 = vector.broadcast %29 : vector<80x1xf32> to vector<80x32xf32>
    %31 = arith.mulf %26, %30 : vector<80x32xf32>
    %32 = vector.shape_cast %11 : vector<32xf32> to vector<1x32xf32>
    %33 = vector.broadcast %32 : vector<1x32xf32> to vector<80x32xf32>
    %34 = arith.mulf %31, %33 : vector<80x32xf32>
    %35 = vector.shape_cast %13 : vector<32xf32> to vector<1x32xf32>
    %36 = vector.broadcast %35 : vector<1x32xf32> to vector<80x32xf32>
    %37 = arith.addf %34, %36 : vector<80x32xf32>
    %38 = tpu.iota {dimensions = array<i32: 2>} : vector<1x8x8xi32>
    %c4_i32 = arith.constant 4 : i32
    %39 = vector.broadcast %c4_i32 : i32 to vector<1x8x8xi32>
    %40 = arith.cmpi sgt, %38, %39 : vector<1x8x8xi32>
    %cst_12 = arith.constant -1.000000e+30 : f32
    %cst_13 = arith.constant 0.000000e+00 : f32
    %41 = vector.broadcast %cst_12 : f32 to vector<1x8x8xf32>
    %42 = vector.broadcast %cst_13 : f32 to vector<1x8x8xf32>
    %43 = arith.select %40, %41, %42 : vector<1x8x8xi1>, vector<1x8x8xf32>
    %c0_14 = arith.constant 0 : index
    %c0_15 = arith.constant 0 : index
    %c0_16 = arith.constant 0 : index
    %44 = vector.load %arg11[%c0_14, %c0_15, %c0_16] : memref<1x9x32xf32, #tpu.memory_space<vmem>>, vector<1x9x32xf32>
    %45 = vector.shape_cast %44 : vector<1x9x32xf32> to vector<9x32xf32>
    %46 = vector.extract_strided_slice %45 {offsets = [0, 0], sizes = [1, 32], strides = [1, 1]} : vector<9x32xf32> to vector<1x32xf32>
    %47 = vector.shape_cast %46 : vector<1x32xf32> to vector<32xf32>
    %48 = vector.extract_strided_slice %45 {offsets = [1, 0], sizes = [1, 32], strides = [1, 1]} : vector<9x32xf32> to vector<1x32xf32>
    %49 = vector.shape_cast %48 : vector<1x32xf32> to vector<32xf32>
    %50 = vector.extract_strided_slice %45 {offsets = [2, 0], sizes = [1, 32], strides = [1, 1]} : vector<9x32xf32> to vector<1x32xf32>
    %51 = vector.shape_cast %50 : vector<1x32xf32> to vector<32xf32>
    %52 = vector.extract_strided_slice %45 {offsets = [3, 0], sizes = [1, 32], strides = [1, 1]} : vector<9x32xf32> to vector<1x32xf32>
    %53 = vector.shape_cast %52 : vector<1x32xf32> to vector<32xf32>
    %54 = vector.extract_strided_slice %45 {offsets = [4, 0], sizes = [1, 32], strides = [1, 1]} : vector<9x32xf32> to vector<1x32xf32>
    %55 = vector.shape_cast %54 : vector<1x32xf32> to vector<32xf32>
    %56 = vector.extract_strided_slice %45 {offsets = [5, 0], sizes = [1, 32], strides = [1, 1]} : vector<9x32xf32> to vector<1x32xf32>
    %57 = vector.shape_cast %56 : vector<1x32xf32> to vector<32xf32>
    %58 = vector.extract_strided_slice %45 {offsets = [6, 0], sizes = [1, 32], strides = [1, 1]} : vector<9x32xf32> to vector<1x32xf32>
    %59 = vector.shape_cast %58 : vector<1x32xf32> to vector<32xf32>
    %60 = vector.extract_strided_slice %45 {offsets = [7, 0], sizes = [1, 32], strides = [1, 1]} : vector<9x32xf32> to vector<1x32xf32>
    %61 = vector.shape_cast %60 : vector<1x32xf32> to vector<32xf32>
    %62 = vector.extract_strided_slice %45 {offsets = [8, 0], sizes = [1, 32], strides = [1, 1]} : vector<9x32xf32> to vector<1x32xf32>
    %63 = vector.shape_cast %62 : vector<1x32xf32> to vector<32xf32>
    %c0_17 = arith.constant 0 : index
    %c0_18 = arith.constant 0 : index
    %64 = vector.load %arg12[%c0_17, %c0_18] : memref<1x128xf32, #tpu.memory_space<vmem>>, vector<1x128xf32>
    %65 = vector.shape_cast %64 : vector<1x128xf32> to vector<128xf32>
    %cst_19 = arith.constant dense<0.000000e+00> : vector<80xf32>
    %66 = vector.multi_reduction <add>, %37, %cst_19 [1] : vector<80x32xf32> to vector<80xf32>
    %67 = vector.shape_cast %66 : vector<80xf32> to vector<80x1xf32>
    %cst_20 = arith.constant 3.200000e+01 : f32
    %68 = vector.broadcast %cst_20 : f32 to vector<80x1xf32>
    %69 = arith.divf %67, %68 : vector<80x1xf32>
    %70 = vector.broadcast %69 : vector<80x1xf32> to vector<80x32xf32>
    %71 = arith.subf %37, %70 : vector<80x32xf32>
    %72 = arith.mulf %71, %71 : vector<80x32xf32>
    %cst_21 = arith.constant dense<0.000000e+00> : vector<80xf32>
    %73 = vector.multi_reduction <add>, %72, %cst_21 [1] : vector<80x32xf32> to vector<80xf32>
    %74 = vector.shape_cast %73 : vector<80xf32> to vector<80x1xf32>
    %cst_22 = arith.constant 3.200000e+01 : f32
    %75 = vector.broadcast %cst_22 : f32 to vector<80x1xf32>
    %76 = arith.divf %74, %75 : vector<80x1xf32>
    %77 = vector.broadcast %69 : vector<80x1xf32> to vector<80x32xf32>
    %78 = arith.subf %37, %77 : vector<80x32xf32>
    %cst_23 = arith.constant 9.99999974E-6 : f32
    %79 = vector.broadcast %cst_23 : f32 to vector<80x1xf32>
    %80 = arith.addf %76, %79 : vector<80x1xf32>
    %81 = math.rsqrt %80 : vector<80x1xf32>
    %82 = vector.broadcast %81 : vector<80x1xf32> to vector<80x32xf32>
    %83 = arith.mulf %78, %82 : vector<80x32xf32>
    %84 = vector.shape_cast %47 : vector<32xf32> to vector<1x32xf32>
    %85 = vector.broadcast %84 : vector<1x32xf32> to vector<80x32xf32>
    %86 = arith.mulf %83, %85 : vector<80x32xf32>
    %87 = vector.shape_cast %49 : vector<32xf32> to vector<1x32xf32>
    %88 = vector.broadcast %87 : vector<1x32xf32> to vector<80x32xf32>
    %89 = arith.addf %86, %88 : vector<80x32xf32>
    %90 = arith.truncf %89 : vector<80x32xf32> to vector<80x32xbf16>
    %c0_24 = arith.constant 0 : index
    %c0_25 = arith.constant 0 : index
    %c0_26 = arith.constant 0 : index
    %91 = vector.load %arg5[%c0_24, %c0_25, %c0_26] : memref<1x32x32xbf16, #tpu.memory_space<vmem>>, vector<1x32x32xbf16>
    %92 = vector.shape_cast %91 : vector<1x32x32xbf16> to vector<32x32xbf16>
    %cst_27 = arith.constant dense<0.000000e+00> : vector<80x32xf32>
    %93 = tpu.matmul %90, %92, %cst_27 {dimension_numbers = #tpu.dot_dimension_numbers<[1], [0], [0], [1], [0, 0, 1, 1], [], []>} : vector<80x32xbf16>, vector<32x32xbf16>, vector<80x32xf32> -> vector<80x32xf32>
    %94 = vector.shape_cast %51 : vector<32xf32> to vector<1x32xf32>
    %95 = vector.broadcast %94 : vector<1x32xf32> to vector<80x32xf32>
    %96 = arith.addf %93, %95 : vector<80x32xf32>
    %97 = arith.truncf %96 : vector<80x32xf32> to vector<80x32xbf16>
    %c0_28 = arith.constant 0 : index
    %c0_29 = arith.constant 0 : index
    %c0_30 = arith.constant 0 : index
    %98 = vector.load %arg6[%c0_28, %c0_29, %c0_30] : memref<1x32x32xbf16, #tpu.memory_space<vmem>>, vector<1x32x32xbf16>
    %99 = vector.shape_cast %98 : vector<1x32x32xbf16> to vector<32x32xbf16>
    %cst_31 = arith.constant dense<0.000000e+00> : vector<80x32xf32>
    %100 = tpu.matmul %90, %99, %cst_31 {dimension_numbers = #tpu.dot_dimension_numbers<[1], [0], [0], [1], [0, 0, 1, 1], [], []>} : vector<80x32xbf16>, vector<32x32xbf16>, vector<80x32xf32> -> vector<80x32xf32>
    %101 = vector.shape_cast %53 : vector<32xf32> to vector<1x32xf32>
    %102 = vector.broadcast %101 : vector<1x32xf32> to vector<80x32xf32>
    %103 = arith.addf %100, %102 : vector<80x32xf32>
    %104 = arith.truncf %103 : vector<80x32xf32> to vector<80x32xbf16>
    %c0_32 = arith.constant 0 : index
    %c0_33 = arith.constant 0 : index
    %c0_34 = arith.constant 0 : index
    %105 = vector.load %arg7[%c0_32, %c0_33, %c0_34] : memref<1x32x32xbf16, #tpu.memory_space<vmem>>, vector<1x32x32xbf16>
    %106 = vector.shape_cast %105 : vector<1x32x32xbf16> to vector<32x32xbf16>
    %cst_35 = arith.constant dense<0.000000e+00> : vector<80x32xf32>
    %107 = tpu.matmul %90, %106, %cst_35 {dimension_numbers = #tpu.dot_dimension_numbers<[1], [0], [0], [1], [0, 0, 1, 1], [], []>} : vector<80x32xbf16>, vector<32x32xbf16>, vector<80x32xf32> -> vector<80x32xf32>
    %108 = vector.shape_cast %55 : vector<32xf32> to vector<1x32xf32>
    %109 = vector.broadcast %108 : vector<1x32xf32> to vector<80x32xf32>
    %110 = arith.addf %107, %109 : vector<80x32xf32>
    %111 = arith.truncf %110 : vector<80x32xf32> to vector<80x32xbf16>
    %112 = vector.extract_strided_slice %97 {offsets = [0, 0], sizes = [80, 8], strides = [1, 1]} : vector<80x32xbf16> to vector<80x8xbf16>
    %113 = vector.shape_cast %112 : vector<80x8xbf16> to vector<10x8x8xbf16>
    %114 = vector.extract_strided_slice %104 {offsets = [0, 0], sizes = [80, 8], strides = [1, 1]} : vector<80x32xbf16> to vector<80x8xbf16>
    %115 = vector.shape_cast %114 : vector<80x8xbf16> to vector<10x8x8xbf16>
    %116 = vector.extract_strided_slice %111 {offsets = [0, 0], sizes = [80, 8], strides = [1, 1]} : vector<80x32xbf16> to vector<80x8xbf16>
    %117 = vector.shape_cast %116 : vector<80x8xbf16> to vector<10x8x8xbf16>
    "tpu.trace_start"() <{level = 10 : i32, message = "bqd,bkd->bqk"}> : () -> ()
    %cst_36 = arith.constant dense<0.000000e+00> : vector<10x8x8xf32>
    %118 = tpu.matmul %113, %115, %cst_36 {dimension_numbers = #tpu.dot_dimension_numbers<[2], [2], [1], [1], [0, 0, 0, 1, 1, 1], [0], [0]>} : vector<10x8x8xbf16>, vector<10x8x8xbf16>, vector<10x8x8xf32> -> vector<10x8x8xf32>
    "tpu.trace_stop"() : () -> ()
    %119 = vector.broadcast %43 : vector<1x8x8xf32> to vector<10x8x8xf32>
    %120 = arith.addf %118, %119 : vector<10x8x8xf32>
    %cst_37 = arith.constant dense<0xFF800000> : vector<10x8xf32>
    %121 = vector.multi_reduction <maximumf>, %120, %cst_37 [2] : vector<10x8x8xf32> to vector<10x8xf32>
    %122 = vector.shape_cast %121 : vector<10x8xf32> to vector<10x8x1xf32>
    %123 = vector.broadcast %122 : vector<10x8x1xf32> to vector<10x8x8xf32>
    %124 = arith.subf %120, %123 : vector<10x8x8xf32>
    %125 = math.exp %124 : vector<10x8x8xf32>
    %cst_38 = arith.constant dense<0.000000e+00> : vector<10x8xf32>
    %126 = vector.multi_reduction <add>, %125, %cst_38 [2] : vector<10x8x8xf32> to vector<10x8xf32>
    %127 = vector.shape_cast %126 : vector<10x8xf32> to vector<10x8x1xf32>
    %128 = vector.broadcast %127 : vector<10x8x1xf32> to vector<10x8x8xf32>
    %129 = arith.divf %125, %128 : vector<10x8x8xf32>
    %130 = arith.truncf %129 : vector<10x8x8xf32> to vector<10x8x8xbf16>
    "tpu.trace_start"() <{level = 10 : i32, message = "bqk,bkd->bqd"}> : () -> ()
    %cst_39 = arith.constant dense<0.000000e+00> : vector<10x8x8xf32>
    %131 = tpu.matmul %130, %117, %cst_39 {dimension_numbers = #tpu.dot_dimension_numbers<[2], [1], [1], [2], [0, 0, 0, 1, 1, 2], [0], [0]>} : vector<10x8x8xbf16>, vector<10x8x8xbf16>, vector<10x8x8xf32> -> vector<10x8x8xf32>
    "tpu.trace_stop"() : () -> ()
    %132 = vector.shape_cast %131 : vector<10x8x8xf32> to vector<80x8xf32>
    %c0_40 = arith.constant 0 : index
    %c0_41 = arith.constant 0 : index
    %133 = vector.load %arg14[%c0_40, %c0_41] : memref<80x32xf32, #tpu.memory_space<vmem>>, vector<80x8xf32>
    tpu.vector_store %arg14[%c0_40, %c0_41], %132 {strides = array<i32>} : memref<80x32xf32, #tpu.memory_space<vmem>>, vector<80x8xf32>,
    %134 = vector.extract_strided_slice %97 {offsets = [0, 8], sizes = [80, 8], strides = [1, 1]} : vector<80x32xbf16> to vector<80x8xbf16>
    %135 = vector.shape_cast %134 : vector<80x8xbf16> to vector<10x8x8xbf16>
    %136 = vector.extract_strided_slice %104 {offsets = [0, 8], sizes = [80, 8], strides = [1, 1]} : vector<80x32xbf16> to vector<80x8xbf16>
    %137 = vector.shape_cast %136 : vector<80x8xbf16> to vector<10x8x8xbf16>
    %138 = vector.extract_strided_slice %111 {offsets = [0, 8], sizes = [80, 8], strides = [1, 1]} : vector<80x32xbf16> to vector<80x8xbf16>
    %139 = vector.shape_cast %138 : vector<80x8xbf16> to vector<10x8x8xbf16>
    "tpu.trace_start"() <{level = 10 : i32, message = "bqd,bkd->bqk"}> : () -> ()
    %cst_42 = arith.constant dense<0.000000e+00> : vector<10x8x8xf32>
    %140 = tpu.matmul %135, %137, %cst_42 {dimension_numbers = #tpu.dot_dimension_numbers<[2], [2], [1], [1], [0, 0, 0, 1, 1, 1], [0], [0]>} : vector<10x8x8xbf16>, vector<10x8x8xbf16>, vector<10x8x8xf32> -> vector<10x8x8xf32>
    "tpu.trace_stop"() : () -> ()
    %141 = vector.broadcast %43 : vector<1x8x8xf32> to vector<10x8x8xf32>
    %142 = arith.addf %140, %141 : vector<10x8x8xf32>
    %cst_43 = arith.constant dense<0xFF800000> : vector<10x8xf32>
    %143 = vector.multi_reduction <maximumf>, %142, %cst_43 [2] : vector<10x8x8xf32> to vector<10x8xf32>
    %144 = vector.shape_cast %143 : vector<10x8xf32> to vector<10x8x1xf32>
    %145 = vector.broadcast %144 : vector<10x8x1xf32> to vector<10x8x8xf32>
    %146 = arith.subf %142, %145 : vector<10x8x8xf32>
    %147 = math.exp %146 : vector<10x8x8xf32>
    %cst_44 = arith.constant dense<0.000000e+00> : vector<10x8xf32>
    %148 = vector.multi_reduction <add>, %147, %cst_44 [2] : vector<10x8x8xf32> to vector<10x8xf32>
    %149 = vector.shape_cast %148 : vector<10x8xf32> to vector<10x8x1xf32>
    %150 = vector.broadcast %149 : vector<10x8x1xf32> to vector<10x8x8xf32>
    %151 = arith.divf %147, %150 : vector<10x8x8xf32>
    %152 = arith.truncf %151 : vector<10x8x8xf32> to vector<10x8x8xbf16>
    "tpu.trace_start"() <{level = 10 : i32, message = "bqk,bkd->bqd"}> : () -> ()
    %cst_45 = arith.constant dense<0.000000e+00> : vector<10x8x8xf32>
    %153 = tpu.matmul %152, %139, %cst_45 {dimension_numbers = #tpu.dot_dimension_numbers<[2], [1], [1], [2], [0, 0, 0, 1, 1, 2], [0], [0]>} : vector<10x8x8xbf16>, vector<10x8x8xbf16>, vector<10x8x8xf32> -> vector<10x8x8xf32>
    "tpu.trace_stop"() : () -> ()
    %154 = vector.shape_cast %153 : vector<10x8x8xf32> to vector<80x8xf32>
    %c0_46 = arith.constant 0 : index
    %c8 = arith.constant 8 : index
    %155 = vector.load %arg14[%c0_46, %c8] : memref<80x32xf32, #tpu.memory_space<vmem>>, vector<80x8xf32>
    tpu.vector_store %arg14[%c0_46, %c8], %154 {strides = array<i32>} : memref<80x32xf32, #tpu.memory_space<vmem>>, vector<80x8xf32>,
    %156 = vector.extract_strided_slice %97 {offsets = [0, 16], sizes = [80, 8], strides = [1, 1]} : vector<80x32xbf16> to vector<80x8xbf16>
    %157 = vector.shape_cast %156 : vector<80x8xbf16> to vector<10x8x8xbf16>
    %158 = vector.extract_strided_slice %104 {offsets = [0, 16], sizes = [80, 8], strides = [1, 1]} : vector<80x32xbf16> to vector<80x8xbf16>
    %159 = vector.shape_cast %158 : vector<80x8xbf16> to vector<10x8x8xbf16>
    %160 = vector.extract_strided_slice %111 {offsets = [0, 16], sizes = [80, 8], strides = [1, 1]} : vector<80x32xbf16> to vector<80x8xbf16>
    %161 = vector.shape_cast %160 : vector<80x8xbf16> to vector<10x8x8xbf16>
    "tpu.trace_start"() <{level = 10 : i32, message = "bqd,bkd->bqk"}> : () -> ()
    %cst_47 = arith.constant dense<0.000000e+00> : vector<10x8x8xf32>
    %162 = tpu.matmul %157, %159, %cst_47 {dimension_numbers = #tpu.dot_dimension_numbers<[2], [2], [1], [1], [0, 0, 0, 1, 1, 1], [0], [0]>} : vector<10x8x8xbf16>, vector<10x8x8xbf16>, vector<10x8x8xf32> -> vector<10x8x8xf32>
    "tpu.trace_stop"() : () -> ()
    %163 = vector.broadcast %43 : vector<1x8x8xf32> to vector<10x8x8xf32>
    %164 = arith.addf %162, %163 : vector<10x8x8xf32>
    %cst_48 = arith.constant dense<0xFF800000> : vector<10x8xf32>
    %165 = vector.multi_reduction <maximumf>, %164, %cst_48 [2] : vector<10x8x8xf32> to vector<10x8xf32>
    %166 = vector.shape_cast %165 : vector<10x8xf32> to vector<10x8x1xf32>
    %167 = vector.broadcast %166 : vector<10x8x1xf32> to vector<10x8x8xf32>
    %168 = arith.subf %164, %167 : vector<10x8x8xf32>
    %169 = math.exp %168 : vector<10x8x8xf32>
    %cst_49 = arith.constant dense<0.000000e+00> : vector<10x8xf32>
    %170 = vector.multi_reduction <add>, %169, %cst_49 [2] : vector<10x8x8xf32> to vector<10x8xf32>
    %171 = vector.shape_cast %170 : vector<10x8xf32> to vector<10x8x1xf32>
    %172 = vector.broadcast %171 : vector<10x8x1xf32> to vector<10x8x8xf32>
    %173 = arith.divf %169, %172 : vector<10x8x8xf32>
    %174 = arith.truncf %173 : vector<10x8x8xf32> to vector<10x8x8xbf16>
    "tpu.trace_start"() <{level = 10 : i32, message = "bqk,bkd->bqd"}> : () -> ()
    %cst_50 = arith.constant dense<0.000000e+00> : vector<10x8x8xf32>
    %175 = tpu.matmul %174, %161, %cst_50 {dimension_numbers = #tpu.dot_dimension_numbers<[2], [1], [1], [2], [0, 0, 0, 1, 1, 2], [0], [0]>} : vector<10x8x8xbf16>, vector<10x8x8xbf16>, vector<10x8x8xf32> -> vector<10x8x8xf32>
    "tpu.trace_stop"() : () -> ()
    %176 = vector.shape_cast %175 : vector<10x8x8xf32> to vector<80x8xf32>
    %c0_51 = arith.constant 0 : index
    %c16 = arith.constant 16 : index
    %177 = vector.load %arg14[%c0_51, %c16] : memref<80x32xf32, #tpu.memory_space<vmem>>, vector<80x8xf32>
    tpu.vector_store %arg14[%c0_51, %c16], %176 {strides = array<i32>} : memref<80x32xf32, #tpu.memory_space<vmem>>, vector<80x8xf32>,
    %178 = vector.extract_strided_slice %97 {offsets = [0, 24], sizes = [80, 8], strides = [1, 1]} : vector<80x32xbf16> to vector<80x8xbf16>
    %179 = vector.shape_cast %178 : vector<80x8xbf16> to vector<10x8x8xbf16>
    %180 = vector.extract_strided_slice %104 {offsets = [0, 24], sizes = [80, 8], strides = [1, 1]} : vector<80x32xbf16> to vector<80x8xbf16>
    %181 = vector.shape_cast %180 : vector<80x8xbf16> to vector<10x8x8xbf16>
    %182 = vector.extract_strided_slice %111 {offsets = [0, 24], sizes = [80, 8], strides = [1, 1]} : vector<80x32xbf16> to vector<80x8xbf16>
    %183 = vector.shape_cast %182 : vector<80x8xbf16> to vector<10x8x8xbf16>
    "tpu.trace_start"() <{level = 10 : i32, message = "bqd,bkd->bqk"}> : () -> ()
    %cst_52 = arith.constant dense<0.000000e+00> : vector<10x8x8xf32>
    %184 = tpu.matmul %179, %181, %cst_52 {dimension_numbers = #tpu.dot_dimension_numbers<[2], [2], [1], [1], [0, 0, 0, 1, 1, 1], [0], [0]>} : vector<10x8x8xbf16>, vector<10x8x8xbf16>, vector<10x8x8xf32> -> vector<10x8x8xf32>
    "tpu.trace_stop"() : () -> ()
    %185 = vector.broadcast %43 : vector<1x8x8xf32> to vector<10x8x8xf32>
    %186 = arith.addf %184, %185 : vector<10x8x8xf32>
    %cst_53 = arith.constant dense<0xFF800000> : vector<10x8xf32>
    %187 = vector.multi_reduction <maximumf>, %186, %cst_53 [2] : vector<10x8x8xf32> to vector<10x8xf32>
    %188 = vector.shape_cast %187 : vector<10x8xf32> to vector<10x8x1xf32>
    %189 = vector.broadcast %188 : vector<10x8x1xf32> to vector<10x8x8xf32>
    %190 = arith.subf %186, %189 : vector<10x8x8xf32>
    %191 = math.exp %190 : vector<10x8x8xf32>
    %cst_54 = arith.constant dense<0.000000e+00> : vector<10x8xf32>
    %192 = vector.multi_reduction <add>, %191, %cst_54 [2] : vector<10x8x8xf32> to vector<10x8xf32>
    %193 = vector.shape_cast %192 : vector<10x8xf32> to vector<10x8x1xf32>
    %194 = vector.broadcast %193 : vector<10x8x1xf32> to vector<10x8x8xf32>
    %195 = arith.divf %191, %194 : vector<10x8x8xf32>
    %196 = arith.truncf %195 : vector<10x8x8xf32> to vector<10x8x8xbf16>
    "tpu.trace_start"() <{level = 10 : i32, message = "bqk,bkd->bqd"}> : () -> ()
    %cst_55 = arith.constant dense<0.000000e+00> : vector<10x8x8xf32>
    %197 = tpu.matmul %196, %183, %cst_55 {dimension_numbers = #tpu.dot_dimension_numbers<[2], [1], [1], [2], [0, 0, 0, 1, 1, 2], [0], [0]>} : vector<10x8x8xbf16>, vector<10x8x8xbf16>, vector<10x8x8xf32> -> vector<10x8x8xf32>
    "tpu.trace_stop"() : () -> ()
    %198 = vector.shape_cast %197 : vector<10x8x8xf32> to vector<80x8xf32>
    %c0_56 = arith.constant 0 : index
    %c24 = arith.constant 24 : index
    %199 = vector.load %arg14[%c0_56, %c24] : memref<80x32xf32, #tpu.memory_space<vmem>>, vector<80x8xf32>
    tpu.vector_store %arg14[%c0_56, %c24], %198 {strides = array<i32>} : memref<80x32xf32, #tpu.memory_space<vmem>>, vector<80x8xf32>,
    %c0_57 = arith.constant 0 : index
    %c0_58 = arith.constant 0 : index
    %200 = vector.load %arg14[%c0_57, %c0_58] : memref<80x32xf32, #tpu.memory_space<vmem>>, vector<80x32xf32>
    %201 = arith.truncf %200 : vector<80x32xf32> to vector<80x32xbf16>
    %c0_59 = arith.constant 0 : index
    %c0_60 = arith.constant 0 : index
    %c0_61 = arith.constant 0 : index
    %202 = vector.load %arg8[%c0_59, %c0_60, %c0_61] : memref<1x32x32xbf16, #tpu.memory_space<vmem>>, vector<1x32x32xbf16>
    %203 = vector.shape_cast %202 : vector<1x32x32xbf16> to vector<32x32xbf16>
    %cst_62 = arith.constant dense<0.000000e+00> : vector<80x32xf32>
    %204 = tpu.matmul %201, %203, %cst_62 {dimension_numbers = #tpu.dot_dimension_numbers<[1], [0], [0], [1], [0, 0, 1, 1], [], []>} : vector<80x32xbf16>, vector<32x32xbf16>, vector<80x32xf32> -> vector<80x32xf32>
    %205 = vector.shape_cast %57 : vector<32xf32> to vector<1x32xf32>
    %206 = vector.broadcast %205 : vector<1x32xf32> to vector<80x32xf32>
    %207 = arith.addf %204, %206 : vector<80x32xf32>
    %208 = arith.addf %37, %207 : vector<80x32xf32>
    %cst_63 = arith.constant dense<0.000000e+00> : vector<80xf32>
    %209 = vector.multi_reduction <add>, %208, %cst_63 [1] : vector<80x32xf32> to vector<80xf32>
    %210 = vector.shape_cast %209 : vector<80xf32> to vector<80x1xf32>
    %cst_64 = arith.constant 3.200000e+01 : f32
    %211 = vector.broadcast %cst_64 : f32 to vector<80x1xf32>
    %212 = arith.divf %210, %211 : vector<80x1xf32>
    %213 = vector.broadcast %212 : vector<80x1xf32> to vector<80x32xf32>
    %214 = arith.subf %208, %213 : vector<80x32xf32>
    %215 = arith.mulf %214, %214 : vector<80x32xf32>
    %cst_65 = arith.constant dense<0.000000e+00> : vector<80xf32>
    %216 = vector.multi_reduction <add>, %215, %cst_65 [1] : vector<80x32xf32> to vector<80xf32>
    %217 = vector.shape_cast %216 : vector<80xf32> to vector<80x1xf32>
    %cst_66 = arith.constant 3.200000e+01 : f32
    %218 = vector.broadcast %cst_66 : f32 to vector<80x1xf32>
    %219 = arith.divf %217, %218 : vector<80x1xf32>
    %220 = vector.broadcast %212 : vector<80x1xf32> to vector<80x32xf32>
    %221 = arith.subf %208, %220 : vector<80x32xf32>
    %cst_67 = arith.constant 9.99999974E-6 : f32
    %222 = vector.broadcast %cst_67 : f32 to vector<80x1xf32>
    %223 = arith.addf %219, %222 : vector<80x1xf32>
    %224 = math.rsqrt %223 : vector<80x1xf32>
    %225 = vector.broadcast %224 : vector<80x1xf32> to vector<80x32xf32>
    %226 = arith.mulf %221, %225 : vector<80x32xf32>
    %227 = vector.shape_cast %59 : vector<32xf32> to vector<1x32xf32>
    %228 = vector.broadcast %227 : vector<1x32xf32> to vector<80x32xf32>
    %229 = arith.mulf %226, %228 : vector<80x32xf32>
    %230 = vector.shape_cast %61 : vector<32xf32> to vector<1x32xf32>
    %231 = vector.broadcast %230 : vector<1x32xf32> to vector<80x32xf32>
    %232 = arith.addf %229, %231 : vector<80x32xf32>
    %233 = arith.truncf %232 : vector<80x32xf32> to vector<80x32xbf16>
    %c0_68 = arith.constant 0 : index
    %c0_69 = arith.constant 0 : index
    %c0_70 = arith.constant 0 : index
    %234 = vector.load %arg9[%c0_68, %c0_69, %c0_70] : memref<1x32x128xbf16, #tpu.memory_space<vmem>>, vector<1x32x128xbf16>
    %235 = vector.shape_cast %234 : vector<1x32x128xbf16> to vector<32x128xbf16>
    %cst_71 = arith.constant dense<0.000000e+00> : vector<80x128xf32>
    %236 = tpu.matmul %233, %235, %cst_71 {dimension_numbers = #tpu.dot_dimension_numbers<[1], [0], [0], [1], [0, 0, 1, 1], [], []>} : vector<80x32xbf16>, vector<32x128xbf16>, vector<80x128xf32> -> vector<80x128xf32>
    %237 = vector.shape_cast %65 : vector<128xf32> to vector<1x128xf32>
    %238 = vector.broadcast %237 : vector<1x128xf32> to vector<80x128xf32>
    %239 = arith.addf %236, %238 : vector<80x128xf32>
    %cst_72 = arith.constant 1.702000e+00 : f32
    %240 = vector.broadcast %cst_72 : f32 to vector<80x128xf32>
    %241 = arith.mulf %240, %239 : vector<80x128xf32>
    %242 = arith.negf %241 : vector<80x128xf32>
    %243 = math.exp %242 : vector<80x128xf32>
    %cst_73 = arith.constant 1.000000e+00 : f32
    %244 = vector.broadcast %cst_73 : f32 to vector<80x128xf32>
    %245 = arith.addf %244, %243 : vector<80x128xf32>
    %246 = arith.divf %244, %245 : vector<80x128xf32>
    %247 = arith.mulf %239, %246 : vector<80x128xf32>
    %248 = arith.truncf %247 : vector<80x128xf32> to vector<80x128xbf16>
    %c0_74 = arith.constant 0 : index
    %c0_75 = arith.constant 0 : index
    %c0_76 = arith.constant 0 : index
    %249 = vector.load %arg10[%c0_74, %c0_75, %c0_76] : memref<1x128x32xbf16, #tpu.memory_space<vmem>>, vector<1x128x32xbf16>
    %250 = vector.shape_cast %249 : vector<1x128x32xbf16> to vector<128x32xbf16>
    %cst_77 = arith.constant dense<0.000000e+00> : vector<80x32xf32>
    %251 = tpu.matmul %248, %250, %cst_77 {dimension_numbers = #tpu.dot_dimension_numbers<[1], [0], [0], [1], [0, 0, 1, 1], [], []>} : vector<80x128xbf16>, vector<128x32xbf16>, vector<80x32xf32> -> vector<80x32xf32>
    %252 = vector.shape_cast %63 : vector<32xf32> to vector<1x32xf32>
    %253 = vector.broadcast %252 : vector<1x32xf32> to vector<80x32xf32>
    %254 = arith.addf %251, %253 : vector<80x32xf32>
    %255 = arith.addf %208, %254 : vector<80x32xf32>
    %256 = vector.shape_cast %255 : vector<80x32xf32> to vector<10x8x32xf32>
    %257 = vector.extract_strided_slice %256 {offsets = [0, 1, 0], sizes = [10, 1, 32], strides = [1, 1, 1]} : vector<10x8x32xf32> to vector<10x1x32xf32>
    %258 = vector.shape_cast %257 : vector<10x1x32xf32> to vector<10x32xf32>
    %c0_78 = arith.constant 0 : index
    %c0_79 = arith.constant 0 : index
    %259 = vector.load %arg13[%c0_78, %c0_79] : memref<10x128xf32, #tpu.memory_space<vmem>>, vector<10x32xf32>
    tpu.vector_store %arg13[%c0_78, %c0_79], %258 {strides = array<i32>} : memref<10x128xf32, #tpu.memory_space<vmem>>, vector<10x32xf32>,
    %260 = vector.extract_strided_slice %256 {offsets = [0, 2, 0], sizes = [10, 1, 32], strides = [1, 1, 1]} : vector<10x8x32xf32> to vector<10x1x32xf32>
    %261 = vector.shape_cast %260 : vector<10x1x32xf32> to vector<10x32xf32>
    %c0_80 = arith.constant 0 : index
    %c32 = arith.constant 32 : index
    %262 = vector.load %arg13[%c0_80, %c32] : memref<10x128xf32, #tpu.memory_space<vmem>>, vector<10x32xf32>
    tpu.vector_store %arg13[%c0_80, %c32], %261 {strides = array<i32>} : memref<10x128xf32, #tpu.memory_space<vmem>>, vector<10x32xf32>,
    %263 = vector.extract_strided_slice %256 {offsets = [0, 3, 0], sizes = [10, 1, 32], strides = [1, 1, 1]} : vector<10x8x32xf32> to vector<10x1x32xf32>
    %264 = vector.shape_cast %263 : vector<10x1x32xf32> to vector<10x32xf32>
    %c0_81 = arith.constant 0 : index
    %c64 = arith.constant 64 : index
    %265 = vector.load %arg13[%c0_81, %c64] : memref<10x128xf32, #tpu.memory_space<vmem>>, vector<10x32xf32>
    tpu.vector_store %arg13[%c0_81, %c64], %264 {strides = array<i32>} : memref<10x128xf32, #tpu.memory_space<vmem>>, vector<10x32xf32>,
    %266 = vector.extract_strided_slice %256 {offsets = [0, 4, 0], sizes = [10, 1, 32], strides = [1, 1, 1]} : vector<10x8x32xf32> to vector<10x1x32xf32>
    %267 = vector.shape_cast %266 : vector<10x1x32xf32> to vector<10x32xf32>
    %c0_82 = arith.constant 0 : index
    %c96 = arith.constant 96 : index
    %268 = vector.load %arg13[%c0_82, %c96] : memref<10x128xf32, #tpu.memory_space<vmem>>, vector<10x32xf32>
    tpu.vector_store %arg13[%c0_82, %c96], %267 {strides = array<i32>} : memref<10x128xf32, #tpu.memory_space<vmem>>, vector<10x32xf32>,
    return
  }
  func.func @transform_0(%arg0: i32) -> (i32, i32) {
    %c0_i32 = arith.constant 0 : i32
    %c0_i32_0 = arith.constant 0 : i32
    return %arg0, %c0_i32 : i32, i32
  }
  func.func @transform_1(%arg0: i32) -> (i32, i32) {
    %c0_i32 = arith.constant 0 : i32
    %c0_i32_0 = arith.constant 0 : i32
    %c0_i32_1 = arith.constant 0 : i32
    return %c0_i32, %c0_i32_0 : i32, i32
  }
  func.func @transform_2(%arg0: i32) -> (i32, i32) {
    %c0_i32 = arith.constant 0 : i32
    %c0_i32_0 = arith.constant 0 : i32
    %c0_i32_1 = arith.constant 0 : i32
    return %c0_i32, %c0_i32_0 : i32, i32
  }
  func.func @transform_3(%arg0: i32) -> (i32, i32) {
    %c0_i32 = arith.constant 0 : i32
    %c0_i32_0 = arith.constant 0 : i32
    %c0_i32_1 = arith.constant 0 : i32
    return %c0_i32, %c0_i32_0 : i32, i32
  }
  func.func @transform_4(%arg0: i32) -> (i32, i32, i32) {
    %c0_i32 = arith.constant 0 : i32
    %c0_i32_0 = arith.constant 0 : i32
    %c0_i32_1 = arith.constant 0 : i32
    %c0_i32_2 = arith.constant 0 : i32
    return %c0_i32, %c0_i32_0, %c0_i32_1 : i32, i32, i32
  }
  func.func @transform_5(%arg0: i32) -> (i32, i32, i32) {
    %c0_i32 = arith.constant 0 : i32
    %c0_i32_0 = arith.constant 0 : i32
    %c0_i32_1 = arith.constant 0 : i32
    %c0_i32_2 = arith.constant 0 : i32
    return %c0_i32, %c0_i32_0, %c0_i32_1 : i32, i32, i32
  }
  func.func @transform_6(%arg0: i32) -> (i32, i32, i32) {
    %c0_i32 = arith.constant 0 : i32
    %c0_i32_0 = arith.constant 0 : i32
    %c0_i32_1 = arith.constant 0 : i32
    %c0_i32_2 = arith.constant 0 : i32
    return %c0_i32, %c0_i32_0, %c0_i32_1 : i32, i32, i32
  }
  func.func @transform_7(%arg0: i32) -> (i32, i32, i32) {
    %c0_i32 = arith.constant 0 : i32
    %c0_i32_0 = arith.constant 0 : i32
    %c0_i32_1 = arith.constant 0 : i32
    %c0_i32_2 = arith.constant 0 : i32
    return %c0_i32, %c0_i32_0, %c0_i32_1 : i32, i32, i32
  }
  func.func @transform_8(%arg0: i32) -> (i32, i32, i32) {
    %c0_i32 = arith.constant 0 : i32
    %c0_i32_0 = arith.constant 0 : i32
    %c0_i32_1 = arith.constant 0 : i32
    %c0_i32_2 = arith.constant 0 : i32
    return %c0_i32, %c0_i32_0, %c0_i32_1 : i32, i32, i32
  }
  func.func @transform_9(%arg0: i32) -> (i32, i32, i32) {
    %c0_i32 = arith.constant 0 : i32
    %c0_i32_0 = arith.constant 0 : i32
    %c0_i32_1 = arith.constant 0 : i32
    %c0_i32_2 = arith.constant 0 : i32
    return %c0_i32, %c0_i32_0, %c0_i32_1 : i32, i32, i32
  }
  func.func @transform_10(%arg0: i32) -> (i32, i32, i32) {
    %c0_i32 = arith.constant 0 : i32
    %c0_i32_0 = arith.constant 0 : i32
    %c0_i32_1 = arith.constant 0 : i32
    %c0_i32_2 = arith.constant 0 : i32
    return %c0_i32, %c0_i32_0, %c0_i32_1 : i32, i32, i32
  }
  func.func @transform_11(%arg0: i32) -> (i32, i32) {
    %c0_i32 = arith.constant 0 : i32
    %c0_i32_0 = arith.constant 0 : i32
    %c0_i32_1 = arith.constant 0 : i32
    return %c0_i32, %c0_i32_0 : i32, i32
  }
  func.func @transform_12(%arg0: i32) -> (i32, i32) {
    %c0_i32 = arith.constant 0 : i32
    %c0_i32_0 = arith.constant 0 : i32
    return %arg0, %c0_i32 : i32, i32
  }
}

</mosaic_0001>

<bundles_post_ra>
// kernel: multiscale_forward.1
= control target key start
LH: loop header
LB: loop body
LE: loop exit
PB: predicated region body
PF: predicated region fallthrough
CT: control target
= control target key end

     0   :  { %v7630_v0 = vmov 0   ;;  %vm194_vm0 = vcmask 523264   ;;  %vm284_vm1 = vcmask 261120   ;;  %vm7632_vm2 = vmmov 0   ;;  %s7634_s22 = smov 112   ;;  %s7635_s23 = smov 104   ;;  %s9823_s1 = inlined_call_operand.vmem [shape: bf16[192,32], index: 1, kind: input, shape index: {}]   ;;  %s9824_s0 = inlined_call_operand.vmem [shape: bf16[80,192], index: 0, kind: input, shape index: {}]   ;;  %s9825_s2 = inlined_call_operand.vmem [shape: f32[8,32], index: 2, kind: input, shape index: {}]   ;;  %s9826_s3 = inlined_call_operand.vmem [shape: f32[2,32], index: 3, kind: input, shape index: {}]   ;;  %s9827_s4 = inlined_call_operand.vmem [shape: bf16[1,32,32], index: 4, kind: input, shape index: {}]   ;;  %s9828_s5 = inlined_call_operand.vmem [shape: bf16[1,32,32], index: 5, kind: input, shape index: {}]   ;;  %s9829_s6 = inlined_call_operand.vmem [shape: bf16[1,32,32], index: 6, kind: input, shape index: {}]   ;;  %s9830_s10 = inlined_call_operand.vmem [shape: f32[1,9,32], index: 10, kind: input, shape index: {}]   ;;  %s9831_s7 = inlined_call_operand.vmem [shape: bf16[1,32,32], index: 7, kind: input, shape index: {}]   ;;  %s9832_s8 = inlined_call_operand.vmem [shape: bf16[1,32,128], index: 8, kind: input, shape index: {}]   ;;  %s9833_s9 = inlined_call_operand.vmem [shape: bf16[1,128,32], index: 9, kind: input, shape index: {}]   ;;  %s9834_s11 = inlined_call_operand.vmem [shape: f32[1,128], index: 11, kind: input, shape index: {}]   ;;  %s9835_s12 = inlined_call_operand.vmem [shape: f32[10,128], index: 12, kind: output, shape index: {}]  }
   0x1   :  { %210 = vmatprep.subr.bf16.mxu0 %v7630_v0  ;;  %v7324_v1 = vld [vmem:[%s9823_s1] sm:$0xff]   ;;  %v7325_v2 = vld [vmem:[%s9823_s1 + $0x8] sm:$0xff]   ;;  %v7326_v3 = vld [vmem:[%s9823_s1 + $0x10] sm:$0xff]   ;;  %vm998_vm3 = vcmask 64512   ;;  %vm1582_vm4 = vcmask 1043456   ;;  %s7636_s24 = smov 8  }
   0x2   :  { %211 = vmatpush1.bf16.msra.mxu0 %v7324_v1  ;;  %v7327_v4 = vld [vmem:[%s9823_s1 + $0x18] sm:$0xff]   ;;  %v7338_v5 = vld [vmem:[%s9824_s0 + $0x4] ss:$8 sps:$4 sm:$0xff]   ;;  %v7330_v8 = vld [vmem:[%s9823_s1 + $0x30] sm:$0xff]   ;;  %s7637_s25 = smov 16   ;;  %vm3190_vm6 = vcmask 130112  }
   0x3   :  { %212 = vmatprep.subr.bf16.mxu0 %v7630_v0  ;;  %v7328_v6 = vld [vmem:[%s9823_s1 + $0x20] sm:$0xff]   ;;  %6264 = vmatprep.mubr.msk.bf16.mxu0 %vm194_vm0, %v7338_v5  ;;  %v7329_v7 = vld [vmem:[%s9823_s1 + $0x28] sm:$0xff]   ;;  %v7331_v9 = vld [vmem:[%s9823_s1 + $0x38] sm:$0xff]   ;;  %vm4341_vm7 = vcmask 195712   ;;  %vm5492_vm8 = vcmask 261312   ;;  %vm6156_vm9 = vcmask 1042434  }
   0x4   :  { %v7332_v10 = vld [vmem:[%s9823_s1 + $0x40] sm:$0xff]   ;;  %v7333_v11 = vld [vmem:[%s9823_s1 + $0x48] sm:$0xff]   ;;  %v7334_v12 = vld [vmem:[%s9823_s1 + $0x50] sm:$0xff]   ;;  %vm6159_vm10 = vcmask 1043459   ;;  %vm6162_vm11 = vcmask 1044484   ;;  %vm6165_vm12 = vcmask 1045509  }
   0x5   :  { %v7335_v13 = vld [vmem:[%s9823_s1 + $0x58] sm:$0xff]   ;;  %v7336_v14 = vld [vmem:[%s9824_s0] ss:$8 sps:$4 sm:$0xff]   ;;  %v7342_v17 = vld [vmem:[%s9824_s0 + $0x24] ss:$8 sps:$4 sm:$0xff]   ;;  %vm6168_vm13 = vcmask 1046534  }
   0x6   :  { %213 = vmatpush1.bf16.msra.mxu0 %v7325_v2  ;;  %v7339_v15 = vld [vmem:[%s9824_s0 + $0x14] ss:$8 sps:$4 sm:$0xff]   ;;  %v7341_v16 = vld [vmem:[%s9824_s0 + $0x10] ss:$8 sps:$4 sm:$0xff]   ;;  %v7344_v18 = vld [vmem:[%s9824_s0 + $0x20] ss:$8 sps:$4 sm:$0xff]  }
   0x7   :  { %214 = vmatprep.subr.bf16.mxu0 %v7630_v0  ;;  %v7345_v19 = vld [vmem:[%s9824_s0 + $0x34] ss:$8 sps:$4 sm:$0xff]   ;;  %v7347_v20 = vld [vmem:[%s9824_s0 + $0x30] ss:$8 sps:$4 sm:$0xff]   ;;  %v7348_v21 = vld [vmem:[%s9824_s0 + $0x44] ss:$8 sps:$4 sm:$0xff]  }
   0x8   :  { %v7350_v22 = vld [vmem:[%s9824_s0 + $0x40] ss:$8 sps:$4 sm:$0xff]   ;;  %s7638_s0 = smov 24   ;;  %vm6171_vm14 = vcmask 1047559   ;;  %vm6174_vm15 = vcmask 1041409   ;;  %s7640_s28 = smov 32  }
   0x9   :  { %v76_v31 = vld [vmem:[%s9825_s2] sm:$0xff]  ;;  %s7641_s29 = smov 96  }
   0xa   :  { %215 = vmatpush1.bf16.msra.mxu0 %v7326_v3 }
   0xb   :  { %216 = vmatprep.subr.bf16.mxu0 %v7630_v0 }
   0xe   :  { %217 = vmatpush1.bf16.msra.mxu0 %v7327_v4 }
   0xf   :  { %218 = vmatprep.subr.bf16.mxu0 %v7630_v0 }
  0x12   :  { %219 = vmatpush1.bf16.msra.mxu0 %v7328_v6 }
  0x13   :  { %220 = vmatprep.subr.bf16.mxu0 %v7630_v0 }
  0x16   :  { %221 = vmatpush1.bf16.msra.mxu0 %v7329_v7 }
  0x17   :  { %222 = vmatprep.subr.bf16.mxu0 %v7630_v0 }
  0x1a   :  { %223 = vmatpush1.bf16.msra.mxu0 %v7330_v8 }
  0x1b   :  { %224 = vmatprep.subr.bf16.mxu0 %v7630_v0 }
  0x1e   :  { %225 = vmatpush1.bf16.msra.mxu0 %v7331_v9 }
  0x1f   :  { %226 = vmatprep.subr.bf16.mxu0 %v7630_v0 }
  0x22   :  { %227 = vmatpush1.bf16.msra.mxu0 %v7332_v10 }
  0x23   :  { %228 = vmatprep.subr.bf16.mxu0 %v7630_v0 }
  0x26   :  { %229 = vmatpush1.bf16.msra.mxu0 %v7333_v11 }
  0x27   :  { %230 = vmatprep.subr.bf16.mxu0 %v7630_v0 }
  0x2a   :  { %231 = vmatpush1.bf16.msra.mxu0 %v7334_v12 }
  0x2b   :  { %232 = vmatprep.subr.bf16.mxu0 %v7630_v0 }
  0x2e   :  { %233 = vmatpush1.bf16.msra.mxu0 %v7335_v13 }
  0x31   :  { %243 = vmatmul.mubr.bf16.vlgmr.msra.gmra.mrb[0].mxu0 %v7336_v14 }
  0x32   :  { %6265 = vmatprep.mubr.msk.bf16.mxu0 %vm194_vm0, %v7339_v15 }
  0x39   :  { %251 = vmatmul.mubr.bf16.gmra.mrb[4].mxu0 %v7341_v16 }
  0x3a   :  { %6266 = vmatprep.mubr.msk.bf16.mxu0 %vm194_vm0, %v7342_v17 }
  0x41   :  { %259 = vmatmul.mubr.bf16.gmra.mrb[8].mxu0 %v7344_v18 }
  0x42   :  { %6267 = vmatprep.mubr.msk.bf16.mxu0 %vm194_vm0, %v7345_v19 }
  0x49   :  { %267 = vmatmul.mubr.bf16.gmra.mrb[12].mxu0 %v7347_v20 }
  0x4a   :  { %6268 = vmatprep.mubr.msk.bf16.mxu0 %vm194_vm0, %v7348_v21  ;;  %vm6180_vm0 = vcmask 261121  }
  0x51   :  { %275 = vmatmul.mubr.bf16.gmra.mrb[16].mxu0 %v7350_v22 }
 0x104   :  { %v244_v23 = vpop.f32.mrb[0].mxu0 }
 0x105   :  { %v246_v24 = vpop.f32.mrb[1].mxu0  ;;  %v245_v52 = vadd.f32 %v244_v23, %v76_v31 }
 0x106   :  { %v247_v25 = vpop.f32.mrb[2].mxu0 }
 0x107   :  { %v249_v26 = vpop.f32.mrb[3].mxu0  ;;  %v248_v56 = vadd.f32 %v247_v25, %v76_v31  ;;  %v285_v59 = vsel %vm284_vm1, %v245_v52, 0.0 }
 0x109   :  { %v288_v61 = vsel %vm284_vm1, %v248_v56, 0.0 }
 0x10c   :  { %v252_v27 = vpop.f32.mrb[4].mxu0 }
 0x10d   :  { %v254_v28 = vpop.f32.mrb[5].mxu0  ;;  %v253_v58 = vadd.f32 %v252_v27, %v76_v31 }
 0x10e   :  { %v255_v29 = vpop.f32.mrb[6].mxu0 }
 0x10f   :  { %v257_v30 = vpop.f32.mrb[7].mxu0  ;;  %v256_v60 = vadd.f32 %v255_v29, %v76_v31  ;;  %v291_v62 = vsel %vm284_vm1, %v253_v58, 0.0 }
 0x111   :  { %v294_v63 = vsel %vm284_vm1, %v256_v60, 0.0 }
 0x114   :  { %v260_v32 = vpop.f32.mrb[8].mxu0 }
 0x115   :  { %v261_v33 = vadd.f32 %v260_v32, %v76_v31  ;;  %v262_v34 = vpop.f32.mrb[9].mxu0 }
 0x116   :  { %v263_v35 = vpop.f32.mrb[10].mxu0 }
 0x117   :  { %v264_v36 = vadd.f32 %v263_v35, %v76_v31  ;;  %v265_v37 = vpop.f32.mrb[11].mxu0  ;;  %v297_v38 = vsel %vm284_vm1, %v261_v33, 0.0 }
 0x118   :  { %298 = vadd.xlane.f32.xlu0 %v297_v38 }
 0x119   :  { %v300_v39 = vsel %vm284_vm1, %v264_v36, 0.0 }
 0x11c   :  { %v268_v40 = vpop.f32.mrb[12].mxu0  ;;  %301 = vadd.xlane.f32.xlu0 %v300_v39 }
 0x11d   :  { %v269_v41 = vadd.f32 %v268_v40, %v76_v31  ;;  %v270_v42 = vpop.f32.mrb[13].mxu0 }
 0x11e   :  { %v271_v43 = vpop.f32.mrb[14].mxu0 }
 0x11f   :  { %v272_v44 = vadd.f32 %v271_v43, %v76_v31  ;;  %v273_v45 = vpop.f32.mrb[15].mxu0  ;;  %v303_v46 = vsel %vm284_vm1, %v269_v41, 0.0 }
 0x120   :  { %304 = vadd.xlane.f32.xlu1 %v303_v46 }
 0x121   :  { %v306_v47 = vsel %vm284_vm1, %v272_v44, 0.0 }
 0x124   :  { %v276_v48 = vpop.f32.mrb[16].mxu0  ;;  %307 = vadd.xlane.f32.xlu1 %v306_v47 }
 0x125   :  { %v277_v49 = vadd.f32 %v276_v48, %v76_v31  ;;  %v278_v50 = vpop.f32.mrb[17].mxu0 }
 0x126   :  { %v279_v51 = vpop.f32.mrb[18].mxu0  ;;  %v9836_v50 = vmov 0.0  }
 0x127   :  { %v280_v53 = vadd.f32 %v279_v51, %v76_v31  ;;  %v281_v54 = vpop.f32.mrb[19].mxu0  ;;  %v309_v55 = vsel %vm284_vm1, %v277_v49, 0.0  ;;  %7308 = vmatprep.subr.bf16.mxu1 %v9836_v50  ;;  %6672 = vmatprep.subr.bf16.mxu0 %v9836_v50 }
 0x128   :  { %310 = vadd.xlane.f32.xlu0 %v309_v55  ;;  %6684 = vmatprep.mubr.msk.bf16.mxu1 %vm7632_vm2, %v9836_v50 }
 0x129   :  { %v312_v57 = vsel %vm284_vm1, %v280_v53, 0.0  ;;  %6676 = vmatprep.mubr.msk.bf16.mxu0 %vm7632_vm2, %v9836_v50 }
 0x12a   :  { %313 = vadd.xlane.f32.xlu1 %v312_v57 }
 0x12c   :  { %286 = vadd.xlane.f32.xlu0 %v285_v59 }
 0x12e   :  { %289 = vadd.xlane.f32.xlu1 %v288_v61 }
 0x130   :  { %292 = vadd.xlane.f32.xlu0 %v291_v62 }
 0x132   :  { %295 = vadd.xlane.f32.xlu1 %v294_v63  ;;  %v283_v63 = vld [vmem:[%s9826_s3] sm:$0x3] }
 0x1a5   :  { %v299_v0 = vpop.xlane.xlu0 %298 }
 0x1a6   :  { %v320_v1 = vmul.f32 0.03125, %v299_v0 }
 0x1a8   :  { %v7791_v2 = vsub.f32 %v261_v33, %v320_v1 }
 0x1a9   :  { %v302_v3 = vpop.xlane.xlu0 %301 }
 0x1aa   :  { %v321_v4 = vmul.f32 0.03125, %v302_v3  ;;  %v340_v5 = vmul.f32 %v7791_v2, %v7791_v2 }
 0x1ac   :  { %v7795_v6 = vsub.f32 %v264_v36, %v321_v4  ;;  %v358_v7 = vsel %vm284_vm1, %v340_v5, 0.0 }
 0x1ad   :  { %v305_v8 = vpop.xlane.xlu1 %304  ;;  %359 = vadd.xlane.f32.xlu0 %v358_v7 }
 0x1ae   :  { %v322_v9 = vmul.f32 0.03125, %v305_v8  ;;  %v341_v10 = vmul.f32 %v7795_v6, %v7795_v6 }
 0x1b0   :  { %v7800_v11 = vsub.f32 %v269_v41, %v322_v9  ;;  %v361_v12 = vsel %vm284_vm1, %v341_v10, 0.0 }
 0x1b1   :  { %v308_v13 = vpop.xlane.xlu1 %307  ;;  %362 = vadd.xlane.f32.xlu1 %v361_v12 }
 0x1b2   :  { %v323_v14 = vmul.f32 0.03125, %v308_v13  ;;  %v342_v15 = vmul.f32 %v7800_v11, %v7800_v11 }
 0x1b4   :  { %v7805_v16 = vsub.f32 %v272_v44, %v323_v14  ;;  %v364_v17 = vsel %vm284_vm1, %v342_v15, 0.0 }
 0x1b5   :  { %v311_v18 = vpop.xlane.xlu0 %310  ;;  %365 = vadd.xlane.f32.xlu0 %v364_v17 }
 0x1b6   :  { %v324_v19 = vmul.f32 0.03125, %v311_v18  ;;  %v343_v20 = vmul.f32 %v7805_v16, %v7805_v16 }
 0x1b7   :  { %v314_v21 = vpop.xlane.xlu1 %313 }
 0x1b8   :  { %v7810_v22 = vsub.f32 %v277_v49, %v324_v19  ;;  %v325_v23 = vmul.f32 0.03125, %v314_v21  ;;  %v367_v24 = vsel %vm284_vm1, %v343_v20, 0.0 }
 0x1b9   :  { %368 = vadd.xlane.f32.xlu1 %v367_v24  ;;  %v287_v25 = vpop.xlane.xlu0 %286 }
 0x1ba   :  { %v7813_v26 = vsub.f32 %v280_v53, %v325_v23  ;;  %v316_v27 = vmul.f32 0.03125, %v287_v25  ;;  %v344_v28 = vmul.f32 %v7810_v22, %v7810_v22  ;;  %v416_v53 = vlaneseq }
 0x1bb   :  { %v290_v29 = vpop.xlane.xlu1 %289 }
 0x1bc   :  { %v7817_v30 = vsub.f32 %v245_v52, %v316_v27  ;;  %v317_v31 = vmul.f32 0.03125, %v290_v29  ;;  %v370_v32 = vsel %vm284_vm1, %v344_v28, 0.0  ;;  %v345_v33 = vmul.f32 %v7813_v26, %v7813_v26 }
 0x1bd   :  { %371 = vadd.xlane.f32.xlu0 %v370_v32  ;;  %v293_v34 = vpop.xlane.xlu0 %292  ;;  %v7844_v57 = vshrl.u32 %v416_v53, 7 }
 0x1be   :  { %v7822_v35 = vsub.f32 %v248_v56, %v317_v31  ;;  %v318_v36 = vmul.f32 0.03125, %v293_v34  ;;  %v373_v37 = vsel %vm284_vm1, %v345_v33, 0.0  ;;  %v336_v38 = vmul.f32 %v7817_v30, %v7817_v30 }
 0x1bf   :  { %374 = vadd.xlane.f32.xlu1 %v373_v37  ;;  %v296_v39 = vpop.xlane.xlu1 %295  ;;  %9850 = vst [vmem:[#allocation3_spill] sm:$0xff] %v7844_v57  ;;  %v418_v61 = vsub.s32 0, %v7844_v57  ;;  %v432_v1 = vsub.s32 1, %v7844_v57 }
 0x1c0   :  { %v7827_v40 = vsub.f32 %v253_v58, %v318_v36  ;;  %v319_v41 = vmul.f32 0.03125, %v296_v39  ;;  %v346_v42 = vsel %vm284_vm1, %v336_v38, 0.0  ;;  %v337_v43 = vmul.f32 %v7822_v35, %v7822_v35 }
 0x1c1   :  { %347 = vadd.xlane.f32.xlu0 %v346_v42  ;;  %v7853_v4 = vrot.slane %v283_v63, %v418_v61  ;;  %v7858_v10 = vrot.slane %v283_v63, %v432_v1 }
 0x1c2   :  { %v7832_v44 = vsub.f32 %v256_v60, %v319_v41  ;;  %v349_v45 = vsel %vm284_vm1, %v337_v43, 0.0  ;;  %v338_v46 = vmul.f32 %v7827_v40, %v7827_v40 }
 0x1c3   :  { %350 = vadd.xlane.f32.xlu1 %v349_v45 }
 0x1c4   :  { %v352_v47 = vsel %vm284_vm1, %v338_v46, 0.0  ;;  %v339_v48 = vmul.f32 %v7832_v44, %v7832_v44 }
 0x1c5   :  { %353 = vadd.xlane.f32.xlu0 %v352_v47 }
 0x1c6   :  { %v355_v49 = vsel %vm284_vm1, %v339_v48, 0.0 }
 0x1c7   :  { %356 = vadd.xlane.f32.xlu1 %v355_v49 }
 0x23a   :  { %v360_v51 = vpop.xlane.xlu0 %359 }
 0x23b   :  { %v380_v52 = vmul.f32 0.03125, %v360_v51 }
 0x23d   :  { %v390_v54 = vadd.f32 1e-05, %v380_v52 }
 0x23e   :  { %v363_v55 = vpop.xlane.xlu1 %362 }
 0x23f   :  { %7369 = vrsqrt.f32 %v390_v54  ;;  %v381_v56 = vmul.f32 0.03125, %v363_v55 }
 0x241   :  { %v391_v58 = vadd.f32 1e-05, %v381_v56 }
 0x242   :  { %v366_v59 = vpop.xlane.xlu0 %365 }
 0x243   :  { %7371 = vrsqrt.f32 %v391_v58  ;;  %v382_v60 = vmul.f32 0.03125, %v366_v59 }
 0x245   :  { %v392_v62 = vadd.f32 1e-05, %v382_v60 }
 0x246   :  { %v369_v0 = vpop.xlane.xlu1 %368 }
 0x247   :  { %7373 = vrsqrt.f32 %v392_v62  ;;  %v383_v3 = vmul.f32 0.03125, %v369_v0 }
 0x249   :  { %v7370_v5 = vpop.eup %7369  ;;  %v393_v7 = vadd.f32 1e-05, %v383_v3 }
 0x24a   :  { %v372_v8 = vpop.xlane.xlu0 %371  ;;  %v410_v9 = vmul.f32 %v7370_v5, %v7791_v2 }
 0x24b   :  { %7375 = vrsqrt.f32 %v393_v7  ;;  %v384_v12 = vmul.f32 0.03125, %v372_v8 }
 0x24c   :  { %v375_v13 = vpop.xlane.xlu1 %374  ;;  %v424_v14 = vmul.f32 %v7853_v4, %v410_v9 }
 0x24d   :  { %v7372_v15 = vpop.eup %7371  ;;  %v394_v17 = vadd.f32 1e-05, %v384_v12  ;;  %v385_v18 = vmul.f32 0.03125, %v375_v13 }
 0x24e   :  { %v348_v19 = vpop.xlane.xlu0 %347  ;;  %v7862_v20 = vadd.f32 %v7858_v10, %v424_v14  ;;  %v411_v21 = vmul.f32 %v7372_v15, %v7795_v6 }
 0x24f   :  { %7377 = vrsqrt.f32 %v394_v17  ;;  %v395_v2 = vadd.f32 1e-05, %v385_v18  ;;  %v376_v23 = vmul.f32 0.03125, %v348_v19 }
 0x250   :  { %9851 = vst [vmem:[#allocation4_spill] sm:$0xff] %v7862_v20  ;;  %v351_v24 = vpop.xlane.xlu1 %350  ;;  %v463_v25 = vsel %vm284_vm1, %v7862_v20, 0.0  ;;  %v425_v27 = vmul.f32 %v7853_v4, %v411_v21 }
 0x251   :  { %v7374_v28 = vpop.eup %7373  ;;  %7379 = vrsqrt.f32 %v395_v2  ;;  %v386_v29 = vadd.f32 1e-05, %v376_v23  ;;  %v377_v31 = vmul.f32 0.03125, %v351_v24  ;;  %464 = vadd.xlane.f32.xlu0 %v463_v25 }
 0x252   :  { %v354_v32 = vpop.xlane.xlu0 %353  ;;  %v7869_v33 = vadd.f32 %v7858_v10, %v425_v27  ;;  %v412_v6 = vmul.f32 %v7374_v28, %v7800_v11 }
 0x253   :  { %7381 = vrsqrt.f32 %v386_v29  ;;  %v387_v34 = vadd.f32 1e-05, %v377_v31  ;;  %v378_v36 = vmul.f32 0.03125, %v354_v32 }
 0x254   :  { %9852 = vst [vmem:[#allocation5_spill] sm:$0xff] %v7869_v33  ;;  %v357_v37 = vpop.xlane.xlu1 %356  ;;  %v466_v38 = vsel %vm284_vm1, %v7869_v33, 0.0  ;;  %v426_v39 = vmul.f32 %v7853_v4, %v412_v6 }
 0x255   :  { %v7376_v41 = vpop.eup %7375  ;;  %7383 = vrsqrt.f32 %v387_v34  ;;  %v388_v42 = vadd.f32 1e-05, %v378_v36  ;;  %v379_v43 = vmul.f32 0.03125, %v357_v37  ;;  %467 = vadd.xlane.f32.xlu1 %v466_v38 }
 0x256   :  { %v7876_v45 = vadd.f32 %v7858_v10, %v426_v39  ;;  %v413_v46 = vmul.f32 %v7376_v41, %v7805_v16 }
 0x257   :  { %7385 = vrsqrt.f32 %v388_v42  ;;  %v389_v11 = vadd.f32 1e-05, %v379_v43 }
 0x258   :  { %9853 = vst [vmem:[#allocation6_spill] sm:$0xff] %v7876_v45  ;;  %v469_v47 = vsel %vm284_vm1, %v7876_v45, 0.0  ;;  %v427_v48 = vmul.f32 %v7853_v4, %v413_v46 }
 0x259   :  { %v7378_v49 = vpop.eup %7377  ;;  %7387 = vrsqrt.f32 %v389_v11  ;;  %470 = vadd.xlane.f32.xlu0 %v469_v47 }
 0x25a   :  { %v7883_v51 = vadd.f32 %v7858_v10, %v427_v48  ;;  %v414_v52 = vmul.f32 %v7378_v49, %v7810_v22 }
 0x25b   :  { %v7380_v54 = vpop.eup %7379 }
 0x25c   :  { %9854 = vst [vmem:[#allocation7_spill] sm:$0xff] %v7883_v51  ;;  %v472_v55 = vsel %vm284_vm1, %v7883_v51, 0.0  ;;  %v428_v16 = vmul.f32 %v7853_v4, %v414_v52  ;;  %v415_v56 = vmul.f32 %v7380_v54, %v7813_v26 }
 0x25d   :  { %v7382_v58 = vpop.eup %7381  ;;  %473 = vadd.xlane.f32.xlu1 %v472_v55 }
 0x25e   :  { %v7891_v59 = vadd.f32 %v7858_v10, %v428_v16  ;;  %v429_v60 = vmul.f32 %v7853_v4, %v415_v56  ;;  %v406_v62 = vmul.f32 %v7382_v58, %v7817_v30 }
 0x25f   :  { %v7384_v63 = vpop.eup %7383 }
 0x260   :  { %9855 = vst [vmem:[#allocation8_spill] sm:$0xff] %v7891_v59  ;;  %v475_v22 = vsel %vm284_vm1, %v7891_v59, 0.0  ;;  %v7898_v0 = vadd.f32 %v7858_v10, %v429_v60  ;;  %v420_v3 = vmul.f32 %v7853_v4, %v406_v62  ;;  %v407_v26 = vmul.f32 %v7384_v63, %v7822_v35 }
 0x261   :  { %v7386_v5 = vpop.eup %7385  ;;  %476 = vadd.xlane.f32.xlu0 %v475_v22 }
 0x262   :  { %9856 = vst [vmem:[#allocation9_spill] sm:$0xff] %v7898_v0  ;;  %v478_v7 = vsel %vm284_vm1, %v7898_v0, 0.0  ;;  %v7905_v8 = vadd.f32 %v7858_v10, %v420_v3  ;;  %v421_v30 = vmul.f32 %v7853_v4, %v407_v26  ;;  %v408_v9 = vmul.f32 %v7386_v5, %v7827_v40 }
 0x263   :  { %v7388_v12 = vpop.eup %7387  ;;  %479 = vadd.xlane.f32.xlu1 %v478_v7 }
 0x264   :  { %9857 = vst [vmem:[#allocation10_spill] sm:$0xff] %v7905_v8  ;;  %v451_v13 = vsel %vm284_vm1, %v7905_v8, 0.0  ;;  %v7912_v14 = vadd.f32 %v7858_v10, %v421_v30  ;;  %v422_v35 = vmul.f32 %v7853_v4, %v408_v9  ;;  %v409_v15 = vmul.f32 %v7388_v12, %v7832_v44 }
 0x265   :  { %452 = vadd.xlane.f32.xlu0 %v451_v13 }
 0x266   :  { %9858 = vst [vmem:[#allocation11_spill] sm:$0xff] %v7912_v14  ;;  %v454_v17 = vsel %vm284_vm1, %v7912_v14, 0.0  ;;  %v7919_v18 = vadd.f32 %v7858_v10, %v422_v35  ;;  %v423_v40 = vmul.f32 %v7853_v4, %v409_v15 }
 0x267   :  { %455 = vadd.xlane.f32.xlu1 %v454_v17 }
 0x268   :  { %9859 = vst [vmem:[#allocation12_spill] sm:$0xff] %v7919_v18  ;;  %v457_v19 = vsel %vm284_vm1, %v7919_v18, 0.0  ;;  %v7925_v21 = vadd.f32 %v7858_v10, %v423_v40 }
 0x269   :  { %458 = vadd.xlane.f32.xlu0 %v457_v19 }
 0x26a   :  { %9860 = vst [vmem:[#allocation13_spill] sm:$0xff] %v7925_v21  ;;  %v460_v44 = vsel %vm284_vm1, %v7925_v21, 0.0 }
 0x26b   :  { %461 = vadd.xlane.f32.xlu1 %v460_v44 }
 0x2de   :  { %v465_v2 = vpop.xlane.xlu0 %464 }
 0x2df   :  { %v485_v23 = vmul.f32 0.03125, %v465_v2 }
 0x2e1   :  { %v7930_v24 = vsub.f32 %v7862_v20, %v485_v23  ;;  %v7351_v23 = vld [vmem:[%s9827_s4] sm:$0xff]  }
 0x2e2   :  { %v468_v25 = vpop.xlane.xlu1 %467  ;;  %7310 = vmatpush3.bf16.msra.mxu1 %v7351_v23  ;;  %6673 = vmatpush3.bf16.msra.mxu0 %v7351_v23 }
 0x2e3   :  { %v486_v27 = vmul.f32 0.03125, %v468_v25  ;;  %v505_v4 = vmul.f32 %v7930_v24, %v7930_v24  ;;  %7309 = vmatprep.subr.bf16.mxu1 %v9836_v50  ;;  %6674 = vmatprep.subr.bf16.mxu0 %v9836_v50  ;;  %v7352_v25 = vld [vmem:[%s9827_s4 + $0x8] sm:$0xff]  }
 0x2e5   :  { %v7935_v28 = vsub.f32 %v7869_v33, %v486_v27  ;;  %v523_v10 = vsel %vm284_vm1, %v505_v4, 0.0 }
 0x2e6   :  { %524 = vadd.xlane.f32.xlu0 %v523_v10  ;;  %v471_v29 = vpop.xlane.xlu0 %470  ;;  %7311 = vmatpush3.bf16.msra.mxu1 %v7352_v25 }
 0x2e7   :  { %v487_v31 = vmul.f32 0.03125, %v471_v29  ;;  %v506_v32 = vmul.f32 %v7935_v28, %v7935_v28  ;;  %6675 = vmatpush3.bf16.msra.mxu0 %v7352_v25  ;;  %6696 = vmatprep.subr.bf16.mxu1 %v9836_v50 }
 0x2e8   :  { %6720 = vmatprep.subr.bf16.mxu0 %v9836_v50 }
 0x2e9   :  { %v7941_v6 = vsub.f32 %v7876_v45, %v487_v31  ;;  %v526_v34 = vsel %vm284_vm1, %v506_v32, 0.0 }
 0x2ea   :  { %527 = vadd.xlane.f32.xlu1 %v526_v34  ;;  %v474_v36 = vpop.xlane.xlu1 %473 }
 0x2eb   :  { %v488_v37 = vmul.f32 0.03125, %v474_v36  ;;  %v507_v38 = vmul.f32 %v7941_v6, %v7941_v6 }
 0x2ed   :  { %v7947_v39 = vsub.f32 %v7883_v51, %v488_v37  ;;  %v529_v41 = vsel %vm284_vm1, %v507_v38, 0.0  ;;  %v8006_v37 = vld [vmem:[%s9830_s10] sm:$0xff] }
 0x2ee   :  { %530 = vadd.xlane.f32.xlu0 %v529_v41  ;;  %v477_v42 = vpop.xlane.xlu0 %476 }
 0x2ef   :  { %v489_v43 = vmul.f32 0.03125, %v477_v42  ;;  %v508_v46 = vmul.f32 %v7947_v39, %v7947_v39 }
 0x2f0   :  { %v480_v11 = vpop.xlane.xlu1 %479 }
 0x2f1   :  { %v7953_v47 = vsub.f32 %v7891_v59, %v489_v43  ;;  %v490_v48 = vmul.f32 0.03125, %v480_v11  ;;  %v532_v49 = vsel %vm284_vm1, %v508_v46, 0.0  ;;  %v8011_v43 = vrot.slane %v8006_v37, %v418_v61 }
 0x2f2   :  { %533 = vadd.xlane.f32.xlu1 %v532_v49  ;;  %v453_v52 = vpop.xlane.xlu0 %452 }
 0x2f3   :  { %v7957_v54 = vsub.f32 %v7898_v0, %v490_v48  ;;  %v481_v55 = vmul.f32 0.03125, %v453_v52  ;;  %v509_v16 = vmul.f32 %v7953_v47, %v7953_v47  ;;  %v8016_v48 = vrot.slane %v8006_v37, %v432_v1 }
 0x2f4   :  { %v456_v56 = vpop.xlane.xlu1 %455 }
 0x2f5   :  { %v7962_v58 = vsub.f32 %v7905_v8, %v481_v55  ;;  %v482_v60 = vmul.f32 0.03125, %v456_v56  ;;  %v535_v62 = vsel %vm284_vm1, %v509_v16, 0.0  ;;  %v510_v63 = vmul.f32 %v7957_v54, %v7957_v54 }
 0x2f6   :  { %536 = vadd.xlane.f32.xlu0 %v535_v62  ;;  %v459_v22 = vpop.xlane.xlu0 %458 }
 0x2f7   :  { %v7968_v3 = vsub.f32 %v7912_v14, %v482_v60  ;;  %v483_v26 = vmul.f32 0.03125, %v459_v22  ;;  %v538_v5 = vsel %vm284_vm1, %v510_v63, 0.0  ;;  %v501_v7 = vmul.f32 %v7962_v58, %v7962_v58 }
 0x2f8   :  { %539 = vadd.xlane.f32.xlu1 %v538_v5  ;;  %v462_v30 = vpop.xlane.xlu1 %461 }
 0x2f9   :  { %v7974_v9 = vsub.f32 %v7919_v18, %v483_v26  ;;  %v484_v12 = vmul.f32 0.03125, %v462_v30  ;;  %v511_v13 = vsel %vm284_vm1, %v501_v7, 0.0  ;;  %v502_v35 = vmul.f32 %v7968_v3, %v7968_v3 }
 0x2fa   :  { %512 = vadd.xlane.f32.xlu0 %v511_v13 }
 0x2fb   :  { %v7980_v15 = vsub.f32 %v7925_v21, %v484_v12  ;;  %v514_v17 = vsel %vm284_vm1, %v502_v35, 0.0  ;;  %v503_v40 = vmul.f32 %v7974_v9, %v7974_v9 }
 0x2fc   :  { %515 = vadd.xlane.f32.xlu1 %v514_v17 }
 0x2fd   :  { %v517_v19 = vsel %vm284_vm1, %v503_v40, 0.0  ;;  %v504_v44 = vmul.f32 %v7980_v15, %v7980_v15 }
 0x2fe   :  { %518 = vadd.xlane.f32.xlu0 %v517_v19 }
 0x2ff   :  { %v520_v2 = vsel %vm284_vm1, %v504_v44, 0.0  ;;  %v7353_v44 = vld [vmem:[%s9828_s5] sm:$0xff]  }
 0x300   :  { %521 = vadd.xlane.f32.xlu1 %v520_v2 }
 0x373   :  { %v525_v27 = vpop.xlane.xlu0 %524 }
 0x374   :  { %v545_v4 = vmul.f32 0.03125, %v525_v27 }
 0x376   :  { %v555_v10 = vadd.f32 1e-05, %v545_v4 }
 0x377   :  { %v528_v29 = vpop.xlane.xlu1 %527 }
 0x378   :  { %7389 = vrsqrt.f32 %v555_v10  ;;  %v546_v31 = vmul.f32 0.03125, %v528_v29 }
 0x37a   :  { %v556_v32 = vadd.f32 1e-05, %v546_v31 }
 0x37b   :  { %v531_v34 = vpop.xlane.xlu0 %530 }
 0x37c   :  { %7391 = vrsqrt.f32 %v556_v32  ;;  %v547_v36 = vmul.f32 0.03125, %v531_v34  ;;  %v7354_v32 = vld [vmem:[%s9828_s5 + $0x8] sm:$0xff]  }
 0x37e   :  { %v557_v38 = vadd.f32 1e-05, %v547_v36 }
 0x37f   :  { %v534_v41 = vpop.xlane.xlu1 %533 }
 0x380   :  { %7393 = vrsqrt.f32 %v557_v38  ;;  %v548_v42 = vmul.f32 0.03125, %v534_v41 }
 0x382   :  { %v7390_v46 = vpop.eup %7389  ;;  %v558_v11 = vadd.f32 1e-05, %v548_v42 }
 0x383   :  { %v537_v49 = vpop.xlane.xlu0 %536  ;;  %v575_v52 = vmul.f32 %v7390_v46, %v7930_v24 }
 0x384   :  { %7395 = vrsqrt.f32 %v558_v11  ;;  %v549_v55 = vmul.f32 0.03125, %v537_v49 }
 0x385   :  { %v540_v16 = vpop.xlane.xlu1 %539  ;;  %v589_v56 = vmul.f32 %v8011_v43, %v575_v52 }
 0x386   :  { %v7392_v60 = vpop.eup %7391  ;;  %v559_v62 = vadd.f32 1e-05, %v549_v55  ;;  %v550_v63 = vmul.f32 0.03125, %v540_v16 }
 0x387   :  { %v513_v61 = vpop.xlane.xlu0 %512  ;;  %v576_v22 = vmul.f32 %v7392_v60, %v7935_v28  ;;  %v603_v26 = vadd.f32 %v8016_v48, %v589_v56 }
 0x388   :  { %7397 = vrsqrt.f32 %v559_v62  ;;  %v560_v5 = vadd.f32 1e-05, %v550_v63  ;;  %v541_v1 = vmul.f32 0.03125, %v513_v61 }
 0x389   :  { %v516_v7 = vpop.xlane.xlu1 %515  ;;  %v590_v30 = vmul.f32 %v8011_v43, %v576_v22 }
 0x38a   :  { %v7394_v24 = vpop.eup %7393  ;;  %7399 = vrsqrt.f32 %v560_v5  ;;  %v551_v12 = vadd.f32 1e-05, %v541_v1  ;;  %v542_v13 = vmul.f32 0.03125, %v516_v7 }
 0x38b   :  { %v519_v35 = vpop.xlane.xlu0 %518  ;;  %v604_v17 = vadd.f32 %v8016_v48, %v590_v30  ;;  %v577_v40 = vmul.f32 %v7394_v24, %v7941_v6 }
 0x38c   :  { %7401 = vrsqrt.f32 %v551_v12  ;;  %v552_v19 = vadd.f32 1e-05, %v542_v13  ;;  %v543_v28 = vmul.f32 0.03125, %v519_v35 }
 0x38d   :  { %v522_v2 = vpop.xlane.xlu1 %521  ;;  %v8028_v23 = vpack.c.bf16 %v604_v17, %v603_v26  ;;  %v591_v25 = vmul.f32 %v8011_v43, %v577_v40 }
 0x38e   :  { %v7396_v27 = vpop.eup %7395  ;;  %7403 = vrsqrt.f32 %v552_v19  ;;  %v553_v4 = vadd.f32 1e-05, %v543_v28  ;;  %v544_v10 = vmul.f32 0.03125, %v522_v2 }
 0x38f   :  { %6685 = vmatmul.mubr.msk.bf16.vlgmr.msra.gmra.mrb[0].mxu1 %vm284_vm1, %v8028_v23  ;;  %v578_v6 = vmul.f32 %v7396_v27, %v7947_v39  ;;  %v605_v29 = vadd.f32 %v8016_v48, %v591_v25  ;;  %v733_v25 = vsub.s32 3, %v7844_v57 }
 0x390   :  { %7405 = vrsqrt.f32 %v553_v4  ;;  %v554_v31 = vadd.f32 1e-05, %v544_v10  ;;  %6688 = vmatprep.mubr.msk.bf16.mxu1 %vm7632_vm2, %v9836_v50  ;;  %6697 = vmatpush3.bf16.msra.mxu1 %v7353_v44 }
 0x391   :  { %v592_v34 = vmul.f32 %v8011_v43, %v578_v6  ;;  %6698 = vmatprep.subr.bf16.mxu1 %v9836_v50 }
 0x392   :  { %v7398_v36 = vpop.eup %7397  ;;  %7407 = vrsqrt.f32 %v554_v31 }
 0x393   :  { %v606_v39 = vadd.f32 %v8016_v48, %v592_v34  ;;  %v579_v38 = vmul.f32 %v7398_v36, %v7953_v47  ;;  %v620_v36 = vsub.s32 2, %v7844_v57 }
 0x394   :  { %v7400_v41 = vpop.eup %7399  ;;  %6699 = vmatpush3.bf16.msra.mxu1 %v7354_v32  ;;  %v8128_v32 = vrot.slane %v8006_v37, %v733_v25 }
 0x395   :  { %v612_v42 = vpack.c.bf16 %v606_v39, %v605_v29  ;;  %v580_v46 = vmul.f32 %v7400_v41, %v7957_v54  ;;  %v593_v11 = vmul.f32 %v8011_v43, %v579_v38  ;;  %6744 = vmatprep.subr.bf16.mxu1 %v9836_v50 }
 0x396   :  { %v7402_v49 = vpop.eup %7401 }
 0x397   :  { %v571_v52 = vmul.f32 %v7402_v49, %v7962_v58  ;;  %6689 = vmatmul.mubr.msk.bf16.gmra.mrb[4].mxu1 %vm284_vm1, %v612_v42  ;;  %v594_v55 = vmul.f32 %v8011_v43, %v580_v46  ;;  %v607_v16 = vadd.f32 %v8016_v48, %v593_v11 }
 0x398   :  { %v7404_v56 = vpop.eup %7403  ;;  %6692 = vmatprep.mubr.msk.bf16.mxu1 %vm7632_vm2, %v9836_v50 }
 0x399   :  { %v585_v47 = vmul.f32 %v8011_v43, %v571_v52  ;;  %v572_v54 = vmul.f32 %v7404_v56, %v7968_v3  ;;  %v608_v60 = vadd.f32 %v8016_v48, %v594_v55  ;;  %v7355_v3 = vld [vmem:[%s9829_s6] sm:$0xff]   ;;  %v8137_v55 = vrot.slane %v8006_v37, %v620_v36 }
 0x39a   :  { %v7406_v62 = vpop.eup %7405 }
 0x39b   :  { %v599_v63 = vadd.f32 %v8016_v48, %v585_v47  ;;  %v586_v58 = vmul.f32 %v8011_v43, %v572_v54  ;;  %v613_v61 = vpack.c.bf16 %v608_v60, %v607_v16  ;;  %v573_v22 = vmul.f32 %v7406_v62, %v7974_v9 }
 0x39c   :  { %v7408_v26 = vpop.eup %7407 }
 0x39d   :  { %v600_v5 = vadd.f32 %v8016_v48, %v586_v58  ;;  %v574_v1 = vmul.f32 %v7408_v26, %v7980_v15  ;;  %v587_v7 = vmul.f32 %v8011_v43, %v573_v22  ;;  %v7356_v15 = vld [vmem:[%s9829_s6 + $0x8] sm:$0xff]   ;;  %s7633_s6 = smov 120  }
 0x39f   :  { %6693 = vmatmul.mubr.msk.bf16.gmra.mrb[8].mxu1 %vm284_vm1, %v613_v61  ;;  %v609_v30 = vpack.c.bf16 %v600_v5, %v599_v63  ;;  %v588_v24 = vmul.f32 %v8011_v43, %v574_v1  ;;  %v601_v12 = vadd.f32 %v8016_v48, %v587_v7 }
 0x3a0   :  { %6700 = vmatprep.mubr.msk.bf16.mxu1 %vm7632_vm2, %v9836_v50 }
 0x3a1   :  { %6677 = vmatmul.mubr.msk.bf16.vlgmr.msra.gmra.mrb[20].mxu0 %vm284_vm1, %v609_v30  ;;  %v602_v9 = vadd.f32 %v8016_v48, %v588_v24 }
 0x3a2   :  { %6680 = vmatprep.mubr.msk.bf16.mxu0 %vm7632_vm2, %v9836_v50  ;;  %6721 = vmatpush3.bf16.msra.mxu0 %v7355_v3  ;;  %v831_v3 = vsub.s32 4, %v7844_v57 }
 0x3a3   :  { %v610_v13 = vpack.c.bf16 %v602_v9, %v601_v12  ;;  %6722 = vmatprep.subr.bf16.mxu0 %v9836_v50 }
 0x3a6   :  { %6723 = vmatpush3.bf16.msra.mxu0 %v7356_v15 }
 0x3a7   :  { %6701 = vmatmul.mubr.msk.bf16.vlgmr.msra.gmra.mrb[12].mxu1 %vm284_vm1, %v609_v30  ;;  %6774 = vmatprep.subr.bf16.mxu0 %v9836_v50 }
 0x3a8   :  { %6704 = vmatprep.mubr.msk.bf16.mxu1 %vm7632_vm2, %v9836_v50 }
 0x3a9   :  { %6681 = vmatmul.mubr.msk.bf16.gmra.mrb[24].mxu0 %vm284_vm1, %v610_v13 }
 0x3aa   :  { %6724 = vmatprep.mubr.msk.bf16.mxu0 %vm7632_vm2, %v9836_v50 }
 0x3af   :  { %6705 = vmatmul.mubr.msk.bf16.gmra.mrb[16].mxu1 %vm284_vm1, %v610_v13 }
 0x3b0   :  { %6708 = vmatprep.mubr.msk.bf16.mxu1 %vm7632_vm2, %v9836_v50 }
 0x3b1   :  { %6725 = vmatmul.mubr.msk.bf16.vlgmr.msra.gmra.mrb[28].mxu0 %vm284_vm1, %v609_v30 }
 0x3b2   :  { %6728 = vmatprep.mubr.msk.bf16.mxu0 %vm7632_vm2, %v9836_v50 }
 0x3b7   :  { %6709 = vmatmul.mubr.msk.bf16.gmra.mrb[20].mxu1 %vm284_vm1, %v8028_v23 }
 0x3b8   :  { %6712 = vmatprep.mubr.msk.bf16.mxu1 %vm7632_vm2, %v9836_v50 }
 0x3b9   :  { %6729 = vmatmul.mubr.msk.bf16.gmra.mrb[32].mxu0 %vm284_vm1, %v610_v13  ;;  %v8165_v13 = vrot.slane %v8006_v37, %v831_v3 }
 0x3ba   :  { %6732 = vmatprep.mubr.msk.bf16.mxu0 %vm7632_vm2, %v9836_v50 }
 0x3bf   :  { %6713 = vmatmul.mubr.msk.bf16.gmra.mrb[24].mxu1 %vm284_vm1, %v612_v42 }
 0x3c0   :  { %6716 = vmatprep.mubr.msk.bf16.mxu1 %vm7632_vm2, %v9836_v50 }
 0x3c1   :  { %6733 = vmatmul.mubr.msk.bf16.gmra.mrb[36].mxu0 %vm284_vm1, %v8028_v23 }
 0x3c2   :  { %6736 = vmatprep.mubr.msk.bf16.mxu0 %vm7632_vm2, %v9836_v50 }
 0x3c7   :  { %6717 = vmatmul.mubr.msk.bf16.gmra.mrb[28].mxu1 %vm284_vm1, %v613_v61 }
 0x3c8   :  { %6746 = vmatprep.mubr.msk.bf16.mxu1 %vm7632_vm2, %v9836_v50 }
 0x3c9   :  { %6737 = vmatmul.mubr.msk.bf16.gmra.mrb[40].mxu0 %vm284_vm1, %v612_v42 }
 0x3ca   :  { %6740 = vmatprep.mubr.msk.bf16.mxu0 %vm7632_vm2, %v9836_v50 }
 0x3d1   :  { %6741 = vmatmul.mubr.msk.bf16.gmra.mrb[44].mxu0 %vm284_vm1, %v613_v61 }
 0x3d2   :  { %6776 = vmatprep.mubr.msk.bf16.mxu0 %vm7632_vm2, %v9836_v50 }
 0x462   :  { %v8114_v43 = vpop.f32.mrb[0].mxu1 }
 0x463   :  { %v6686_v48 = vpop.f32.mrb[1].mxu1 }
 0x464   :  { %v8116_v35 = vpop.f32.mrb[2].mxu1 }
 0x465   :  { %v6687_v17 = vpop.f32.mrb[3].mxu1 }
 0x46a   :  { %v8118_v40 = vpop.f32.mrb[4].mxu1 }
 0x46b   :  { %v6690_v19 = vpop.f32.mrb[5].mxu1 }
 0x46c   :  { %v8120_v28 = vpop.f32.mrb[6].mxu1 }
 0x46d   :  { %v6691_v44 = vpop.f32.mrb[7].mxu1 }
 0x472   :  { %v8122_v2 = vpop.f32.mrb[8].mxu1 }
 0x473   :  { %v6694_v23 = vpop.f32.mrb[9].mxu1 }
 0x474   :  { %v683_v27 = vpop.f32.mrb[20].mxu0  ;;  %v8125_v4 = vpop.f32.mrb[10].mxu1 }
 0x475   :  { %v6678_v10 = vpop.f32.mrb[21].mxu0  ;;  %v6695_v6 = vpop.f32.mrb[11].mxu1  ;;  %v684_v54 = vadd.f32 %v683_v27, %v8137_v55 }
 0x476   :  { %v686_v29 = vpop.f32.mrb[22].mxu0 }
 0x477   :  { %v6679_v31 = vpop.f32.mrb[23].mxu0  ;;  %v8148_v22 = vpack.c.bf16 %v684_v54, %v684_v54  ;;  %v687_v12 = vadd.f32 %v686_v29, %v8137_v55 }
 0x479   :  { %v8167_v44 = vpack.c.bf16 %v687_v12, %v687_v12 }
 0x47a   :  { %v781_v34 = vpop.f32.mrb[12].mxu1 }
 0x47b   :  { %v782_v39 = vadd.f32 %v781_v34, %v8128_v32  ;;  %v6702_v38 = vpop.f32.mrb[13].mxu1 }
 0x47c   :  { %v691_v41 = vpop.f32.mrb[24].mxu0  ;;  %v784_v42 = vpop.f32.mrb[14].mxu1 }
 0x47d   :  { %v8132_v46 = vpack.c.bf16 %v782_v39, %v782_v39  ;;  %v6682_v11 = vpop.f32.mrb[25].mxu0  ;;  %v6703_v49 = vpop.f32.mrb[15].mxu1  ;;  %v785_v16 = vadd.f32 %v784_v42, %v8128_v32  ;;  %v692_v39 = vadd.f32 %v691_v41, %v8137_v55  ;;  %v703_v42 = vadd.f32 %v8116_v35, %v8137_v55 }
 0x47e   :  { %v8134_v52 = vpop.f32.mrb[26].mxu0 }
 0x47f   :  { %v6683_v56 = vpop.f32.mrb[27].mxu0  ;;  %v1003_v47 = vsel %vm998_vm3, %v8132_v46, 0  ;;  %v8144_v62 = vpack.c.bf16 %v785_v16, %v785_v16  ;;  %v8194_v54 = vpack.c.bf16 %v692_v39, %v692_v39  ;;  %v695_v12 = vadd.f32 %v8134_v52, %v8137_v55 }
 0x480   :  { %6745 = vmatpush3.bf16.xpose.msra.mxu1 %v1003_v47 }
 0x481   :  { %6750 = vmatprep.subr.bf16.mxu1 %v9836_v50  ;;  %v1049_v24 = vsel %vm998_vm3, %v8144_v62, 0 }
 0x482   :  { %v789_v60 = vpop.f32.mrb[16].mxu1 }
 0x483   :  { %v6706_v63 = vpop.f32.mrb[17].mxu1  ;;  %v790_v7 = vadd.f32 %v789_v60, %v8128_v32 }
 0x484   :  { %v792_v58 = vpop.f32.mrb[18].mxu1  ;;  %v8146_v61 = vpop.f32.mrb[28].mxu0 }
 0x485   :  { %v6707_v26 = vpop.f32.mrb[19].mxu1  ;;  %v6726_v5 = vpop.f32.mrb[29].mxu0  ;;  %v8162_v15 = vpack.c.bf16 %v790_v7, %v790_v7  ;;  %v793_v29 = vadd.f32 %v792_v58, %v8128_v32 }
 0x486   :  { %v8150_v1 = vpop.f32.mrb[30].mxu0  ;;  %v8200_v26 = vpack.c.bf16 %v703_v42, %v703_v42 }
 0x487   :  { %v6727_v30 = vpop.f32.mrb[31].mxu0  ;;  %6747 = vmatmul.mubr.msk.bf16.vlgmr.msra.gmra.mrb[32].mxu1 %vm998_vm3, %v8148_v22  ;;  %v1095_v36 = vsel %vm998_vm3, %v8162_v15, 0  ;;  %v8191_v49 = vpack.c.bf16 %v793_v29, %v793_v29 }
 0x488   :  { %6751 = vmatpush3.bf16.xpose.msra.mxu1 %v1049_v24  ;;  %6752 = vmatprep.mubr.msk.bf16.mxu1 %vm7632_vm2, %v9836_v50 }
 0x489   :  { %6756 = vmatprep.subr.bf16.mxu1 %v9836_v50  ;;  %v1141_v24 = vsel %vm998_vm3, %v8191_v49, 0 }
 0x48a   :  { %v797_v9 = vpop.f32.mrb[20].mxu1 }
 0x48b   :  { %v6710_v48 = vpop.f32.mrb[21].mxu1  ;;  %v798_v5 = vadd.f32 %v797_v9, %v8128_v32 }
 0x48c   :  { %v800_v17 = vpop.f32.mrb[22].mxu1  ;;  %v887_v19 = vpop.f32.mrb[32].mxu0  ;;  %v711_v48 = vadd.f32 %v8120_v28, %v8137_v55 }
 0x48d   :  { %v801_v23 = vadd.f32 %v800_v17, %v8128_v32  ;;  %v8171_v25 = vadd.f32 %v887_v19, %v8165_v13  ;;  %v6711_v27 = vpop.f32.mrb[23].mxu1  ;;  %v6730_v10 = vpop.f32.mrb[33].mxu0  ;;  %v8225_v19 = vpack.c.bf16 %v798_v5, %v798_v5 }
 0x48e   :  { %v890_v6 = vpop.f32.mrb[34].mxu0  ;;  %v8228_v10 = vpack.c.bf16 %v695_v12, %v695_v12 }
 0x48f   :  { %v8174_v31 = vpack.c.bf16 %v801_v23, %v801_v23  ;;  %v8177_v37 = vadd.f32 %v890_v6, %v8165_v13  ;;  %v6731_v34 = vpop.f32.mrb[35].mxu0  ;;  %6753 = vmatmul.mubr.msk.bf16.vlgmr.msra.gmra.mrb[36].mxu1 %vm998_vm3, %v8167_v44 }
 0x490   :  { %6757 = vmatpush3.bf16.xpose.msra.mxu1 %v1095_v36  ;;  %6758 = vmatprep.mubr.msk.bf16.mxu1 %vm7632_vm2, %v9836_v50  ;;  %v8234_v36 = vpack.c.bf16 %v711_v48, %v711_v48 }
 0x491   :  { %v1233_v38 = vsel %vm998_vm3, %v8174_v31, 0  ;;  %6762 = vmatprep.subr.bf16.mxu1 %v9836_v50 }
 0x492   :  { %v805_v11 = vpop.f32.mrb[24].mxu1  ;;  %6775 = vmatpush3.bf16.xpose.msra.mxu0 %v1233_v38 }
 0x493   :  { %v6714_v16 = vpop.f32.mrb[25].mxu1  ;;  %6786 = vmatprep.subr.bf16.mxu0 %v9836_v50  ;;  %v806_v38 = vadd.f32 %v805_v11, %v8128_v32  ;;  %v883_v11 = vadd.f32 %v8150_v1, %v8165_v13 }
 0x494   :  { %v808_v56 = vpop.f32.mrb[26].mxu1  ;;  %v895_v47 = vpop.f32.mrb[36].mxu0 }
 0x495   :  { %v809_v41 = vadd.f32 %v808_v56, %v8128_v32  ;;  %v8198_v60 = vadd.f32 %v895_v47, %v8165_v13  ;;  %v6715_v63 = vpop.f32.mrb[27].mxu1  ;;  %v6734_v58 = vpop.f32.mrb[37].mxu0  ;;  %v1187_v47 = vsel %vm998_vm3, %v8225_v19, 0  ;;  %v8266_v5 = vpack.c.bf16 %v883_v11, %v883_v11 }
 0x496   :  { %v898_v35 = vpop.f32.mrb[38].mxu0  ;;  %v719_v58 = vadd.f32 %v8125_v4, %v8137_v55 }
 0x497   :  { %v8203_v7 = vpack.c.bf16 %v809_v41, %v809_v41  ;;  %v8206_v3 = vadd.f32 %v898_v35, %v8165_v13  ;;  %v6735_v30 = vpop.f32.mrb[39].mxu0  ;;  %6759 = vmatmul.mubr.msk.bf16.vlgmr.msra.gmra.mrb[40].mxu1 %vm998_vm3, %v8194_v54  ;;  %v700_v41 = vadd.f32 %v8114_v43, %v8137_v55  ;;  %v8261_v35 = vpack.c.bf16 %v806_v38, %v806_v38 }
 0x498   :  { %6763 = vmatpush3.bf16.xpose.msra.mxu1 %v1141_v24  ;;  %6764 = vmatprep.mubr.msk.bf16.mxu1 %vm7632_vm2, %v9836_v50 }
 0x499   :  { %6777 = vmatmul.mubr.msk.bf16.vlgmr.msra.gmra.mrb[48].mxu0 %vm998_vm3, %v8200_v26  ;;  %v1325_v9 = vsel %vm998_vm3, %v8203_v7, 0  ;;  %6768 = vmatprep.subr.bf16.mxu1 %v9836_v50  ;;  %v8264_v1 = vpack.c.bf16 %v700_v41, %v700_v41 }
 0x49a   :  { %v813_v17 = vpop.f32.mrb[28].mxu1  ;;  %6787 = vmatpush3.bf16.xpose.msra.mxu0 %v1325_v9  ;;  %6788 = vmatprep.mubr.msk.bf16.mxu0 %vm7632_vm2, %v9836_v50  ;;  %v8271_v9 = vpack.c.bf16 %v719_v58, %v719_v58 }
 0x49b   :  { %v6718_v23 = vpop.f32.mrb[29].mxu1  ;;  %6798 = vmatprep.subr.bf16.mxu0 %v9836_v50  ;;  %v814_v48 = vadd.f32 %v813_v17, %v8128_v32 }
 0x49c   :  { %v816_v52 = vpop.f32.mrb[30].mxu1  ;;  %v903_v27 = vpop.f32.mrb[40].mxu0 }
 0x49d   :  { %v817_v6 = vadd.f32 %v816_v52, %v8128_v32  ;;  %v8232_v29 = vadd.f32 %v903_v27, %v8165_v13  ;;  %v6719_v28 = vpop.f32.mrb[31].mxu1  ;;  %v6738_v34 = vpop.f32.mrb[41].mxu0  ;;  %v1279_v52 = vsel %vm998_vm3, %v8261_v35, 0  ;;  %v708_v27 = vadd.f32 %v8118_v40, %v8137_v55 }
 0x49e   :  { %v906_v39 = vpop.f32.mrb[42].mxu0  ;;  %v1630_v32 = vsel %vm1582_vm4, %v8266_v5, 0  ;;  %v8292_v17 = vpack.c.bf16 %v814_v48, %v814_v48  ;;  %v880_v40 = vadd.f32 %v8146_v61, %v8165_v13  ;;  %v716_v34 = vadd.f32 %v8122_v2, %v8137_v55 }
 0x49f   :  { %v8237_v42 = vpack.c.bf16 %v817_v6, %v817_v6  ;;  %v8240_v16 = vadd.f32 %v906_v39, %v8165_v13  ;;  %v6739_v56 = vpop.f32.mrb[43].mxu0  ;;  %6765 = vmatmul.mubr.msk.bf16.vlgmr.msra.gmra.mrb[44].mxu1 %vm998_vm3, %v8228_v10  ;;  %v8295_v6 = vpack.c.bf16 %v708_v27, %v708_v27  ;;  %v445_v2 = vand.u32 127, %v416_v53 }
 0x4a0   :  { %6769 = vmatpush3.bf16.xpose.msra.mxu1 %v1187_v47  ;;  %6770 = vmatprep.mubr.msk.bf16.mxu1 %vm7632_vm2, %v9836_v50  ;;  %v1371_v28 = vsel %vm998_vm3, %v8292_v17, 0  ;;  %v8308_v39 = vpack.c.bf16 %v880_v40, %v880_v40  ;;  %v8310_v38 = vpack.c.bf16 %v716_v34, %v716_v34 }
 0x4a1   :  { %6789 = vmatmul.mubr.msk.bf16.vlgmr.msra.gmra.mrb[52].mxu0 %vm998_vm3, %v8234_v36  ;;  %v1417_v63 = vsel %vm998_vm3, %v8237_v42, 0  ;;  %6780 = vmatprep.subr.bf16.mxu1 %v9836_v50  ;;  %vm446_vm5 = vcmp.gt.s32.totalorder %v445_v2, 4 }
 0x4a2   :  { %6799 = vmatpush3.bf16.xpose.msra.mxu0 %v1417_v63  ;;  %6800 = vmatprep.mubr.msk.bf16.mxu0 %vm7632_vm2, %v9836_v50  ;;  %v1584_v61 = vsel %vm1582_vm4, %v8308_v39, 0  ;;  %v8321_v55 = vsel %vm446_vm5, -1e+30, %v9836_v50  ;;  %vm6200_vm5 = vcmask 519424  }
 0x4a3   :  { %6810 = vmatprep.subr.bf16.mxu0 %v9836_v50 }
 0x4a4   :  { %v911_v43 = vpop.f32.mrb[44].mxu0 }
 0x4a5   :  { %v8269_v30 = vadd.f32 %v911_v43, %v8165_v13  ;;  %v6742_v24 = vpop.f32.mrb[45].mxu0 }
 0x4a6   :  { %v914_v12 = vpop.f32.mrb[46].mxu0 }
 0x4a7   :  { %v8275_v4 = vadd.f32 %v914_v12, %v8165_v13  ;;  %v6743_v23 = vpop.f32.mrb[47].mxu0  ;;  %6771 = vmatmul.mubr.msk.bf16.vlgmr.msra.gmra.mrb[48].mxu1 %vm998_vm3, %v8264_v1 }
 0x4a8   :  { %6781 = vmatpush3.bf16.xpose.msra.mxu1 %v1279_v52  ;;  %6782 = vmatprep.mubr.msk.bf16.mxu1 %vm7632_vm2, %v9836_v50 }
 0x4a9   :  { %6801 = vmatmul.mubr.msk.bf16.vlgmr.msra.gmra.mrb[56].mxu0 %vm998_vm3, %v8271_v9  ;;  %6792 = vmatprep.subr.bf16.mxu1 %v9836_v50 }
 0x4aa   :  { %6811 = vmatpush3.bf16.msra.mxu0 %v1630_v32  ;;  %6812 = vmatprep.mubr.msk.bf16.mxu0 %vm7632_vm2, %v9836_v50 }
 0x4ab   :  { %6822 = vmatprep.subr.bf16.mxu0 %v9836_v50 }
 0x4af   :  { %6783 = vmatmul.mubr.msk.bf16.vlgmr.msra.gmra.mrb[52].mxu1 %vm998_vm3, %v8295_v6 }
 0x4b0   :  { %6793 = vmatpush3.bf16.xpose.msra.mxu1 %v1371_v28  ;;  %6794 = vmatprep.mubr.msk.bf16.mxu1 %vm7632_vm2, %v9836_v50 }
 0x4b1   :  { %6804 = vmatprep.subr.bf16.mxu1 %v9836_v50 }
 0x4b7   :  { %6795 = vmatmul.mubr.msk.bf16.vlgmr.msra.gmra.mrb[56].mxu1 %vm998_vm3, %v8310_v38 }
 0x4b8   :  { %6805 = vmatpush3.bf16.msra.mxu1 %v1584_v61  ;;  %6806 = vmatprep.mubr.msk.bf16.mxu1 %vm7632_vm2, %v9836_v50 }
 0x4b9   :  { %6816 = vmatprep.subr.bf16.mxu1 %v9836_v50 }
 0x55a   :  { %v1039_v13 = vpop.f32.mrb[32].mxu1 }
 0x55b   :  { %v8324_v56 = vadd.f32 %v1039_v13, %v8321_v55  ;;  %v6748_v47 = vpop.f32.mrb[33].mxu1 }
 0x55c   :  { %v1042_v41 = vpop.f32.mrb[34].mxu1 }
 0x55d   :  { %v6749_v11 = vpop.f32.mrb[35].mxu1  ;;  %v1459_v63 = vsel %vm998_vm3, %v8324_v56, -inf }
 0x55e   :  { %1460 = vmax.xlane.f32.xlu0 %v1459_v63 }
 0x562   :  { %v1085_v58 = vpop.f32.mrb[36].mxu1 }
 0x563   :  { %v8329_v43 = vadd.f32 %v1085_v58, %v8321_v55  ;;  %v6754_v53 = vpop.f32.mrb[37].mxu1 }
 0x564   :  { %v1088_v24 = vpop.f32.mrb[38].mxu1 }
 0x565   :  { %v6755_v12 = vpop.f32.mrb[39].mxu1  ;;  %v1462_v48 = vsel %vm998_vm3, %v8329_v43, -inf }
 0x566   :  { %1463 = vmax.xlane.f32.xlu1 %v1462_v48 }
 0x56a   :  { %v1131_v23 = vpop.f32.mrb[40].mxu1 }
 0x56b   :  { %v8334_v52 = vadd.f32 %v1131_v23, %v8321_v55  ;;  %v6760_v27 = vpop.f32.mrb[41].mxu1 }
 0x56c   :  { %v1134_v32 = vpop.f32.mrb[42].mxu1  ;;  %v1269_v40 = vpop.f32.mrb[48].mxu0 }
 0x56d   :  { %v6761_v28 = vpop.f32.mrb[43].mxu1  ;;  %v6778_v34 = vpop.f32.mrb[49].mxu0  ;;  %v1465_v61 = vsel %vm998_vm3, %v8334_v52, -inf  ;;  %v8342_v53 = vadd.f32 %v1269_v40, %v8321_v55 }
 0x56e   :  { %1466 = vmax.xlane.f32.xlu0 %v1465_v61  ;;  %v1272_v2 = vpop.f32.mrb[50].mxu0 }
 0x56f   :  { %v6779_v13 = vpop.f32.mrb[51].mxu0  ;;  %v1474_v28 = vsel %vm998_vm3, %v8342_v53, -inf }
 0x572   :  { %v1177_v47 = vpop.f32.mrb[44].mxu1 }
 0x573   :  { %v8339_v41 = vadd.f32 %v1177_v47, %v8321_v55  ;;  %v6766_v11 = vpop.f32.mrb[45].mxu1 }
 0x574   :  { %v1180_v63 = vpop.f32.mrb[46].mxu1  ;;  %v1361_v58 = vpop.f32.mrb[52].mxu0 }
 0x575   :  { %v6767_v24 = vpop.f32.mrb[47].mxu1  ;;  %v6790_v12 = vpop.f32.mrb[53].mxu0  ;;  %v1468_v48 = vsel %vm998_vm3, %v8339_v41, -inf  ;;  %v8347_v32 = vadd.f32 %v1361_v58, %v8321_v55 }
 0x576   :  { %1469 = vmax.xlane.f32.xlu1 %v1468_v48  ;;  %v1364_v23 = vpop.f32.mrb[54].mxu0 }
 0x577   :  { %v6791_v27 = vpop.f32.mrb[55].mxu0  ;;  %v1480_v58 = vsel %vm998_vm3, %v8347_v32, -inf }
 0x57a   :  { %v1223_v34 = vpop.f32.mrb[48].mxu1  ;;  %1475 = vmax.xlane.f32.xlu1 %v1474_v28 }
 0x57b   :  { %v1224_v61 = vadd.f32 %v1223_v34, %v8321_v55  ;;  %v6772_v40 = vpop.f32.mrb[49].mxu1 }
 0x57c   :  { %v1226_v2 = vpop.f32.mrb[50].mxu1  ;;  %v1453_v13 = vpop.f32.mrb[56].mxu0 }
 0x57d   :  { %v8353_v47 = vadd.f32 %v1453_v13, %v8321_v55  ;;  %v6773_v11 = vpop.f32.mrb[51].mxu1  ;;  %v6802_v63 = vpop.f32.mrb[57].mxu0  ;;  %v1471_v24 = vsel %vm998_vm3, %v1224_v61, -inf }
 0x57e   :  { %1472 = vmax.xlane.f32.xlu0 %v1471_v24  ;;  %1481 = vmax.xlane.f32.xlu1 %v1480_v58  ;;  %v1456_v12 = vpop.f32.mrb[58].mxu0 }
 0x57f   :  { %v6803_v48 = vpop.f32.mrb[59].mxu0  ;;  %v1486_v23 = vsel %vm998_vm3, %v8353_v47, -inf }
 0x582   :  { %v1315_v27 = vpop.f32.mrb[52].mxu1  ;;  %1487 = vmax.xlane.f32.xlu1 %v1486_v23 }
 0x583   :  { %v1316_v28 = vadd.f32 %v1315_v27, %v8321_v55  ;;  %v6784_v34 = vpop.f32.mrb[53].mxu1 }
 0x584   :  { %v1318_v40 = vpop.f32.mrb[54].mxu1 }
 0x585   :  { %v6785_v2 = vpop.f32.mrb[55].mxu1  ;;  %v1477_v13 = vsel %vm998_vm3, %v1316_v28, -inf }
 0x586   :  { %1478 = vmax.xlane.f32.xlu0 %v1477_v13 }
 0x58a   :  { %v1407_v11 = vpop.f32.mrb[56].mxu1 }
 0x58b   :  { %v8363_v63 = vadd.f32 %v1407_v11, %v8321_v55  ;;  %v6796_v24 = vpop.f32.mrb[57].mxu1 }
 0x58c   :  { %v1410_v58 = vpop.f32.mrb[58].mxu1 }
 0x58d   :  { %v6797_v12 = vpop.f32.mrb[59].mxu1  ;;  %v1483_v48 = vsel %vm998_vm3, %v8363_v63, -inf }
 0x58e   :  { %1484 = vmax.xlane.f32.xlu0 %v1483_v48 }
 0x5eb   :  { %v1461_v23 = vpop.xlane.xlu0 %1460 }
 0x5ec   :  { %v1489_v27 = vsub.f32 %v8324_v56, %v1461_v23 }
 0x5ee   :  { %v1499_v34 = vmul.f32 1.442695, %v1489_v27 }
 0x5f0   :  { %7409 = vpow2.f32 %v1499_v34 }
 0x5f3   :  { %v1464_v40 = vpop.xlane.xlu1 %1463 }
 0x5f4   :  { %v1490_v2 = vsub.f32 %v8329_v43, %v1464_v40 }
 0x5f6   :  { %v1501_v13 = vmul.f32 1.442695, %v1490_v2 }
 0x5f8   :  { %7411 = vpow2.f32 %v1501_v13 }
 0x5fa   :  { %v8369_v50 = vpop.eup %7409 }
 0x5fb   :  { %v1467_v11 = vpop.xlane.xlu0 %1466  ;;  %v1519_v24 = vsel %vm998_vm3, %v8369_v50, 0.0 }
 0x5fc   :  { %v1491_v58 = vsub.f32 %v8334_v52, %v1467_v11  ;;  %1520 = vadd.xlane.f32.xlu0 %v1519_v24 }
 0x5fe   :  { %v1503_v12 = vmul.f32 1.442695, %v1491_v58 }
 0x600   :  { %7413 = vpow2.f32 %v1503_v12 }
 0x602   :  { %v8374_v48 = vpop.eup %7411 }
 0x603   :  { %v1470_v56 = vpop.xlane.xlu1 %1469  ;;  %v1522_v23 = vsel %vm998_vm3, %v8374_v48, 0.0 }
 0x604   :  { %v1492_v43 = vsub.f32 %v8339_v41, %v1470_v56  ;;  %1523 = vadd.xlane.f32.xlu1 %v1522_v23 }
 0x606   :  { %v1505_v27 = vmul.f32 1.442695, %v1492_v43 }
 0x607   :  { %v1476_v34 = vpop.xlane.xlu1 %1475 }
 0x608   :  { %7415 = vpow2.f32 %v1505_v27  ;;  %v1494_v40 = vsub.f32 %v8342_v53, %v1476_v34 }
 0x60a   :  { %v8380_v2 = vpop.eup %7413  ;;  %v1509_v52 = vmul.f32 1.442695, %v1494_v40 }
 0x60b   :  { %v1473_v13 = vpop.xlane.xlu0 %1472  ;;  %v1482_v11 = vpop.xlane.xlu1 %1481  ;;  %v1525_v24 = vsel %vm998_vm3, %v8380_v2, 0.0 }
 0x60c   :  { %7417 = vpow2.f32 %v1509_v52  ;;  %v1493_v58 = vsub.f32 %v1224_v61, %v1473_v13  ;;  %v1496_v12 = vsub.f32 %v8347_v32, %v1482_v11  ;;  %1526 = vadd.xlane.f32.xlu0 %v1525_v24 }
 0x60e   :  { %v1507_v41 = vmul.f32 1.442695, %v1493_v58  ;;  %v1513_v56 = vmul.f32 1.442695, %v1496_v12 }
 0x60f   :  { %v1488_v23 = vpop.xlane.xlu1 %1487 }
 0x610   :  { %7419 = vpow2.f32 %v1507_v41  ;;  %v1498_v43 = vsub.f32 %v8353_v47, %v1488_v23 }
 0x611   :  { %7421 = vpow2.f32 %v1513_v56 }
 0x612   :  { %v8386_v53 = vpop.eup %7415  ;;  %v1517_v27 = vmul.f32 1.442695, %v1498_v43 }
 0x613   :  { %v1479_v34 = vpop.xlane.xlu0 %1478  ;;  %v1528_v40 = vsel %vm998_vm3, %v8386_v53, 0.0 }
 0x614   :  { %7423 = vpow2.f32 %v1517_v27  ;;  %v1495_v52 = vsub.f32 %v1316_v28, %v1479_v34  ;;  %1529 = vadd.xlane.f32.xlu1 %v1528_v40  ;;  %v8457_v40 = vpack.c.bf16 %v8177_v37, %v8177_v37  ;;  %v8473_v37 = vpack.c.bf16 %v8171_v25, %v8171_v25 }
 0x616   :  { %v8390_v61 = vpop.eup %7417  ;;  %v1511_v32 = vmul.f32 1.442695, %v1495_v52  ;;  %v8465_v52 = vpack.c.bf16 %v8198_v60, %v8198_v60 }
 0x617   :  { %v1534_v13 = vsel %vm998_vm3, %v8390_v61, 0.0 }
 0x618   :  { %7425 = vpow2.f32 %v1511_v32  ;;  %1535 = vadd.xlane.f32.xlu1 %v1534_v13  ;;  %v8477_v32 = vpack.c.bf16 %v8206_v3, %v8206_v3  ;;  %v1676_v3 = vsel %vm1582_vm4, %v8473_v37, 0 }
 0x61a   :  { %v8394_v47 = vpop.eup %7419 }
 0x61b   :  { %v8396_v11 = vpop.eup %7421  ;;  %v1485_v24 = vpop.xlane.xlu0 %1484  ;;  %v1531_v58 = vsel %vm998_vm3, %v8394_v47, 0.0 }
 0x61c   :  { %v1497_v12 = vsub.f32 %v8363_v63, %v1485_v24  ;;  %1532 = vadd.xlane.f32.xlu0 %v1531_v58  ;;  %v1540_v28 = vsel %vm998_vm3, %v8396_v11, 0.0 }
 0x61d   :  { %1541 = vadd.xlane.f32.xlu1 %v1540_v28  ;;  %v9861_v28 = vmov 0.0  }
 0x61e   :  { %v8403_v41 = vpop.eup %7423  ;;  %v1515_v56 = vmul.f32 1.442695, %v1497_v12 }
 0x61f   :  { %v1546_v23 = vsel %vm998_vm3, %v8403_v41, 0.0 }
 0x620   :  { %7427 = vpow2.f32 %v1515_v56 }
 0x621   :  { %1547 = vadd.xlane.f32.xlu1 %v1546_v23 }
 0x622   :  { %v8407_v43 = vpop.eup %7425 }
 0x623   :  { %v1537_v27 = vsel %vm998_vm3, %v8407_v43, 0.0 }
 0x624   :  { %1538 = vadd.xlane.f32.xlu0 %v1537_v27 }
 0x62a   :  { %v8411_v63 = vpop.eup %7427 }
 0x62b   :  { %v1543_v34 = vsel %vm998_vm3, %v8411_v63, 0.0 }
 0x62c   :  { %1544 = vadd.xlane.f32.xlu0 %v1543_v34 }
 0x632   :  { %2102 = vrot.lane.b32.xlu1 %v8144_v62, %s7633_s6 }
 0x636   :  { %2050 = vrot.lane.b32.xlu1 %v8148_v22, %s7633_s6 }
 0x63a   :  { %2100 = vrot.lane.b32.xlu1 %v8167_v44, %s7633_s6 }
 0x63e   :  { %2202 = vrot.lane.b32.xlu1 %v8191_v49, %s7633_s6 }
 0x642   :  { %2200 = vrot.lane.b32.xlu1 %v8228_v10, %s7633_s6  ;;  %2052 = vrot.lane.b32.xlu0 %v8132_v46, %s7633_s6 }
 0x646   :  { %2302 = vrot.lane.b32.xlu1 %v8174_v31, %s7633_s6  ;;  %2152 = vrot.lane.b32.xlu0 %v8162_v15, %s7633_s6 }
 0x64a   :  { %2300 = vrot.lane.b32.xlu1 %v8200_v26, %s7633_s6  ;;  %2150 = vrot.lane.b32.xlu0 %v8194_v54, %s7633_s6 }
 0x64e   :  { %2402 = vrot.lane.b32.xlu1 %v8203_v7, %s7633_s6  ;;  %2252 = vrot.lane.b32.xlu0 %v8225_v19, %s7633_s6 }
 0x652   :  { %2400 = vrot.lane.b32.xlu1 %v8234_v36, %s7633_s6  ;;  %2250 = vrot.lane.b32.xlu0 %v8264_v1, %s7633_s6 }
 0x656   :  { %2502 = vrot.lane.b32.xlu1 %v8237_v42, %s7633_s6  ;;  %2352 = vrot.lane.b32.xlu0 %v8261_v35, %s7633_s6 }
 0x65a   :  { %2500 = vrot.lane.b32.xlu1 %v8271_v9, %s7633_s6  ;;  %2350 = vrot.lane.b32.xlu0 %v8295_v6, %s7633_s6 }
 0x65e   :  { %2718 = vrot.lane.b32.xlu1 %v8266_v5, %s7633_s6  ;;  %2452 = vrot.lane.b32.xlu0 %v8292_v17, %s7633_s6 }
 0x662   :  { %2814 = vrot.lane.b32.xlu1 %v8457_v40, %s7633_s6  ;;  %2450 = vrot.lane.b32.xlu0 %v8310_v38, %s7633_s6 }
 0x666   :  { %2862 = vrot.lane.b32.xlu1 %v8465_v52, %s7633_s6  ;;  %2670 = vrot.lane.b32.xlu0 %v8308_v39, %s7633_s6 }
 0x66a   :  { %2910 = vrot.lane.b32.xlu1 %v8477_v32, %s7633_s6  ;;  %2766 = vrot.lane.b32.xlu0 %v8473_v37, %s7633_s6 }
 0x689   :  { %v1521_v60 = vpop.xlane.xlu0 %1520 }
 0x68a   :  { %7429 = vrcp.f32 %v1521_v60 }
 0x691   :  { %v1524_v13 = vpop.xlane.xlu1 %1523 }
 0x692   :  { %7431 = vrcp.f32 %v1524_v13 }
 0x694   :  { %v7430_v24 = vpop.eup %7429 }
 0x695   :  { %v1550_v58 = vmul.f32 %v7430_v24, %v8369_v50  ;;  %v1722_v50 = vsel %vm1582_vm4, %v8457_v40, 0 }
 0x697   :  { %v1569_v12 = vpack.c.bf16 %v1550_v58, %v1550_v58 }
 0x699   :  { %v1527_v25 = vpop.xlane.xlu0 %1526  ;;  %6807 = vmatmul.mubr.msk.bf16.vlgmr.msra.gmra.mrb[60].mxu1 %vm998_vm3, %v1569_v12  ;;  %v1768_v12 = vsel %vm1582_vm4, %v8465_v52, 0 }
 0x69a   :  { %7433 = vrcp.f32 %v1527_v25  ;;  %6817 = vmatpush3.bf16.msra.mxu1 %v1676_v3  ;;  %6818 = vmatprep.mubr.msk.bf16.mxu1 %vm7632_vm2, %v9861_v28 }
 0x69b   :  { %6828 = vmatprep.subr.bf16.mxu1 %v9861_v28 }
 0x69c   :  { %v7432_v56 = vpop.eup %7431 }
 0x69d   :  { %v1552_v23 = vmul.f32 %v7432_v56, %v8374_v48 }
 0x69f   :  { %v1570_v27 = vpack.c.bf16 %v1552_v23, %v1552_v23 }
 0x6a1   :  { %6813 = vmatmul.mubr.msk.bf16.vlgmr.msra.gmra.mrb[60].mxu0 %vm998_vm3, %v1570_v27  ;;  %v1530_v34 = vpop.xlane.xlu1 %1529 }
 0x6a2   :  { %6823 = vmatpush3.bf16.msra.mxu0 %v1722_v50  ;;  %7435 = vrcp.f32 %v1530_v34  ;;  %6824 = vmatprep.mubr.msk.bf16.mxu0 %vm7632_vm2, %v9861_v28  ;;  %v1814_v34 = vsel %vm1582_vm4, %v8477_v32, 0 }
 0x6a3   :  { %6834 = vmatprep.subr.bf16.mxu0 %v9861_v28 }
 0x6a4   :  { %v7434_v60 = vpop.eup %7433 }
 0x6a5   :  { %v1536_v13 = vpop.xlane.xlu1 %1535  ;;  %v1554_v24 = vmul.f32 %v7434_v60, %v8380_v2 }
 0x6a6   :  { %7437 = vrcp.f32 %v1536_v13 }
 0x6a7   :  { %v1571_v48 = vpack.c.bf16 %v1554_v24, %v1554_v24  ;;  %v8514_v24 = vpack.c.bf16 %v8232_v29, %v8232_v29 }
 0x6a9   :  { %v1533_v58 = vpop.xlane.xlu0 %1532  ;;  %6819 = vmatmul.mubr.msk.bf16.vlgmr.msra.gmra.mrb[64].mxu1 %vm998_vm3, %v1571_v48  ;;  %v8518_v48 = vpack.c.bf16 %v8240_v16, %v8240_v16  ;;  %v1860_v29 = vsel %vm1582_vm4, %v8514_v24, 0 }
 0x6aa   :  { %7439 = vrcp.f32 %v1533_v58  ;;  %6829 = vmatpush3.bf16.msra.mxu1 %v1768_v12  ;;  %v1542_v25 = vpop.xlane.xlu1 %1541  ;;  %6830 = vmatprep.mubr.msk.bf16.mxu1 %vm7632_vm2, %v9861_v28 }
 0x6ab   :  { %6840 = vmatprep.subr.bf16.mxu1 %v9861_v28  ;;  %7441 = vrcp.f32 %v1542_v25 }
 0x6ac   :  { %v7436_v3 = vpop.eup %7435 }
 0x6ad   :  { %v1556_v56 = vmul.f32 %v7436_v3, %v8386_v53 }
 0x6ae   :  { %v1548_v2 = vpop.xlane.xlu1 %1547 }
 0x6af   :  { %v1572_v23 = vpack.c.bf16 %v1556_v56, %v1556_v56 }
 0x6b0   :  { %v7438_v27 = vpop.eup %7437 }
 0x6b1   :  { %v1539_v50 = vpop.xlane.xlu0 %1538  ;;  %6825 = vmatmul.mubr.msk.bf16.vlgmr.msra.gmra.mrb[64].mxu0 %vm998_vm3, %v1572_v23  ;;  %v1560_v53 = vmul.f32 %v7438_v27, %v8390_v61  ;;  %v1906_v61 = vsel %vm1582_vm4, %v8518_v48, 0  ;;  %v8536_v27 = vpack.c.bf16 %v8269_v30, %v8269_v30 }
 0x6b2   :  { %7443 = vrcp.f32 %v1539_v50  ;;  %6835 = vmatpush3.bf16.msra.mxu0 %v1814_v34  ;;  %v2103_v60 = vpop.permute.xlu1 %2102  ;;  %6836 = vmatprep.mubr.msk.bf16.mxu0 %vm7632_vm2, %v9861_v28  ;;  %v8540_v50 = vpack.c.bf16 %v8275_v4, %v8275_v4 }
 0x6b3   :  { %6846 = vmatprep.subr.bf16.mxu0 %v9861_v28  ;;  %7445 = vrcp.f32 %v1548_v2  ;;  %v1574_v3 = vpack.c.bf16 %v1560_v53, %v1560_v53  ;;  %v1952_v30 = vsel %vm1582_vm4, %v8536_v27, 0 }
 0x6b4   :  { %v7440_v13 = vpop.eup %7439 }
 0x6b5   :  { %v1558_v58 = vmul.f32 %v7440_v13, %v8394_v47  ;;  %v7442_v56 = vpop.eup %7441 }
 0x6b6   :  { %v2051_v12 = vpop.permute.xlu1 %2050  ;;  %v1564_v47 = vmul.f32 %v7442_v56, %v8396_v11  ;;  %v1998_v56 = vsel %vm1582_vm4, %v8540_v50, 0 }
 0x6b7   :  { %v1573_v25 = vpack.c.bf16 %v1558_v58, %v1558_v58 }
 0x6b9   :  { %v1545_v23 = vpop.xlane.xlu0 %1544  ;;  %6831 = vmatmul.mubr.msk.bf16.vlgmr.msra.gmra.mrb[68].mxu1 %vm998_vm3, %v1573_v25  ;;  %6837 = vmatmul.mubr.msk.bf16.vlgmr.msra.gmra.mrb[68].mxu0 %vm998_vm3, %v1574_v3  ;;  %v1576_v25 = vpack.c.bf16 %v1564_v47, %v1564_v47 }
 0x6ba   :  { %7447 = vrcp.f32 %v1545_v23  ;;  %6841 = vmatpush3.bf16.msra.mxu1 %v1860_v29  ;;  %6847 = vmatpush3.bf16.msra.mxu0 %v1906_v61  ;;  %v2101_v16 = vpop.permute.xlu1 %2100 }
 0x6bb   :  { %6842 = vmatprep.mubr.msk.bf16.mxu1 %vm7632_vm2, %v9861_v28  ;;  %6848 = vmatprep.mubr.msk.bf16.mxu0 %vm7632_vm2, %v9861_v28 }
 0x6bc   :  { %v7444_v2 = vpop.eup %7443  ;;  %6852 = vmatprep.subr.bf16.mxu1 %v9861_v28  ;;  %6858 = vmatprep.subr.bf16.mxu0 %v9861_v28 }
 0x6bd   :  { %v2053_v34 = vpop.permute.xlu0 %2052  ;;  %v1562_v53 = vmul.f32 %v7444_v2, %v8407_v43  ;;  %v7446_v11 = vpop.eup %7445 }
 0x6be   :  { %v2203_v13 = vpop.permute.xlu1 %2202  ;;  %v1568_v4 = vmul.f32 %v7446_v11, %v8403_v41 }
 0x6bf   :  { %v1575_v58 = vpack.c.bf16 %v1562_v53, %v1562_v53  ;;  %v2108_v53 = vsel %vm998_vm3, %v2103_v60, 0  ;;  %v2208_v60 = vsel %vm998_vm3, %v2203_v13, 0 }
 0x6c0   :  { %v1578_v2 = vpack.c.bf16 %v1568_v4, %v1568_v4 }
 0x6c1   :  { %v2153_v3 = vpop.permute.xlu0 %2152  ;;  %6843 = vmatmul.mubr.msk.bf16.vlgmr.msra.gmra.mrb[72].mxu1 %vm998_vm3, %v1575_v58  ;;  %6849 = vmatmul.mubr.msk.bf16.vlgmr.msra.gmra.mrb[72].mxu0 %vm998_vm3, %v1576_v25  ;;  %v2058_v58 = vsel %vm998_vm3, %v2053_v34, 0 }
 0x6c2   :  { %6853 = vmatpush3.bf16.msra.mxu1 %v1952_v30  ;;  %6859 = vmatpush3.bf16.msra.mxu0 %v1998_v56  ;;  %v2201_v23 = vpop.permute.xlu1 %2200  ;;  %v2158_v34 = vsel %vm998_vm3, %v2153_v3, 0 }
 0x6c3   :  { %6854 = vmatprep.mubr.msk.bf16.mxu1 %vm7632_vm2, %v9861_v28  ;;  %6860 = vmatprep.mubr.msk.bf16.mxu0 %vm7632_vm2, %v9861_v28 }
 0x6c4   :  { %v7448_v43 = vpop.eup %7447  ;;  %6864 = vmatprep.subr.bf16.mxu1 %v9861_v28  ;;  %6870 = vmatprep.subr.bf16.mxu0 %v9861_v28 }
 0x6c5   :  { %v2151_v29 = vpop.permute.xlu0 %2150  ;;  %v1566_v61 = vmul.f32 %v7448_v43, %v8411_v63 }
 0x6c6   :  { %v2303_v41 = vpop.permute.xlu1 %2302 }
 0x6c7   :  { %v1577_v47 = vpack.c.bf16 %v1566_v61, %v1566_v61  ;;  %v2308_v3 = vsel %vm998_vm3, %v2303_v41, 0 }
 0x6c9   :  { %6855 = vmatmul.mubr.msk.bf16.vlgmr.msra.gmra.mrb[76].mxu1 %vm998_vm3, %v1577_v47  ;;  %6861 = vmatmul.mubr.msk.bf16.vlgmr.msra.gmra.mrb[76].mxu0 %vm998_vm3, %v1578_v2  ;;  %v2253_v25 = vpop.permute.xlu0 %2252 }
 0x6ca   :  { %6866 = vmatprep.mubr.msk.bf16.mxu1 %vm7632_vm2, %v9861_v28  ;;  %6872 = vmatprep.mubr.msk.bf16.mxu0 %vm7632_vm2, %v9861_v28  ;;  %v2301_v63 = vpop.permute.xlu1 %2300 }
 0x6cb   :  { %6865 = vmatpush3.bf16.xpose.msra.mxu1 %v2058_v58  ;;  %6871 = vmatpush3.bf16.xpose.msra.mxu0 %v2108_v53 }
 0x6cc   :  { %6876 = vmatprep.subr.bf16.mxu1 %v9861_v28  ;;  %6882 = vmatprep.subr.bf16.mxu0 %v9861_v28 }
 0x6cd   :  { %v2251_v11 = vpop.permute.xlu0 %2250 }
 0x6ce   :  { %v2403_v30 = vpop.permute.xlu1 %2402 }
 0x6cf   :  { %v2408_v4 = vsel %vm998_vm3, %v2403_v30, 0 }
 0x6d1   :  { %v2353_v13 = vpop.permute.xlu0 %2352 }
 0x6d2   :  { %6867 = vmatmul.mubr.msk.bf16.vlgmr.msra.gmra.mrb[80].mxu1 %vm998_vm3, %v2051_v12  ;;  %6873 = vmatmul.mubr.msk.bf16.vlgmr.msra.gmra.mrb[80].mxu0 %vm998_vm3, %v2101_v16  ;;  %v2258_v12 = vsel %vm998_vm3, %v2253_v25, 0  ;;  %v2401_v16 = vpop.permute.xlu1 %2400  ;;  %v2358_v43 = vsel %vm998_vm3, %v2353_v13, 0 }
 0x6d3   :  { %6877 = vmatpush3.bf16.xpose.msra.mxu1 %v2158_v34  ;;  %6883 = vmatpush3.bf16.xpose.msra.mxu0 %v2208_v60 }
 0x6d4   :  { %6878 = vmatprep.mubr.msk.bf16.mxu1 %vm7632_vm2, %v9861_v28  ;;  %6884 = vmatprep.mubr.msk.bf16.mxu0 %vm7632_vm2, %v9861_v28 }
 0x6d5   :  { %6888 = vmatprep.subr.bf16.mxu1 %v9861_v28  ;;  %6894 = vmatprep.subr.bf16.mxu0 %v9861_v28  ;;  %v2351_v56 = vpop.permute.xlu0 %2350 }
 0x6da   :  { %6879 = vmatmul.mubr.msk.bf16.vlgmr.msra.gmra.mrb[84].mxu1 %vm998_vm3, %v2151_v29  ;;  %6885 = vmatmul.mubr.msk.bf16.vlgmr.msra.gmra.mrb[84].mxu0 %vm998_vm3, %v2201_v23  ;;  %v2503_v23 = vpop.permute.xlu1 %2502  ;;  %v2453_v29 = vpop.permute.xlu0 %2452 }
 0x6db   :  { %6889 = vmatpush3.bf16.xpose.msra.mxu1 %v2258_v12  ;;  %6895 = vmatpush3.bf16.xpose.msra.mxu0 %v2308_v3  ;;  %v2508_v2 = vsel %vm998_vm3, %v2503_v23, 0  ;;  %v2458_v53 = vsel %vm998_vm3, %v2453_v29, 0 }
 0x6dc   :  { %6890 = vmatprep.mubr.msk.bf16.mxu1 %vm7632_vm2, %v9861_v28  ;;  %6896 = vmatprep.mubr.msk.bf16.mxu0 %vm7632_vm2, %v9861_v28 }
 0x6dd   :  { %6900 = vmatprep.subr.bf16.mxu1 %v9861_v28  ;;  %6906 = vmatprep.subr.bf16.mxu0 %v9861_v28 }
 0x6de   :  { %v2501_v61 = vpop.permute.xlu1 %2500  ;;  %v2451_v47 = vpop.permute.xlu0 %2450 }
 0x6e2   :  { %6891 = vmatmul.mubr.msk.bf16.vlgmr.msra.gmra.mrb[88].mxu1 %vm998_vm3, %v2251_v11  ;;  %6897 = vmatmul.mubr.msk.bf16.vlgmr.msra.gmra.mrb[88].mxu0 %vm998_vm3, %v2301_v63  ;;  %v2719_v58 = vpop.permute.xlu1 %2718  ;;  %v2671_v41 = vpop.permute.xlu0 %2670 }
 0x6e3   :  { %6901 = vmatpush3.bf16.xpose.msra.mxu1 %v2358_v43  ;;  %6907 = vmatpush3.bf16.xpose.msra.mxu0 %v2408_v4  ;;  %v2724_v25 = vsel %vm1582_vm4, %v2719_v58, 0  ;;  %v2676_v63 = vsel %vm1582_vm4, %v2671_v41, 0 }
 0x6e4   :  { %6902 = vmatprep.mubr.msk.bf16.mxu1 %vm7632_vm2, %v9861_v28  ;;  %6908 = vmatprep.mubr.msk.bf16.mxu0 %vm7632_vm2, %v9861_v28 }
 0x6e5   :  { %6912 = vmatprep.subr.bf16.mxu1 %v9861_v28  ;;  %6918 = vmatprep.subr.bf16.mxu0 %v9861_v28 }
 0x6ea   :  { %6903 = vmatmul.mubr.msk.bf16.vlgmr.msra.gmra.mrb[92].mxu1 %vm998_vm3, %v2351_v56  ;;  %6909 = vmatmul.mubr.msk.bf16.vlgmr.msra.gmra.mrb[92].mxu0 %vm998_vm3, %v2401_v16 }
 0x6eb   :  { %6913 = vmatpush3.bf16.xpose.msra.mxu1 %v2458_v53  ;;  %6919 = vmatpush3.bf16.xpose.msra.mxu0 %v2508_v2 }
 0x6ec   :  { %6914 = vmatprep.mubr.msk.bf16.mxu1 %vm7632_vm2, %v9861_v28  ;;  %6920 = vmatprep.mubr.msk.bf16.mxu0 %vm7632_vm2, %v9861_v28 }
 0x6ed   :  { %6924 = vmatprep.subr.bf16.mxu1 %v9861_v28  ;;  %6930 = vmatprep.subr.bf16.mxu0 %v9861_v28 }
 0x6f2   :  { %6915 = vmatmul.mubr.msk.bf16.vlgmr.msra.gmra.mrb[96].mxu1 %vm998_vm3, %v2451_v47  ;;  %6921 = vmatmul.mubr.msk.bf16.vlgmr.msra.gmra.mrb[96].mxu0 %vm998_vm3, %v2501_v61 }
 0x6f3   :  { %6925 = vmatpush3.bf16.msra.mxu1 %v2676_v63  ;;  %6931 = vmatpush3.bf16.msra.mxu0 %v2724_v25 }
 0x6f4   :  { %6926 = vmatprep.mubr.msk.bf16.mxu1 %vm7632_vm2, %v9861_v28  ;;  %6932 = vmatprep.mubr.msk.bf16.mxu0 %vm7632_vm2, %v9861_v28 }
 0x6f5   :  { %6936 = vmatprep.subr.bf16.mxu1 %v9861_v28  ;;  %6942 = vmatprep.subr.bf16.mxu0 %v9861_v28 }
 0x76c   :  { %v1620_v11 = vpop.f32.mrb[60].mxu1 }
 0x76d   :  { %2040 = vst.msk [vmem:[#allocation2] sm:$0xff] %vm998_vm3, %v1620_v11  ;;  %v6808_v60 = vpop.f32.mrb[61].mxu1 }
 0x76e   :  { %v1623_v34 = vpop.f32.mrb[62].mxu1 }
 0x76f   :  { %v6809_v30 = vpop.f32.mrb[63].mxu1 }
 0x774   :  { %v1666_v13 = vpop.f32.mrb[60].mxu0 }
 0x775   :  { %2041 = vst.msk [vmem:[#allocation2 + $0x8] sm:$0xff] %vm998_vm3, %v1666_v13  ;;  %v6814_v3 = vpop.f32.mrb[61].mxu0 }
 0x776   :  { %v1669_v12 = vpop.f32.mrb[62].mxu0 }
 0x777   :  { %v6815_v16 = vpop.f32.mrb[63].mxu0 }
 0x77c   :  { %v1712_v56 = vpop.f32.mrb[64].mxu1 }
 0x77d   :  { %2042 = vst.msk [vmem:[#allocation2 + $0x10] sm:$0xff] %vm998_vm3, %v1712_v56  ;;  %v6820_v4 = vpop.f32.mrb[65].mxu1 }
 0x77e   :  { %v1715_v43 = vpop.f32.mrb[66].mxu1 }
 0x77f   :  { %v6821_v23 = vpop.f32.mrb[67].mxu1 }
 0x784   :  { %v1758_v29 = vpop.f32.mrb[64].mxu0 }
 0x785   :  { %2043 = vst.msk [vmem:[#allocation2 + $0x18] sm:$0xff] %vm998_vm3, %v1758_v29  ;;  %v6826_v61 = vpop.f32.mrb[65].mxu0 }
 0x786   :  { %v1761_v47 = vpop.f32.mrb[66].mxu0 }
 0x787   :  { %v6827_v2 = vpop.f32.mrb[67].mxu0 }
 0x78c   :  { %v1804_v53 = vpop.f32.mrb[68].mxu1  ;;  %v1850_v58 = vpop.f32.mrb[68].mxu0 }
 0x78d   :  { %2044 = vst.msk [vmem:[#allocation2 + $0x20] sm:$0xff] %vm998_vm3, %v1804_v53  ;;  %2045 = vst.msk [vmem:[#allocation2 + $0x28] sm:$0xff] %vm998_vm3, %v1850_v58  ;;  %v6832_v41 = vpop.f32.mrb[69].mxu1  ;;  %v6838_v25 = vpop.f32.mrb[69].mxu0 }
 0x78e   :  { %v1807_v63 = vpop.f32.mrb[70].mxu1  ;;  %v1853_v11 = vpop.f32.mrb[70].mxu0 }
 0x78f   :  { %v6833_v60 = vpop.f32.mrb[71].mxu1  ;;  %v6839_v34 = vpop.f32.mrb[71].mxu0 }
 0x794   :  { %v1896_v30 = vpop.f32.mrb[72].mxu1  ;;  %v1942_v13 = vpop.f32.mrb[72].mxu0 }
 0x795   :  { %2046 = vst.msk [vmem:[#allocation2 + $0x30] sm:$0xff] %vm998_vm3, %v1896_v30  ;;  %2047 = vst.msk [vmem:[#allocation2 + $0x38] sm:$0xff] %vm998_vm3, %v1942_v13  ;;  %v6844_v3 = vpop.f32.mrb[73].mxu1  ;;  %v6850_v12 = vpop.f32.mrb[73].mxu0 }
 0x796   :  { %v1899_v16 = vpop.f32.mrb[74].mxu1  ;;  %v1945_v56 = vpop.f32.mrb[74].mxu0 }
 0x797   :  { %v6845_v4 = vpop.f32.mrb[75].mxu1  ;;  %v6851_v43 = vpop.f32.mrb[75].mxu0 }
 0x79c   :  { %v1988_v23 = vpop.f32.mrb[76].mxu1  ;;  %v2034_v29 = vpop.f32.mrb[76].mxu0 }
 0x79d   :  { %2048 = vst.msk [vmem:[#allocation2 + $0x40] sm:$0xff] %vm998_vm3, %v1988_v23  ;;  %2049 = vst.msk [vmem:[#allocation2 + $0x48] sm:$0xff] %vm998_vm3, %v2034_v29  ;;  %v6856_v61 = vpop.f32.mrb[77].mxu1  ;;  %v6862_v47 = vpop.f32.mrb[77].mxu0 }
 0x79e   :  { %v1991_v2 = vpop.f32.mrb[78].mxu1  ;;  %v2037_v53 = vpop.f32.mrb[78].mxu0 }
 0x79f   :  { %v6857_v58 = vpop.f32.mrb[79].mxu1  ;;  %v6863_v41 = vpop.f32.mrb[79].mxu0 }
 0x7a5   :  { %v2094_v25 = vpop.f32.mrb[80].mxu1  ;;  %v2144_v63 = vpop.f32.mrb[80].mxu0 }
 0x7a6   :  { %v8628_v11 = vadd.f32 %v2094_v25, %v8321_v55  ;;  %v8631_v60 = vadd.f32 %v2144_v63, %v8321_v55  ;;  %v6868_v34 = vpop.f32.mrb[81].mxu1  ;;  %v6874_v30 = vpop.f32.mrb[81].mxu0 }
 0x7a7   :  { %v2097_v13 = vpop.f32.mrb[82].mxu1  ;;  %v2147_v3 = vpop.f32.mrb[82].mxu0 }
 0x7a8   :  { %v6869_v12 = vpop.f32.mrb[83].mxu1  ;;  %v6875_v16 = vpop.f32.mrb[83].mxu0  ;;  %v2550_v56 = vsel %vm998_vm3, %v8628_v11, -inf  ;;  %v2553_v4 = vsel %vm998_vm3, %v8631_v60, -inf }
 0x7a9   :  { %2551 = vmax.xlane.f32.xlu0 %v2550_v56  ;;  %2554 = vmax.xlane.f32.xlu1 %v2553_v4 }
 0x7ad   :  { %v2194_v43 = vpop.f32.mrb[84].mxu1  ;;  %v2244_v23 = vpop.f32.mrb[84].mxu0 }
 0x7ae   :  { %v8638_v29 = vadd.f32 %v2194_v43, %v8321_v55  ;;  %v6880_v61 = vpop.f32.mrb[85].mxu1  ;;  %v6886_v47 = vpop.f32.mrb[85].mxu0  ;;  %v8641_v58 = vadd.f32 %v2244_v23, %v8321_v55 }
 0x7af   :  { %v2197_v2 = vpop.f32.mrb[86].mxu1  ;;  %v2247_v53 = vpop.f32.mrb[86].mxu0 }
 0x7b0   :  { %v6881_v41 = vpop.f32.mrb[87].mxu1  ;;  %v6887_v25 = vpop.f32.mrb[87].mxu0  ;;  %v2556_v63 = vsel %vm998_vm3, %v8638_v29, -inf  ;;  %v2559_v34 = vsel %vm998_vm3, %v8641_v58, -inf }
 0x7b1   :  { %2557 = vmax.xlane.f32.xlu0 %v2556_v63 }
 0x7b5   :  { %v2294_v30 = vpop.f32.mrb[88].mxu1  ;;  %2560 = vmax.xlane.f32.xlu0 %v2559_v34  ;;  %v2344_v13 = vpop.f32.mrb[88].mxu0 }
 0x7b6   :  { %v8648_v3 = vadd.f32 %v2294_v30, %v8321_v55  ;;  %v8651_v12 = vadd.f32 %v2344_v13, %v8321_v55  ;;  %v6892_v16 = vpop.f32.mrb[89].mxu1  ;;  %v6898_v56 = vpop.f32.mrb[89].mxu0 }
 0x7b7   :  { %v2297_v4 = vpop.f32.mrb[90].mxu1  ;;  %v2347_v43 = vpop.f32.mrb[90].mxu0 }
 0x7b8   :  { %v6893_v23 = vpop.f32.mrb[91].mxu1  ;;  %v6899_v61 = vpop.f32.mrb[91].mxu0  ;;  %v2562_v47 = vsel %vm998_vm3, %v8648_v3, -inf  ;;  %v2565_v2 = vsel %vm998_vm3, %v8651_v12, -inf }
 0x7b9   :  { %2563 = vmax.xlane.f32.xlu0 %v2562_v47  ;;  %2566 = vmax.xlane.f32.xlu1 %v2565_v2 }
 0x7bd   :  { %v2394_v53 = vpop.f32.mrb[92].mxu1  ;;  %v2444_v41 = vpop.f32.mrb[92].mxu0 }
 0x7be   :  { %v8658_v25 = vadd.f32 %v2394_v53, %v8321_v55  ;;  %v8661_v63 = vadd.f32 %v2444_v41, %v8321_v55  ;;  %v6904_v34 = vpop.f32.mrb[93].mxu1  ;;  %v6910_v30 = vpop.f32.mrb[93].mxu0 }
 0x7bf   :  { %v2397_v13 = vpop.f32.mrb[94].mxu1  ;;  %v2447_v16 = vpop.f32.mrb[94].mxu0 }
 0x7c0   :  { %v6905_v56 = vpop.f32.mrb[95].mxu1  ;;  %v6911_v4 = vpop.f32.mrb[95].mxu0  ;;  %v2568_v43 = vsel %vm998_vm3, %v8658_v25, -inf  ;;  %v2571_v23 = vsel %vm998_vm3, %v8661_v63, -inf }
 0x7c1   :  { %2569 = vmax.xlane.f32.xlu0 %v2568_v43  ;;  %2572 = vmax.xlane.f32.xlu1 %v2571_v23  ;;  %v8681_v23 = vpop.permute.xlu1 %2814 }
 0x7c5   :  { %v2494_v61 = vpop.f32.mrb[96].mxu1  ;;  %v2544_v47 = vpop.f32.mrb[96].mxu0 }
 0x7c6   :  { %v8668_v2 = vadd.f32 %v2494_v61, %v8321_v55  ;;  %v8671_v53 = vadd.f32 %v2544_v47, %v8321_v55  ;;  %v6916_v41 = vpop.f32.mrb[97].mxu1  ;;  %v6922_v34 = vpop.f32.mrb[97].mxu0 }
 0x7c7   :  { %v2497_v30 = vpop.f32.mrb[98].mxu1  ;;  %v2547_v13 = vpop.f32.mrb[98].mxu0 }
 0x7c8   :  { %v6917_v16 = vpop.f32.mrb[99].mxu1  ;;  %v6923_v56 = vpop.f32.mrb[99].mxu0  ;;  %v2574_v4 = vsel %vm998_vm3, %v8668_v2, -inf  ;;  %v2577_v43 = vsel %vm998_vm3, %v8671_v53, -inf }
 0x7c9   :  { %2575 = vmax.xlane.f32.xlu0 %v2574_v4  ;;  %2578 = vmax.xlane.f32.xlu1 %v2577_v43  ;;  %v8683_v61 = vpop.permute.xlu1 %2862  ;;  %v8685_v47 = vpop.permute.xlu0 %2766 }
 0x7cd   :  { %v8687_v41 = vpop.permute.xlu1 %2910 }
 0x7da   :  { %3006 = vrot.lane.b32.xlu1 %v8518_v48, %s7633_s6 }
 0x7df   :  { %2958 = vrot.lane.b32.xlu0 %v8514_v24, %s7633_s6 }
 0x836   :  { %v2552_v34 = vpop.xlane.xlu0 %2551  ;;  %v2555_v30 = vpop.xlane.xlu1 %2554 }
 0x837   :  { %v2580_v13 = vsub.f32 %v8628_v11, %v2552_v34  ;;  %v2581_v16 = vsub.f32 %v8631_v60, %v2555_v30 }
 0x839   :  { %v2590_v56 = vmul.f32 1.442695, %v2580_v13  ;;  %v2592_v4 = vmul.f32 1.442695, %v2581_v16 }
 0x83b   :  { %7449 = vpow2.f32 %v2590_v56 }
 0x83c   :  { %7451 = vpow2.f32 %v2592_v4 }
 0x83e   :  { %v2558_v43 = vpop.xlane.xlu0 %2557 }
 0x83f   :  { %v2582_v0 = vsub.f32 %v8638_v29, %v2558_v43 }
 0x841   :  { %v2594_v59 = vmul.f32 1.442695, %v2582_v0 }
 0x842   :  { %v2561_v51 = vpop.xlane.xlu0 %2560 }
 0x843   :  { %7453 = vpow2.f32 %v2594_v59  ;;  %v2583_v45 = vsub.f32 %v8641_v58, %v2561_v51 }
 0x845   :  { %v8693_v33 = vpop.eup %7449  ;;  %v2596_v20 = vmul.f32 1.442695, %v2583_v45 }
 0x846   :  { %v8695_v21 = vpop.eup %7451  ;;  %v2564_v11 = vpop.xlane.xlu0 %2563  ;;  %v2610_v60 = vsel %vm998_vm3, %v8693_v33, 0.0 }
 0x847   :  { %v2567_v34 = vpop.xlane.xlu1 %2566  ;;  %7455 = vpow2.f32 %v2596_v20  ;;  %v2584_v30 = vsub.f32 %v8648_v3, %v2564_v11  ;;  %2611 = vadd.xlane.f32.xlu0 %v2610_v60  ;;  %v2613_v59 = vsel %vm998_vm3, %v8695_v21, 0.0 }
 0x848   :  { %v2585_v29 = vsub.f32 %v8651_v12, %v2567_v34  ;;  %2614 = vadd.xlane.f32.xlu1 %v2613_v59 }
 0x849   :  { %v2598_v51 = vmul.f32 1.442695, %v2584_v30 }
 0x84a   :  { %v2600_v0 = vmul.f32 1.442695, %v2585_v29 }
 0x84b   :  { %7457 = vpow2.f32 %v2598_v51 }
 0x84c   :  { %7459 = vpow2.f32 %v2600_v0 }
 0x84d   :  { %v8703_v45 = vpop.eup %7453 }
 0x84e   :  { %v2570_v58 = vpop.xlane.xlu0 %2569  ;;  %v2616_v13 = vsel %vm998_vm3, %v8703_v45, 0.0  ;;  %v2573_v60 = vpop.xlane.xlu1 %2572 }
 0x84f   :  { %v2586_v20 = vsub.f32 %v8658_v25, %v2570_v58  ;;  %2617 = vadd.xlane.f32.xlu0 %v2616_v13  ;;  %v2587_v30 = vsub.f32 %v8661_v63, %v2573_v60 }
 0x851   :  { %v8708_v3 = vpop.eup %7455  ;;  %v2602_v12 = vmul.f32 1.442695, %v2586_v20  ;;  %v2604_v59 = vmul.f32 1.442695, %v2587_v30 }
 0x852   :  { %v2619_v16 = vsel %vm998_vm3, %v8708_v3, 0.0 }
 0x853   :  { %7461 = vpow2.f32 %v2602_v12  ;;  %2620 = vadd.xlane.f32.xlu1 %v2619_v16 }
 0x854   :  { %7463 = vpow2.f32 %v2604_v59 }
 0x855   :  { %v8712_v56 = vpop.eup %7457 }
 0x856   :  { %v8714_v4 = vpop.eup %7459  ;;  %v2622_v43 = vsel %vm998_vm3, %v8712_v56, 0.0  ;;  %v2576_v29 = vpop.xlane.xlu0 %2575 }
 0x857   :  { %2623 = vadd.xlane.f32.xlu0 %v2622_v43  ;;  %v2625_v25 = vsel %vm998_vm3, %v8714_v4, 0.0  ;;  %v2588_v51 = vsub.f32 %v8668_v2, %v2576_v29  ;;  %v2579_v0 = vpop.xlane.xlu1 %2578 }
 0x858   :  { %2626 = vadd.xlane.f32.xlu1 %v2625_v25  ;;  %v2589_v58 = vsub.f32 %v8671_v53, %v2579_v0 }
 0x859   :  { %v2606_v13 = vmul.f32 1.442695, %v2588_v51 }
 0x85a   :  { %v2608_v20 = vmul.f32 1.442695, %v2589_v58  ;;  %v2959_v25 = vpop.permute.xlu0 %2958 }
 0x85b   :  { %7465 = vpow2.f32 %v2606_v13 }
 0x85c   :  { %7467 = vpow2.f32 %v2608_v20 }
 0x85d   :  { %v8720_v11 = vpop.eup %7461 }
 0x85e   :  { %v2628_v34 = vsel %vm998_vm3, %v8720_v11, 0.0  ;;  %v8731_v12 = vpop.eup %7463 }
 0x85f   :  { %2629 = vadd.xlane.f32.xlu0 %v2628_v34  ;;  %v2631_v16 = vsel %vm998_vm3, %v8731_v12, 0.0  ;;  %v8787_v34 = vpop.permute.xlu1 %3006 }
 0x865   :  { %v8735_v43 = vpop.eup %7465 }
 0x866   :  { %v8737_v63 = vpop.eup %7467  ;;  %v2634_v2 = vsel %vm998_vm3, %v8735_v43, 0.0 }
 0x867   :  { %v2637_v53 = vsel %vm998_vm3, %v8737_v63, 0.0 }
 0x869   :  { %3102 = vrot.lane.b32.xlu1 %v8540_v50, %s7633_s6 }
 0x875   :  { %3054 = vrot.lane.b32.xlu0 %v8536_v27, %s7633_s6 }
 0x88d   :  { %2632 = vadd.xlane.f32.xlu1 %v2631_v16 }
 0x891   :  { %2635 = vadd.xlane.f32.xlu1 %v2634_v2  ;;  %v2772_v2 = vsel %vm1582_vm4, %v8685_v47, 0 }
 0x894   :  { %2638 = vadd.xlane.f32.xlu0 %v2637_v53 }
 0x8a2   :  { %3253 = vrot.lane.b32.xlu1 %v8144_v62, %s7634_s22 }
 0x8a6   :  { %3251 = vrot.lane.b32.xlu1 %v8167_v44, %s7634_s22 }
 0x8aa   :  { %3353 = vrot.lane.b32.xlu1 %v8191_v49, %s7634_s22  ;;  %3203 = vrot.lane.b32.xlu0 %v8132_v46, %s7634_s22 }
 0x8ae   :  { %3351 = vrot.lane.b32.xlu1 %v8228_v10, %s7634_s22  ;;  %3201 = vrot.lane.b32.xlu0 %v8148_v22, %s7634_s22 }
 0x8b2   :  { %3453 = vrot.lane.b32.xlu1 %v8174_v31, %s7634_s22  ;;  %3303 = vrot.lane.b32.xlu0 %v8162_v15, %s7634_s22 }
 0x8b6   :  { %3451 = vrot.lane.b32.xlu1 %v8200_v26, %s7634_s22  ;;  %3301 = vrot.lane.b32.xlu0 %v8194_v54, %s7634_s22 }
 0x8ba   :  { %3553 = vrot.lane.b32.xlu1 %v8203_v7, %s7634_s22  ;;  %3403 = vrot.lane.b32.xlu0 %v8225_v19, %s7634_s22 }
 0x8be   :  { %3551 = vrot.lane.b32.xlu1 %v8234_v36, %s7634_s22  ;;  %3401 = vrot.lane.b32.xlu0 %v8264_v1, %s7634_s22 }
 0x8c2   :  { %3653 = vrot.lane.b32.xlu1 %v8237_v42, %s7634_s22  ;;  %3503 = vrot.lane.b32.xlu0 %v8261_v35, %s7634_s22 }
 0x8c6   :  { %3651 = vrot.lane.b32.xlu1 %v8271_v9, %s7634_s22  ;;  %3501 = vrot.lane.b32.xlu0 %v8295_v6, %s7634_s22 }
 0x8ca   :  { %3869 = vrot.lane.b32.xlu1 %v8266_v5, %s7634_s22  ;;  %3603 = vrot.lane.b32.xlu0 %v8292_v17, %s7634_s22 }
 0x8ce   :  { %3965 = vrot.lane.b32.xlu1 %v8457_v40, %s7634_s22  ;;  %3601 = vrot.lane.b32.xlu0 %v8310_v38, %s7634_s22 }
 0x8d2   :  { %4013 = vrot.lane.b32.xlu1 %v8465_v52, %s7634_s22  ;;  %3821 = vrot.lane.b32.xlu0 %v8308_v39, %s7634_s22 }
 0x8d4   :  { %v2612_v60 = vpop.xlane.xlu0 %2611 }
 0x8d5   :  { %7469 = vrcp.f32 %v2612_v60  ;;  %v2615_v30 = vpop.xlane.xlu1 %2614  ;;  %v2820_v60 = vsel %vm1582_vm4, %v8681_v23, 0 }
 0x8d6   :  { %7471 = vrcp.f32 %v2615_v30  ;;  %4061 = vrot.lane.b32.xlu1 %v8477_v32, %s7634_s22  ;;  %3917 = vrot.lane.b32.xlu0 %v8473_v37, %s7634_s22 }
 0x8dc   :  { %v2618_v29 = vpop.xlane.xlu0 %2617 }
 0x8dd   :  { %7473 = vrcp.f32 %v2618_v29  ;;  %v2868_v29 = vsel %vm1582_vm4, %v8683_v61, 0 }
 0x8df   :  { %v7470_v59 = vpop.eup %7469 }
 0x8e0   :  { %v7472_v51 = vpop.eup %7471  ;;  %v2621_v0 = vpop.xlane.xlu1 %2620  ;;  %v2641_v58 = vmul.f32 %v7470_v59, %v8693_v33 }
 0x8e1   :  { %7475 = vrcp.f32 %v2621_v0  ;;  %v2643_v13 = vmul.f32 %v7472_v51, %v8695_v21 }
 0x8e2   :  { %v2660_v20 = vpack.c.bf16 %v2641_v58, %v2641_v58 }
 0x8e3   :  { %v2661_v16 = vpack.c.bf16 %v2643_v13, %v2643_v13  ;;  %v2916_v13 = vsel %vm1582_vm4, %v8687_v41, 0 }
 0x8e4   :  { %6927 = vmatmul.mubr.msk.bf16.vlgmr.msra.gmra.mrb[100].mxu1 %vm998_vm3, %v2660_v20  ;;  %v2624_v53 = vpop.xlane.xlu0 %2623 }
 0x8e5   :  { %6937 = vmatpush3.bf16.msra.mxu1 %v2772_v2  ;;  %7477 = vrcp.f32 %v2624_v53  ;;  %6933 = vmatmul.mubr.msk.bf16.vlgmr.msra.gmra.mrb[100].mxu0 %vm998_vm3, %v2661_v16  ;;  %v2627_v30 = vpop.xlane.xlu1 %2626  ;;  %v2964_v16 = vsel %vm1582_vm4, %v2959_v25, 0  ;;  %v3012_v2 = vsel %vm1582_vm4, %v8787_v34, 0 }
 0x8e6   :  { %6943 = vmatpush3.bf16.msra.mxu0 %v2820_v60  ;;  %7479 = vrcp.f32 %v2627_v30  ;;  %6938 = vmatprep.mubr.msk.bf16.mxu1 %vm7632_vm2, %v9861_v28 }
 0x8e7   :  { %v7474_v33 = vpop.eup %7473  ;;  %6948 = vmatprep.subr.bf16.mxu1 %v9861_v28  ;;  %6944 = vmatprep.mubr.msk.bf16.mxu0 %vm7632_vm2, %v9861_v28 }
 0x8e8   :  { %v2645_v21 = vmul.f32 %v7474_v33, %v8703_v45  ;;  %6954 = vmatprep.subr.bf16.mxu0 %v9861_v28 }
 0x8e9   :  { %v3103_v34 = vpop.permute.xlu1 %3102 }
 0x8ea   :  { %v2662_v23 = vpack.c.bf16 %v2645_v21, %v2645_v21 }
 0x8eb   :  { %v7476_v47 = vpop.eup %7475 }
 0x8ec   :  { %6939 = vmatmul.mubr.msk.bf16.vlgmr.msra.gmra.mrb[104].mxu1 %vm998_vm3, %v2662_v23  ;;  %v2630_v59 = vpop.xlane.xlu0 %2629  ;;  %v2647_v51 = vmul.f32 %v7476_v47, %v8708_v3 }
 0x8ed   :  { %6949 = vmatpush3.bf16.msra.mxu1 %v2868_v29  ;;  %7481 = vrcp.f32 %v2630_v59  ;;  %6950 = vmatprep.mubr.msk.bf16.mxu1 %vm7632_vm2, %v9861_v28 }
 0x8ee   :  { %v2663_v0 = vpack.c.bf16 %v2647_v51, %v2647_v51  ;;  %6960 = vmatprep.subr.bf16.mxu1 %v9861_v28 }
 0x8ef   :  { %v7478_v45 = vpop.eup %7477 }
 0x8f0   :  { %v7480_v58 = vpop.eup %7479  ;;  %6945 = vmatmul.mubr.msk.bf16.vlgmr.msra.gmra.mrb[104].mxu0 %vm998_vm3, %v2663_v0  ;;  %v2649_v61 = vmul.f32 %v7478_v45, %v8712_v56 }
 0x8f1   :  { %6955 = vmatpush3.bf16.msra.mxu0 %v2916_v13  ;;  %6956 = vmatprep.mubr.msk.bf16.mxu0 %vm7632_vm2, %v9861_v28  ;;  %v2651_v20 = vmul.f32 %v7480_v58, %v8714_v4  ;;  %v3055_v4 = vpop.permute.xlu0 %3054  ;;  %v3108_v58 = vsel %vm1582_vm4, %v3103_v34, 0 }
 0x8f2   :  { %v2664_v3 = vpack.c.bf16 %v2649_v61, %v2649_v61  ;;  %6966 = vmatprep.subr.bf16.mxu0 %v9861_v28  ;;  %v3060_v60 = vsel %vm1582_vm4, %v3055_v4, 0 }
 0x8f3   :  { %v2665_v41 = vpack.c.bf16 %v2651_v20, %v2651_v20 }
 0x8f4   :  { %6951 = vmatmul.mubr.msk.bf16.vlgmr.msra.gmra.mrb[108].mxu1 %vm998_vm3, %v2664_v3 }
 0x8f5   :  { %6961 = vmatpush3.bf16.msra.mxu1 %v2964_v16  ;;  %6962 = vmatprep.mubr.msk.bf16.mxu1 %vm7632_vm2, %v9861_v28 }
 0x8f6   :  { %6972 = vmatprep.subr.bf16.mxu1 %v9861_v28 }
 0x8f7   :  { %v7482_v56 = vpop.eup %7481 }
 0x8f8   :  { %6957 = vmatmul.mubr.msk.bf16.vlgmr.msra.gmra.mrb[108].mxu0 %vm998_vm3, %v2665_v41  ;;  %v2653_v53 = vmul.f32 %v7482_v56, %v8720_v11 }
 0x8f9   :  { %6967 = vmatpush3.bf16.msra.mxu0 %v3012_v2  ;;  %6968 = vmatprep.mubr.msk.bf16.mxu0 %vm7632_vm2, %v9861_v28 }
 0x8fa   :  { %v2666_v25 = vpack.c.bf16 %v2653_v53, %v2653_v53  ;;  %6978 = vmatprep.subr.bf16.mxu0 %v9861_v28 }
 0x8fc   :  { %6963 = vmatmul.mubr.msk.bf16.vlgmr.msra.gmra.mrb[112].mxu1 %vm998_vm3, %v2666_v25 }
 0x8fd   :  { %6973 = vmatpush3.bf16.msra.mxu1 %v3060_v60  ;;  %6974 = vmatprep.mubr.msk.bf16.mxu1 %vm7632_vm2, %v9861_v28 }
 0x8fe   :  { %6984 = vmatprep.subr.bf16.mxu1 %v9861_v28 }
 0x91a   :  { %v2633_v11 = vpop.xlane.xlu1 %2632 }
 0x91b   :  { %7483 = vrcp.f32 %v2633_v11 }
 0x91e   :  { %v2636_v30 = vpop.xlane.xlu1 %2635 }
 0x91f   :  { %7485 = vrcp.f32 %v2636_v30 }
 0x921   :  { %v2639_v33 = vpop.xlane.xlu0 %2638 }
 0x922   :  { %7487 = vrcp.f32 %v2639_v33  ;;  %v3254_v21 = vpop.permute.xlu1 %3253 }
 0x923   :  { %v3259_v53 = vsel %vm998_vm3, %v3254_v21, 0 }
 0x925   :  { %v7484_v23 = vpop.eup %7483  ;;  %v3204_v47 = vpop.permute.xlu0 %3203 }
 0x926   :  { %v3252_v29 = vpop.permute.xlu1 %3251  ;;  %v2655_v59 = vmul.f32 %v7484_v23, %v8731_v12  ;;  %v3209_v41 = vsel %vm998_vm3, %v3204_v47, 0 }
 0x928   :  { %v2667_v51 = vpack.c.bf16 %v2655_v59, %v2655_v59 }
 0x929   :  { %v7486_v0 = vpop.eup %7485  ;;  %v3202_v45 = vpop.permute.xlu0 %3201 }
 0x92a   :  { %6969 = vmatmul.mubr.msk.bf16.vlgmr.msra.gmra.mrb[112].mxu0 %vm998_vm3, %v2667_v51  ;;  %v3354_v13 = vpop.permute.xlu1 %3353  ;;  %v2657_v61 = vmul.f32 %v7486_v0, %v8735_v43 }
 0x92b   :  { %6979 = vmatpush3.bf16.msra.mxu0 %v3108_v58  ;;  %6980 = vmatprep.mubr.msk.bf16.mxu0 %vm7632_vm2, %v9861_v28  ;;  %v3359_v11 = vsel %vm998_vm3, %v3354_v13, 0 }
 0x92c   :  { %v7488_v3 = vpop.eup %7487  ;;  %v2668_v20 = vpack.c.bf16 %v2657_v61, %v2657_v61  ;;  %6990 = vmatprep.subr.bf16.mxu0 %v9861_v28 }
 0x92d   :  { %v3304_v16 = vpop.permute.xlu0 %3303  ;;  %v2659_v12 = vmul.f32 %v7488_v3, %v8737_v63 }
 0x92e   :  { %6975 = vmatmul.mubr.msk.bf16.vlgmr.msra.gmra.mrb[116].mxu1 %vm998_vm3, %v2668_v20  ;;  %v3352_v56 = vpop.permute.xlu1 %3351  ;;  %v3309_v25 = vsel %vm998_vm3, %v3304_v16, 0 }
 0x92f   :  { %6985 = vmatpush3.bf16.xpose.msra.mxu1 %v3209_v41  ;;  %v2669_v2 = vpack.c.bf16 %v2659_v12, %v2659_v12  ;;  %6986 = vmatprep.mubr.msk.bf16.mxu1 %vm7632_vm2, %v9861_v28 }
 0x930   :  { %6996 = vmatprep.subr.bf16.mxu1 %v9861_v28 }
 0x931   :  { %v3302_v43 = vpop.permute.xlu0 %3301 }
 0x932   :  { %6981 = vmatmul.mubr.msk.bf16.vlgmr.msra.gmra.mrb[116].mxu0 %vm998_vm3, %v2669_v2  ;;  %v3454_v63 = vpop.permute.xlu1 %3453 }
 0x933   :  { %6992 = vmatprep.mubr.msk.bf16.mxu0 %vm7632_vm2, %v9861_v28  ;;  %v3459_v47 = vsel %vm998_vm3, %v3454_v63, 0 }
 0x934   :  { %6991 = vmatpush3.bf16.xpose.msra.mxu0 %v3259_v53 }
 0x935   :  { %v3404_v4 = vpop.permute.xlu0 %3403  ;;  %7002 = vmatprep.subr.bf16.mxu0 %v9861_v28 }
 0x936   :  { %6987 = vmatmul.mubr.msk.bf16.vlgmr.msra.gmra.mrb[120].mxu1 %vm998_vm3, %v3202_v45  ;;  %v3452_v34 = vpop.permute.xlu1 %3451  ;;  %v3409_v33 = vsel %vm998_vm3, %v3404_v4, 0 }
 0x937   :  { %6997 = vmatpush3.bf16.xpose.msra.mxu1 %v3309_v25  ;;  %6998 = vmatprep.mubr.msk.bf16.mxu1 %vm7632_vm2, %v9861_v28 }
 0x938   :  { %7008 = vmatprep.subr.bf16.mxu1 %v9861_v28 }
 0x939   :  { %v3402_v60 = vpop.permute.xlu0 %3401 }
 0x93a   :  { %v3554_v21 = vpop.permute.xlu1 %3553 }
 0x93b   :  { %6993 = vmatmul.mubr.msk.bf16.vlgmr.msra.gmra.mrb[120].mxu0 %vm998_vm3, %v3252_v29  ;;  %v3559_v0 = vsel %vm998_vm3, %v3554_v21, 0 }
 0x93c   :  { %7003 = vmatpush3.bf16.xpose.msra.mxu0 %v3359_v11  ;;  %7004 = vmatprep.mubr.msk.bf16.mxu0 %vm7632_vm2, %v9861_v28 }
 0x93d   :  { %v3504_v30 = vpop.permute.xlu0 %3503  ;;  %7014 = vmatprep.subr.bf16.mxu0 %v9861_v28 }
 0x93e   :  { %6999 = vmatmul.mubr.msk.bf16.vlgmr.msra.gmra.mrb[124].mxu1 %vm998_vm3, %v3302_v43  ;;  %v3509_v29 = vsel %vm998_vm3, %v3504_v30, 0  ;;  %v3552_v59 = vpop.permute.xlu1 %3551 }
 0x93f   :  { %7009 = vmatpush3.bf16.xpose.msra.mxu1 %v3409_v33  ;;  %7010 = vmatprep.mubr.msk.bf16.mxu1 %vm7632_vm2, %v9861_v28 }
 0x940   :  { %7020 = vmatprep.subr.bf16.mxu1 %v9861_v28 }
 0x941   :  { %v3502_v23 = vpop.permute.xlu0 %3501 }
 0x942   :  { %v3654_v45 = vpop.permute.xlu1 %3653 }
 0x943   :  { %7005 = vmatmul.mubr.msk.bf16.vlgmr.msra.gmra.mrb[124].mxu0 %vm998_vm3, %v3352_v56  ;;  %v3659_v3 = vsel %vm998_vm3, %v3654_v45, 0 }
 0x944   :  { %7015 = vmatpush3.bf16.xpose.msra.mxu0 %v3459_v47  ;;  %7016 = vmatprep.mubr.msk.bf16.mxu0 %vm7632_vm2, %v9861_v28 }
 0x945   :  { %7026 = vmatprep.subr.bf16.mxu0 %v9861_v28  ;;  %v3604_v51 = vpop.permute.xlu0 %3603 }
 0x946   :  { %7011 = vmatmul.mubr.msk.bf16.vlgmr.msra.gmra.mrb[128].mxu1 %vm998_vm3, %v3402_v60  ;;  %v3609_v13 = vsel %vm998_vm3, %v3604_v51, 0  ;;  %v3652_v61 = vpop.permute.xlu1 %3651 }
 0x947   :  { %7021 = vmatpush3.bf16.xpose.msra.mxu1 %v3509_v29  ;;  %7022 = vmatprep.mubr.msk.bf16.mxu1 %vm7632_vm2, %v9861_v28 }
 0x948   :  { %7032 = vmatprep.subr.bf16.mxu1 %v9861_v28 }
 0x949   :  { %v3602_v58 = vpop.permute.xlu0 %3601 }
 0x94a   :  { %v3870_v12 = vpop.permute.xlu1 %3869 }
 0x94b   :  { %7017 = vmatmul.mubr.msk.bf16.vlgmr.msra.gmra.mrb[128].mxu0 %vm998_vm3, %v3452_v34  ;;  %v3875_v41 = vsel %vm1582_vm4, %v3870_v12, 0 }
 0x94c   :  { %7027 = vmatpush3.bf16.xpose.msra.mxu0 %v3559_v0  ;;  %7028 = vmatprep.mubr.msk.bf16.mxu0 %vm7632_vm2, %v9861_v28 }
 0x94d   :  { %7038 = vmatprep.subr.bf16.mxu0 %v9861_v28  ;;  %v3822_v20 = vpop.permute.xlu0 %3821 }
 0x94e   :  { %7023 = vmatmul.mubr.msk.bf16.vlgmr.msra.gmra.mrb[132].mxu1 %vm998_vm3, %v3502_v23  ;;  %v3827_v16 = vsel %vm1582_vm4, %v3822_v20, 0 }
 0x94f   :  { %7033 = vmatpush3.bf16.xpose.msra.mxu1 %v3609_v13  ;;  %7034 = vmatprep.mubr.msk.bf16.mxu1 %vm7632_vm2, %v9861_v28 }
 0x950   :  { %7044 = vmatprep.subr.bf16.mxu1 %v9861_v28 }
 0x953   :  { %7029 = vmatmul.mubr.msk.bf16.vlgmr.msra.gmra.mrb[132].mxu0 %vm998_vm3, %v3552_v59 }
 0x954   :  { %7039 = vmatpush3.bf16.xpose.msra.mxu0 %v3659_v3  ;;  %7040 = vmatprep.mubr.msk.bf16.mxu0 %vm7632_vm2, %v9861_v28 }
 0x955   :  { %7050 = vmatprep.subr.bf16.mxu0 %v9861_v28 }
 0x956   :  { %7035 = vmatmul.mubr.msk.bf16.vlgmr.msra.gmra.mrb[136].mxu1 %vm998_vm3, %v3602_v58 }
 0x957   :  { %7045 = vmatpush3.bf16.msra.mxu1 %v3827_v16  ;;  %7046 = vmatprep.mubr.msk.bf16.mxu1 %vm7632_vm2, %v9861_v28 }
 0x958   :  { %7056 = vmatprep.subr.bf16.mxu1 %v9861_v28 }
 0x95b   :  { %7041 = vmatmul.mubr.msk.bf16.vlgmr.msra.gmra.mrb[136].mxu0 %vm998_vm3, %v3652_v61 }
 0x95c   :  { %7051 = vmatpush3.bf16.msra.mxu0 %v3875_v41  ;;  %7052 = vmatprep.mubr.msk.bf16.mxu0 %vm7632_vm2, %v9861_v28 }
 0x95d   :  { %7062 = vmatprep.subr.bf16.mxu0 %v9861_v28 }
 0x9b7   :  { %v8912_v56 = vpop.f32.mrb[100].mxu1 }
 0x9b8   :  { %v8914_v2 = vpop.f32.mrb[100].mxu0  ;;  %v6928_v43 = vpop.f32.mrb[101].mxu1 }
 0x9b9   :  { %v6934_v53 = vpop.f32.mrb[101].mxu0  ;;  %v2715_v63 = vpop.f32.mrb[102].mxu1 }
 0x9ba   :  { %v2763_v4 = vpop.f32.mrb[102].mxu0  ;;  %v6929_v25 = vpop.f32.mrb[103].mxu1 }
 0x9bb   :  { %v6935_v60 = vpop.f32.mrb[103].mxu0 }
 0x9bf   :  { %v8916_v34 = vpop.f32.mrb[104].mxu1 }
 0x9c0   :  { %v6940_v11 = vpop.f32.mrb[105].mxu1 }
 0x9c1   :  { %v2811_v30 = vpop.f32.mrb[106].mxu1 }
 0x9c2   :  { %v6941_v33 = vpop.f32.mrb[107].mxu1 }
 0x9c3   :  { %v8918_v21 = vpop.f32.mrb[104].mxu0 }
 0x9c4   :  { %v6946_v23 = vpop.f32.mrb[105].mxu0 }
 0x9c5   :  { %v2859_v47 = vpop.f32.mrb[106].mxu0 }
 0x9c6   :  { %v6947_v29 = vpop.f32.mrb[107].mxu0 }
 0x9c7   :  { %v8920_v59 = vpop.f32.mrb[108].mxu1 }
 0x9c8   :  { %9862 = vst [vmem:[#allocation14_spill] sm:$0xff] %v8920_v59  ;;  %v6952_v51 = vpop.f32.mrb[109].mxu1 }
 0x9c9   :  { %v2907_v0 = vpop.f32.mrb[110].mxu1 }
 0x9ca   :  { %v6953_v45 = vpop.f32.mrb[111].mxu1 }
 0x9cb   :  { %v8922_v58 = vpop.f32.mrb[108].mxu0 }
 0x9cc   :  { %v6958_v13 = vpop.f32.mrb[109].mxu0 }
 0x9cd   :  { %v2955_v61 = vpop.f32.mrb[110].mxu0 }
 0x9ce   :  { %v6959_v3 = vpop.f32.mrb[111].mxu0 }
 0x9cf   :  { %v8924_v20 = vpop.f32.mrb[112].mxu1 }
 0x9d0   :  { %9863 = vst [vmem:[#allocation15_spill] sm:$0xff] %v8924_v20  ;;  %v6964_v16 = vpop.f32.mrb[113].mxu1 }
 0x9d1   :  { %v3003_v12 = vpop.f32.mrb[114].mxu1 }
 0x9d2   :  { %v6965_v41 = vpop.f32.mrb[115].mxu1 }
 0x9fd   :  { %v8926_v43 = vpop.f32.mrb[112].mxu0 }
 0x9fe   :  { %9864 = vst [vmem:[#allocation16_spill] sm:$0xff] %v8926_v43  ;;  %v6970_v53 = vpop.f32.mrb[113].mxu0 }
 0x9ff   :  { %v3051_v63 = vpop.f32.mrb[114].mxu0 }
 0xa00   :  { %v6971_v4 = vpop.f32.mrb[115].mxu0 }
 0xa01   :  { %v8928_v25 = vpop.f32.mrb[116].mxu1 }
 0xa02   :  { %9865 = vst [vmem:[#allocation17_spill] sm:$0xff] %v8928_v25  ;;  %v6976_v60 = vpop.f32.mrb[117].mxu1 }
 0xa03   :  { %v3099_v11 = vpop.f32.mrb[118].mxu1 }
 0xa04   :  { %v6977_v30 = vpop.f32.mrb[119].mxu1 }
 0xa05   :  { %v8930_v33 = vpop.f32.mrb[116].mxu0 }
 0xa06   :  { %9866 = vst [vmem:[#allocation18_spill] sm:$0xff] %v8930_v33  ;;  %v6982_v23 = vpop.f32.mrb[117].mxu0 }
 0xa07   :  { %v3147_v47 = vpop.f32.mrb[118].mxu0 }
 0xa08   :  { %v6983_v29 = vpop.f32.mrb[119].mxu0 }
 0xa09   :  { %v3245_v51 = vpop.f32.mrb[120].mxu1 }
 0xa0a   :  { %v8933_v0 = vadd.f32 %v3245_v51, %v8321_v55  ;;  %v6988_v45 = vpop.f32.mrb[121].mxu1 }
 0xa0b   :  { %v3248_v13 = vpop.f32.mrb[122].mxu1 }
 0xa0c   :  { %v6989_v61 = vpop.f32.mrb[123].mxu1  ;;  %v3701_v3 = vsel %vm998_vm3, %v8933_v0, -inf }
 0xa0d   :  { %3702 = vmax.xlane.f32.xlu0 %v3701_v3 }
 0xa0e   :  { %v3295_v16 = vpop.f32.mrb[120].mxu0 }
 0xa0f   :  { %v8938_v12 = vadd.f32 %v3295_v16, %v8321_v55  ;;  %v6994_v41 = vpop.f32.mrb[121].mxu0 }
 0xa10   :  { %v3298_v53 = vpop.f32.mrb[122].mxu0 }
 0xa11   :  { %v6995_v63 = vpop.f32.mrb[123].mxu0  ;;  %v3345_v4 = vpop.f32.mrb[124].mxu1  ;;  %v3704_v60 = vsel %vm998_vm3, %v8938_v12, -inf }
 0xa12   :  { %v8943_v11 = vadd.f32 %v3345_v4, %v8321_v55  ;;  %3705 = vmax.xlane.f32.xlu1 %v3704_v60  ;;  %v7000_v30 = vpop.f32.mrb[125].mxu1 }
 0xa13   :  { %v3348_v23 = vpop.f32.mrb[126].mxu1 }
 0xa14   :  { %v7001_v47 = vpop.f32.mrb[127].mxu1  ;;  %v3707_v29 = vsel %vm998_vm3, %v8943_v11, -inf }
 0xa15   :  { %3708 = vmax.xlane.f32.xlu0 %v3707_v29 }
 0xa16   :  { %v3395_v51 = vpop.f32.mrb[124].mxu0 }
 0xa17   :  { %v8948_v45 = vadd.f32 %v3395_v51, %v8321_v55  ;;  %v7006_v13 = vpop.f32.mrb[125].mxu0 }
 0xa18   :  { %v3398_v61 = vpop.f32.mrb[126].mxu0 }
 0xa19   :  { %v7007_v3 = vpop.f32.mrb[127].mxu0  ;;  %v3445_v16 = vpop.f32.mrb[128].mxu1  ;;  %v3710_v41 = vsel %vm998_vm3, %v8948_v45, -inf }
 0xa1a   :  { %v8953_v53 = vadd.f32 %v3445_v16, %v8321_v55  ;;  %3711 = vmax.xlane.f32.xlu0 %v3710_v41  ;;  %v7012_v63 = vpop.f32.mrb[129].mxu1 }
 0xa1b   :  { %v3448_v4 = vpop.f32.mrb[130].mxu1 }
 0xa1c   :  { %v7013_v60 = vpop.f32.mrb[131].mxu1  ;;  %v3713_v30 = vsel %vm998_vm3, %v8953_v53, -inf }
 0xa1e   :  { %3714 = vmax.xlane.f32.xlu0 %v3713_v30  ;;  %v3495_v23 = vpop.f32.mrb[128].mxu0 }
 0xa1f   :  { %v8958_v47 = vadd.f32 %v3495_v23, %v8321_v55  ;;  %v7018_v29 = vpop.f32.mrb[129].mxu0 }
 0xa20   :  { %v3498_v51 = vpop.f32.mrb[130].mxu0 }
 0xa21   :  { %v7019_v13 = vpop.f32.mrb[131].mxu0  ;;  %v3545_v61 = vpop.f32.mrb[132].mxu1  ;;  %v3716_v3 = vsel %vm998_vm3, %v8958_v47, -inf }
 0xa22   :  { %v8963_v16 = vadd.f32 %v3545_v61, %v8321_v55  ;;  %3717 = vmax.xlane.f32.xlu1 %v3716_v3  ;;  %v7024_v41 = vpop.f32.mrb[133].mxu1 }
 0xa23   :  { %v3548_v63 = vpop.f32.mrb[134].mxu1 }
 0xa24   :  { %v7025_v4 = vpop.f32.mrb[135].mxu1  ;;  %v3719_v60 = vsel %vm998_vm3, %v8963_v16, -inf }
 0xa25   :  { %3720 = vmax.xlane.f32.xlu0 %v3719_v60 }
 0xa26   :  { %v3595_v30 = vpop.f32.mrb[132].mxu0 }
 0xa27   :  { %v8968_v23 = vadd.f32 %v3595_v30, %v8321_v55  ;;  %v7030_v29 = vpop.f32.mrb[133].mxu0 }
 0xa28   :  { %v3598_v51 = vpop.f32.mrb[134].mxu0 }
 0xa29   :  { %v7031_v13 = vpop.f32.mrb[135].mxu0  ;;  %v3645_v18 = vpop.f32.mrb[136].mxu1  ;;  %v3722_v61 = vsel %vm998_vm3, %v8968_v23, -inf }
 0xa2a   :  { %v8973_v3 = vadd.f32 %v3645_v18, %v8321_v55  ;;  %3723 = vmax.xlane.f32.xlu1 %v3722_v61  ;;  %v7036_v41 = vpop.f32.mrb[137].mxu1  ;;  %v8986_v18 = vpop.permute.xlu1 %3965 }
 0xa2b   :  { %v3648_v63 = vpop.f32.mrb[138].mxu1  ;;  %v8990_v41 = vpop.permute.xlu0 %3917 }
 0xa2c   :  { %v7037_v4 = vpop.f32.mrb[139].mxu1  ;;  %v3725_v60 = vsel %vm998_vm3, %v8973_v3, -inf }
 0xa2d   :  { %3726 = vmax.xlane.f32.xlu0 %v3725_v60 }
 0xa2e   :  { %v3695_v30 = vpop.f32.mrb[136].mxu0  ;;  %v8988_v61 = vpop.permute.xlu1 %4013 }
 0xa2f   :  { %v8978_v29 = vadd.f32 %v3695_v30, %v8321_v55  ;;  %v7042_v51 = vpop.f32.mrb[137].mxu0 }
 0xa30   :  { %v3698_v13 = vpop.f32.mrb[138].mxu0 }
 0xa31   :  { %v7043_v14 = vpop.f32.mrb[139].mxu0  ;;  %v3728_v8 = vsel %vm998_vm3, %v8978_v29, -inf }
 0xa32   :  { %3729 = vmax.xlane.f32.xlu1 %v3728_v8  ;;  %v8992_v4 = vpop.permute.xlu1 %4061 }
 0xa43   :  { %4157 = vrot.lane.b32.xlu1 %v8518_v48, %s7634_s22  ;;  %4109 = vrot.lane.b32.xlu0 %v8514_v24, %s7634_s22 }
 0xa9a   :  { %v3703_v63 = vpop.xlane.xlu0 %3702 }
 0xa9b   :  { %v3731_v14 = vsub.f32 %v8933_v0, %v3703_v63 }
 0xa9d   :  { %v3741_v60 = vmul.f32 1.442695, %v3731_v14 }
 0xa9f   :  { %7489 = vpow2.f32 %v3741_v60  ;;  %v3706_v8 = vpop.xlane.xlu1 %3705 }
 0xaa0   :  { %v3732_v30 = vsub.f32 %v8938_v12, %v3706_v8 }
 0xaa2   :  { %v3743_v51 = vmul.f32 1.442695, %v3732_v30  ;;  %v3709_v13 = vpop.xlane.xlu0 %3708 }
 0xaa3   :  { %v3733_v57 = vsub.f32 %v8943_v11, %v3709_v13 }
 0xaa4   :  { %7491 = vpow2.f32 %v3743_v51 }
 0xaa5   :  { %v3745_v33 = vmul.f32 1.442695, %v3733_v57 }
 0xaa7   :  { %7493 = vpow2.f32 %v3745_v33  ;;  %v3712_v25 = vpop.xlane.xlu0 %3711 }
 0xaa8   :  { %v3734_v43 = vsub.f32 %v8948_v45, %v3712_v25 }
 0xaa9   :  { %v8998_v20 = vpop.eup %7489 }
 0xaaa   :  { %v3747_v59 = vmul.f32 1.442695, %v3734_v43  ;;  %v3761_v0 = vsel %vm998_vm3, %v8998_v20, 0.0 }
 0xaab   :  { %v3715_v63 = vpop.xlane.xlu0 %3714  ;;  %3762 = vadd.xlane.f32.xlu0 %v3761_v0 }
 0xaac   :  { %7495 = vpow2.f32 %v3747_v59  ;;  %v3735_v12 = vsub.f32 %v8953_v53, %v3715_v63 }
 0xaae   :  { %v9003_v14 = vpop.eup %7491  ;;  %v3749_v11 = vmul.f32 1.442695, %v3735_v12 }
 0xaaf   :  { %v3718_v60 = vpop.xlane.xlu1 %3717  ;;  %v3764_v57 = vsel %vm998_vm3, %v9003_v14, 0.0 }
 0xab0   :  { %7497 = vpow2.f32 %v3749_v11  ;;  %v3736_v25 = vsub.f32 %v8958_v47, %v3718_v60  ;;  %3765 = vadd.xlane.f32.xlu1 %v3764_v57 }
 0xab1   :  { %v9008_v43 = vpop.eup %7493 }
 0xab2   :  { %v3751_v33 = vmul.f32 1.442695, %v3736_v25  ;;  %v3721_v45 = vpop.xlane.xlu0 %3720  ;;  %v3767_v59 = vsel %vm998_vm3, %v9008_v43, 0.0 }
 0xab3   :  { %v3737_v53 = vsub.f32 %v8963_v16, %v3721_v45  ;;  %3768 = vadd.xlane.f32.xlu0 %v3767_v59 }
 0xab4   :  { %7499 = vpow2.f32 %v3751_v33 }
 0xab5   :  { %v3753_v8 = vmul.f32 1.442695, %v3737_v53 }
 0xab6   :  { %v9013_v30 = vpop.eup %7495 }
 0xab7   :  { %7501 = vpow2.f32 %v3753_v8  ;;  %v3770_v51 = vsel %vm998_vm3, %v9013_v30, 0.0  ;;  %v3724_v11 = vpop.xlane.xlu1 %3723 }
 0xab8   :  { %3771 = vadd.xlane.f32.xlu1 %v3770_v51  ;;  %v3738_v60 = vsub.f32 %v8968_v23, %v3724_v11 }
 0xaba   :  { %v9017_v47 = vpop.eup %7497  ;;  %v3727_v25 = vpop.xlane.xlu0 %3726  ;;  %v3755_v45 = vmul.f32 1.442695, %v3738_v60 }
 0xabb   :  { %v3773_v13 = vsel %vm998_vm3, %v9017_v47, 0.0  ;;  %v3739_v59 = vsub.f32 %v8973_v3, %v3727_v25 }
 0xabc   :  { %3774 = vadd.xlane.f32.xlu0 %v3773_v13  ;;  %7503 = vpow2.f32 %v3755_v45 }
 0xabd   :  { %v3757_v8 = vmul.f32 1.442695, %v3739_v59 }
 0xabe   :  { %v9021_v0 = vpop.eup %7499 }
 0xabf   :  { %v3776_v16 = vsel %vm998_vm3, %v9021_v0, 0.0  ;;  %v3730_v57 = vpop.xlane.xlu1 %3729 }
 0xac0   :  { %3777 = vadd.xlane.f32.xlu1 %v3776_v16  ;;  %v3740_v33 = vsub.f32 %v8978_v29, %v3730_v57 }
 0xac1   :  { %v9025_v63 = vpop.eup %7501 }
 0xac2   :  { %v3779_v12 = vsel %vm998_vm3, %v9025_v63, 0.0  ;;  %v3759_v53 = vmul.f32 1.442695, %v3740_v33 }
 0xac3   :  { %3780 = vadd.xlane.f32.xlu0 %v3779_v12 }
 0xac4   :  { %7505 = vpow2.f32 %v3759_v53 }
 0xac5   :  { %7507 = vpow2.f32 %v3757_v8 }
 0xac6   :  { %v9036_v51 = vpop.eup %7503 }
 0xac7   :  { %v3782_v16 = vsel %vm998_vm3, %v9036_v51, 0.0 }
 0xace   :  { %v9038_v13 = vpop.eup %7505 }
 0xacf   :  { %v9042_v23 = vpop.eup %7507  ;;  %v3788_v29 = vsel %vm998_vm3, %v9038_v13, 0.0 }
 0xad0   :  { %v3785_v3 = vsel %vm998_vm3, %v9042_v23, 0.0 }
 0xad1   :  { %4253 = vrot.lane.b32.xlu1 %v8540_v50, %s7634_s22 }
 0xad9   :  { %4205 = vrot.lane.b32.xlu0 %v8536_v27, %s7634_s22 }
 0xaf5   :  { %3783 = vadd.xlane.f32.xlu1 %v3782_v16 }
 0xaf8   :  { %3789 = vadd.xlane.f32.xlu0 %v3788_v29 }
 0xaf9   :  { %3786 = vadd.xlane.f32.xlu1 %v3785_v3 }
 0xb0a   :  { %4404 = vrot.lane.b32.xlu1 %v8144_v62, %s7635_s23 }
 0xb0e   :  { %4402 = vrot.lane.b32.xlu1 %v8167_v44, %s7635_s23  ;;  %4354 = vrot.lane.b32.xlu0 %v8132_v46, %s7635_s23  ;;  %v4110_v46 = vpop.permute.xlu0 %4109 }
 0xb0f   :  { %v4115_v12 = vsel %vm1582_vm4, %v4110_v46, 0 }
 0xb12   :  { %4504 = vrot.lane.b32.xlu1 %v8191_v49, %s7635_s23  ;;  %4352 = vrot.lane.b32.xlu0 %v8148_v22, %s7635_s23  ;;  %v4158_v22 = vpop.permute.xlu1 %4157 }
 0xb13   :  { %v4163_v57 = vsel %vm1582_vm4, %v4158_v22, 0 }
 0xb16   :  { %4502 = vrot.lane.b32.xlu1 %v8228_v10, %s7635_s23  ;;  %4454 = vrot.lane.b32.xlu0 %v8162_v15, %s7635_s23 }
 0xb1a   :  { %4604 = vrot.lane.b32.xlu1 %v8174_v31, %s7635_s23  ;;  %4452 = vrot.lane.b32.xlu0 %v8194_v54, %s7635_s23 }
 0xb1e   :  { %4602 = vrot.lane.b32.xlu1 %v8200_v26, %s7635_s23  ;;  %4554 = vrot.lane.b32.xlu0 %v8225_v19, %s7635_s23  ;;  %v3923_v19 = vsel %vm1582_vm4, %v8990_v41, 0 }
 0xb22   :  { %4704 = vrot.lane.b32.xlu1 %v8203_v7, %s7635_s23  ;;  %4552 = vrot.lane.b32.xlu0 %v8264_v1, %s7635_s23 }
 0xb26   :  { %4702 = vrot.lane.b32.xlu1 %v8234_v36, %s7635_s23  ;;  %4654 = vrot.lane.b32.xlu0 %v8261_v35, %s7635_s23 }
 0xb2a   :  { %4804 = vrot.lane.b32.xlu1 %v8237_v42, %s7635_s23  ;;  %4652 = vrot.lane.b32.xlu0 %v8295_v6, %s7635_s23 }
 0xb2e   :  { %4802 = vrot.lane.b32.xlu1 %v8271_v9, %s7635_s23  ;;  %4754 = vrot.lane.b32.xlu0 %v8292_v17, %s7635_s23 }
 0xb32   :  { %5020 = vrot.lane.b32.xlu1 %v8266_v5, %s7635_s23  ;;  %4752 = vrot.lane.b32.xlu0 %v8310_v38, %s7635_s23  ;;  %v3971_v5 = vsel %vm1582_vm4, %v8986_v18, 0 }
 0xb36   :  { %4972 = vrot.lane.b32.xlu0 %v8308_v39, %s7635_s23  ;;  %v4019_v39 = vsel %vm1582_vm4, %v8988_v61, 0 }
 0xb38   :  { %v3763_v62 = vpop.xlane.xlu0 %3762 }
 0xb39   :  { %7509 = vrcp.f32 %v3763_v62 }
 0xb3d   :  { %v3766_v15 = vpop.xlane.xlu1 %3765 }
 0xb3e   :  { %7511 = vrcp.f32 %v3766_v15 }
 0xb40   :  { %v3769_v44 = vpop.xlane.xlu0 %3768 }
 0xb41   :  { %7513 = vrcp.f32 %v3769_v44 }
 0xb43   :  { %v7510_v31 = vpop.eup %7509 }
 0xb44   :  { %v3792_v49 = vmul.f32 %v7510_v31, %v8998_v20 }
 0xb45   :  { %v3772_v54 = vpop.xlane.xlu1 %3771 }
 0xb46   :  { %7515 = vrcp.f32 %v3772_v54  ;;  %v3811_v26 = vpack.c.bf16 %v3792_v49, %v3792_v49 }
 0xb48   :  { %v7512_v7 = vpop.eup %7511  ;;  %7047 = vmatmul.mubr.msk.bf16.vlgmr.msra.gmra.mrb[140].mxu1 %vm998_vm3, %v3811_v26 }
 0xb49   :  { %7057 = vmatpush3.bf16.msra.mxu1 %v3923_v19  ;;  %v3775_v10 = vpop.xlane.xlu0 %3774  ;;  %v3794_v36 = vmul.f32 %v7512_v7, %v9003_v14  ;;  %7058 = vmatprep.mubr.msk.bf16.mxu1 %vm7632_vm2, %v9861_v28  ;;  %v4067_v14 = vsel %vm1582_vm4, %v8992_v4, 0 }
 0xb4a   :  { %7517 = vrcp.f32 %v3775_v10  ;;  %7068 = vmatprep.subr.bf16.mxu1 %v9861_v28 }
 0xb4b   :  { %v7514_v42 = vpop.eup %7513  ;;  %v3812_v35 = vpack.c.bf16 %v3794_v36, %v3794_v36 }
 0xb4c   :  { %v3796_v1 = vmul.f32 %v7514_v42, %v9008_v43 }
 0xb4d   :  { %7053 = vmatmul.mubr.msk.bf16.vlgmr.msra.gmra.mrb[140].mxu0 %vm998_vm3, %v3812_v35  ;;  %v3778_v9 = vpop.xlane.xlu1 %3777 }
 0xb4e   :  { %7063 = vmatpush3.bf16.msra.mxu0 %v3971_v5  ;;  %7519 = vrcp.f32 %v3778_v9  ;;  %v3813_v17 = vpack.c.bf16 %v3796_v1, %v3796_v1  ;;  %7064 = vmatprep.mubr.msk.bf16.mxu0 %vm7632_vm2, %v9861_v28 }
 0xb4f   :  { %7074 = vmatprep.subr.bf16.mxu0 %v9861_v28 }
 0xb50   :  { %v7516_v6 = vpop.eup %7515  ;;  %7059 = vmatmul.mubr.msk.bf16.vlgmr.msra.gmra.mrb[144].mxu1 %vm998_vm3, %v3813_v17  ;;  %v3781_v38 = vpop.xlane.xlu0 %3780 }
 0xb51   :  { %7069 = vmatpush3.bf16.msra.mxu1 %v4019_v39  ;;  %7521 = vrcp.f32 %v3781_v38  ;;  %v3798_v20 = vmul.f32 %v7516_v6, %v9013_v30  ;;  %7070 = vmatprep.mubr.msk.bf16.mxu1 %vm7632_vm2, %v9861_v28 }
 0xb52   :  { %7080 = vmatprep.subr.bf16.mxu1 %v9861_v28 }
 0xb53   :  { %v3814_v18 = vpack.c.bf16 %v3798_v20, %v3798_v20 }
 0xb54   :  { %v7518_v41 = vpop.eup %7517  ;;  %v4206_v25 = vpop.permute.xlu0 %4205 }
 0xb55   :  { %7065 = vmatmul.mubr.msk.bf16.vlgmr.msra.gmra.mrb[144].mxu0 %vm998_vm3, %v3814_v18  ;;  %v3800_v61 = vmul.f32 %v7518_v41, %v9017_v47 }
 0xb56   :  { %7075 = vmatpush3.bf16.msra.mxu0 %v4067_v14  ;;  %7076 = vmatprep.mubr.msk.bf16.mxu0 %vm7632_vm2, %v9861_v28 }
 0xb57   :  { %v3815_v43 = vpack.c.bf16 %v3800_v61, %v3800_v61  ;;  %7086 = vmatprep.subr.bf16.mxu0 %v9861_v28 }
 0xb58   :  { %v7520_v30 = vpop.eup %7519 }
 0xb59   :  { %7071 = vmatmul.mubr.msk.bf16.vlgmr.msra.gmra.mrb[148].mxu1 %vm998_vm3, %v3815_v43  ;;  %v3802_v11 = vmul.f32 %v7520_v30, %v9021_v0  ;;  %v4211_v0 = vsel %vm1582_vm4, %v4206_v25, 0 }
 0xb5a   :  { %7081 = vmatpush3.bf16.msra.mxu1 %v4115_v12  ;;  %7082 = vmatprep.mubr.msk.bf16.mxu1 %vm7632_vm2, %v9861_v28 }
 0xb5b   :  { %v7522_v4 = vpop.eup %7521  ;;  %v3816_v47 = vpack.c.bf16 %v3802_v11, %v3802_v11  ;;  %7092 = vmatprep.subr.bf16.mxu1 %v9861_v28 }
 0xb5c   :  { %v3804_v60 = vmul.f32 %v7522_v4, %v9025_v63  ;;  %v4254_v63 = vpop.permute.xlu1 %4253 }
 0xb5d   :  { %7077 = vmatmul.mubr.msk.bf16.vlgmr.msra.gmra.mrb[148].mxu0 %vm998_vm3, %v3816_v47  ;;  %v4259_v49 = vsel %vm1582_vm4, %v4254_v63, 0 }
 0xb5e   :  { %7087 = vmatpush3.bf16.msra.mxu0 %v4163_v57  ;;  %v3817_v33 = vpack.c.bf16 %v3804_v60, %v3804_v60  ;;  %7088 = vmatprep.mubr.msk.bf16.mxu0 %vm7632_vm2, %v9861_v28 }
 0xb5f   :  { %7098 = vmatprep.subr.bf16.mxu0 %v9861_v28 }
 0xb61   :  { %7083 = vmatmul.mubr.msk.bf16.vlgmr.msra.gmra.mrb[152].mxu1 %vm998_vm3, %v3817_v33 }
 0xb62   :  { %7093 = vmatpush3.bf16.msra.mxu1 %v4211_v0  ;;  %7094 = vmatprep.mubr.msk.bf16.mxu1 %vm7632_vm2, %v9861_v28 }
 0xb63   :  { %7104 = vmatprep.subr.bf16.mxu1 %v9861_v28 }
 0xb82   :  { %v3784_v45 = vpop.xlane.xlu1 %3783 }
 0xb83   :  { %7523 = vrcp.f32 %v3784_v45 }
 0xb85   :  { %v3790_v59 = vpop.xlane.xlu0 %3789 }
 0xb86   :  { %7525 = vrcp.f32 %v3790_v59  ;;  %v3787_v53 = vpop.xlane.xlu1 %3786 }
 0xb87   :  { %7527 = vrcp.f32 %v3787_v53 }
 0xb89   :  { %v4355_v8 = vpop.permute.xlu0 %4354 }
 0xb8a   :  { %v4405_v16 = vpop.permute.xlu1 %4404  ;;  %v4360_v10 = vsel %vm998_vm3, %v4355_v8, 0 }
 0xb8d   :  { %v7524_v29 = vpop.eup %7523  ;;  %v4353_v3 = vpop.permute.xlu0 %4352 }
 0xb8e   :  { %v4403_v46 = vpop.permute.xlu1 %4402  ;;  %v3806_v62 = vmul.f32 %v7524_v29, %v9036_v51 }
 0xb90   :  { %v7526_v22 = vpop.eup %7525  ;;  %v3818_v15 = vpack.c.bf16 %v3806_v62, %v3806_v62 }
 0xb91   :  { %v7528_v44 = vpop.eup %7527  ;;  %v4455_v31 = vpop.permute.xlu0 %4454  ;;  %v3810_v19 = vmul.f32 %v7526_v22, %v9038_v13  ;;  %v4410_v13 = vsel %vm998_vm3, %v4405_v16, 0 }
 0xb92   :  { %7089 = vmatmul.mubr.msk.bf16.vlgmr.msra.gmra.mrb[152].mxu0 %vm998_vm3, %v3818_v15  ;;  %v4505_v54 = vpop.permute.xlu1 %4504  ;;  %v3808_v26 = vmul.f32 %v7528_v44, %v9042_v23  ;;  %v4460_v5 = vsel %vm998_vm3, %v4455_v31, 0 }
 0xb93   :  { %7099 = vmatpush3.bf16.msra.mxu0 %v4259_v49  ;;  %7100 = vmatprep.mubr.msk.bf16.mxu0 %vm7632_vm2, %v9861_v28  ;;  %v3820_v23 = vpack.c.bf16 %v3810_v19, %v3810_v19  ;;  %v4510_v17 = vsel %vm998_vm3, %v4505_v54, 0 }
 0xb94   :  { %v3819_v7 = vpack.c.bf16 %v3808_v26, %v3808_v26  ;;  %7110 = vmatprep.subr.bf16.mxu0 %v9861_v28 }
 0xb95   :  { %v4453_v51 = vpop.permute.xlu0 %4452 }
 0xb96   :  { %7095 = vmatmul.mubr.msk.bf16.vlgmr.msra.gmra.mrb[156].mxu1 %vm998_vm3, %v3819_v7  ;;  %v4503_v36 = vpop.permute.xlu1 %4502 }
 0xb97   :  { %7105 = vmatpush3.bf16.xpose.msra.mxu1 %v4360_v10  ;;  %7106 = vmatprep.mubr.msk.bf16.mxu1 %vm7632_vm2, %v9861_v28 }
 0xb98   :  { %7116 = vmatprep.subr.bf16.mxu1 %v9861_v28 }
 0xb99   :  { %v4555_v42 = vpop.permute.xlu0 %4554 }
 0xb9a   :  { %7101 = vmatmul.mubr.msk.bf16.vlgmr.msra.gmra.mrb[156].mxu0 %vm998_vm3, %v3820_v23  ;;  %v4605_v35 = vpop.permute.xlu1 %4604  ;;  %v4560_v39 = vsel %vm998_vm3, %v4555_v42, 0 }
 0xb9b   :  { %7112 = vmatprep.mubr.msk.bf16.mxu0 %vm7632_vm2, %v9861_v28  ;;  %v4610_v18 = vsel %vm998_vm3, %v4605_v35, 0 }
 0xb9c   :  { %7111 = vmatpush3.bf16.xpose.msra.mxu0 %v4410_v13 }
 0xb9d   :  { %v4553_v1 = vpop.permute.xlu0 %4552  ;;  %7122 = vmatprep.subr.bf16.mxu0 %v9861_v28 }
 0xb9e   :  { %7107 = vmatmul.mubr.msk.bf16.vlgmr.msra.gmra.mrb[160].mxu1 %vm998_vm3, %v4353_v3  ;;  %v4603_v9 = vpop.permute.xlu1 %4602 }
 0xb9f   :  { %7117 = vmatpush3.bf16.xpose.msra.mxu1 %v4460_v5  ;;  %7118 = vmatprep.mubr.msk.bf16.mxu1 %vm7632_vm2, %v9861_v28 }
 0xba0   :  { %7128 = vmatprep.subr.bf16.mxu1 %v9861_v28 }
 0xba1   :  { %v4655_v6 = vpop.permute.xlu0 %4654 }
 0xba2   :  { %v4705_v38 = vpop.permute.xlu1 %4704  ;;  %v4660_v41 = vsel %vm998_vm3, %v4655_v6, 0 }
 0xba3   :  { %7113 = vmatmul.mubr.msk.bf16.vlgmr.msra.gmra.mrb[160].mxu0 %vm998_vm3, %v4403_v46  ;;  %v4710_v43 = vsel %vm998_vm3, %v4705_v38, 0 }
 0xba4   :  { %7123 = vmatpush3.bf16.xpose.msra.mxu0 %v4510_v17  ;;  %7124 = vmatprep.mubr.msk.bf16.mxu0 %vm7632_vm2, %v9861_v28 }
 0xba5   :  { %7134 = vmatprep.subr.bf16.mxu0 %v9861_v28  ;;  %v4653_v20 = vpop.permute.xlu0 %4652 }
 0xba6   :  { %7119 = vmatmul.mubr.msk.bf16.vlgmr.msra.gmra.mrb[164].mxu1 %vm998_vm3, %v4453_v51  ;;  %v4703_v14 = vpop.permute.xlu1 %4702 }
 0xba7   :  { %7129 = vmatpush3.bf16.xpose.msra.mxu1 %v4560_v39  ;;  %7130 = vmatprep.mubr.msk.bf16.mxu1 %vm7632_vm2, %v9861_v28 }
 0xba8   :  { %7140 = vmatprep.subr.bf16.mxu1 %v9861_v28 }
 0xba9   :  { %v4755_v61 = vpop.permute.xlu0 %4754 }
 0xbaa   :  { %v4805_v30 = vpop.permute.xlu1 %4804  ;;  %v4760_v11 = vsel %vm998_vm3, %v4755_v61, 0 }
 0xbab   :  { %7125 = vmatmul.mubr.msk.bf16.vlgmr.msra.gmra.mrb[164].mxu0 %vm998_vm3, %v4503_v36  ;;  %v4810_v47 = vsel %vm998_vm3, %v4805_v30, 0 }
 0xbac   :  { %7135 = vmatpush3.bf16.xpose.msra.mxu0 %v4610_v18  ;;  %7136 = vmatprep.mubr.msk.bf16.mxu0 %vm7632_vm2, %v9861_v28 }
 0xbad   :  { %7146 = vmatprep.subr.bf16.mxu0 %v9861_v28  ;;  %v4753_v12 = vpop.permute.xlu0 %4752 }
 0xbae   :  { %7131 = vmatmul.mubr.msk.bf16.vlgmr.msra.gmra.mrb[168].mxu1 %vm998_vm3, %v4553_v1  ;;  %v4803_v4 = vpop.permute.xlu1 %4802 }
 0xbaf   :  { %7141 = vmatpush3.bf16.xpose.msra.mxu1 %v4660_v41  ;;  %7142 = vmatprep.mubr.msk.bf16.mxu1 %vm7632_vm2, %v9861_v28 }
 0xbb0   :  { %7152 = vmatprep.subr.bf16.mxu1 %v9861_v28 }
 0xbb1   :  { %v4973_v60 = vpop.permute.xlu0 %4972 }
 0xbb2   :  { %v4978_v57 = vsel %vm1582_vm4, %v4973_v60, 0  ;;  %v5021_v25 = vpop.permute.xlu1 %5020 }
 0xbb3   :  { %7137 = vmatmul.mubr.msk.bf16.vlgmr.msra.gmra.mrb[168].mxu0 %vm998_vm3, %v4603_v9  ;;  %v5026_v33 = vsel %vm1582_vm4, %v5021_v25, 0 }
 0xbb4   :  { %7147 = vmatpush3.bf16.xpose.msra.mxu0 %v4710_v43  ;;  %7148 = vmatprep.mubr.msk.bf16.mxu0 %vm7632_vm2, %v9861_v28 }
 0xbb5   :  { %7158 = vmatprep.subr.bf16.mxu0 %v9861_v28 }
 0xbb6   :  { %7143 = vmatmul.mubr.msk.bf16.vlgmr.msra.gmra.mrb[172].mxu1 %vm998_vm3, %v4653_v20 }
 0xbb7   :  { %7153 = vmatpush3.bf16.xpose.msra.mxu1 %v4760_v11  ;;  %7154 = vmatprep.mubr.msk.bf16.mxu1 %vm7632_vm2, %v9861_v28 }
 0xbb8   :  { %7164 = vmatprep.subr.bf16.mxu1 %v9861_v28 }
 0xbbb   :  { %7149 = vmatmul.mubr.msk.bf16.vlgmr.msra.gmra.mrb[172].mxu0 %vm998_vm3, %v4703_v14 }
 0xbbc   :  { %7159 = vmatpush3.bf16.xpose.msra.mxu0 %v4810_v47  ;;  %7160 = vmatprep.mubr.msk.bf16.mxu0 %vm7632_vm2, %v9861_v28 }
 0xbbd   :  { %7170 = vmatprep.subr.bf16.mxu0 %v9861_v28 }
 0xbbe   :  { %7155 = vmatmul.mubr.msk.bf16.vlgmr.msra.gmra.mrb[176].mxu1 %vm998_vm3, %v4753_v12 }
 0xbbf   :  { %7165 = vmatpush3.bf16.msra.mxu1 %v4978_v57  ;;  %7166 = vmatprep.mubr.msk.bf16.mxu1 %vm7632_vm2, %v9861_v28 }
 0xbc0   :  { %7176 = vmatprep.subr.bf16.mxu1 %v9861_v28 }
 0xbc3   :  { %7161 = vmatmul.mubr.msk.bf16.vlgmr.msra.gmra.mrb[176].mxu0 %vm998_vm3, %v4803_v4 }
 0xbc4   :  { %7171 = vmatpush3.bf16.msra.mxu0 %v5026_v33  ;;  %7172 = vmatprep.mubr.msk.bf16.mxu0 %vm7632_vm2, %v9861_v28 }
 0xbc5   :  { %7182 = vmatprep.subr.bf16.mxu0 %v9861_v28 }
 0xc1b   :  { %v9206_v0 = vpop.f32.mrb[140].mxu1 }
 0xc1c   :  { %v7048_v63 = vpop.f32.mrb[141].mxu1 }
 0xc1d   :  { %v3866_v45 = vpop.f32.mrb[142].mxu1 }
 0xc1e   :  { %v7049_v59 = vpop.f32.mrb[143].mxu1 }
 0xc20   :  { %v9208_v53 = vpop.f32.mrb[140].mxu0 }
 0xc21   :  { %v7054_v8 = vpop.f32.mrb[141].mxu0 }
 0xc22   :  { %v3914_v16 = vpop.f32.mrb[142].mxu0 }
 0xc23   :  { %v7055_v29 = vpop.f32.mrb[143].mxu0  ;;  %v9210_v3 = vpop.f32.mrb[144].mxu1 }
 0xc24   :  { %v7060_v46 = vpop.f32.mrb[145].mxu1 }
 0xc25   :  { %v3962_v62 = vpop.f32.mrb[146].mxu1 }
 0xc26   :  { %v7061_v22 = vpop.f32.mrb[147].mxu1 }
 0xc28   :  { %v9212_v15 = vpop.f32.mrb[144].mxu0 }
 0xc29   :  { %v7066_v44 = vpop.f32.mrb[145].mxu0 }
 0xc2a   :  { %v4010_v31 = vpop.f32.mrb[146].mxu0 }
 0xc2b   :  { %v7067_v49 = vpop.f32.mrb[147].mxu0 }
 0xc2c   :  { %v9214_v54 = vpop.f32.mrb[148].mxu1 }
 0xc2d   :  { %v7072_v26 = vpop.f32.mrb[149].mxu1 }
 0xc2e   :  { %v4058_v7 = vpop.f32.mrb[150].mxu1 }
 0xc2f   :  { %v7073_v19 = vpop.f32.mrb[151].mxu1 }
 0xc30   :  { %v9216_v51 = vpop.f32.mrb[148].mxu0 }
 0xc31   :  { %v7078_v10 = vpop.f32.mrb[149].mxu0 }
 0xc32   :  { %v4106_v36 = vpop.f32.mrb[150].mxu0 }
 0xc33   :  { %v7079_v23 = vpop.f32.mrb[151].mxu0 }
 0xc34   :  { %v9218_v42 = vpop.f32.mrb[152].mxu1 }
 0xc35   :  { %v7084_v13 = vpop.f32.mrb[153].mxu1 }
 0xc36   :  { %v4154_v35 = vpop.f32.mrb[154].mxu1 }
 0xc37   :  { %v7085_v1 = vpop.f32.mrb[155].mxu1 }
 0xc65   :  { %v9220_v5 = vpop.f32.mrb[152].mxu0 }
 0xc66   :  { %v7090_v9 = vpop.f32.mrb[153].mxu0 }
 0xc67   :  { %v4202_v17 = vpop.f32.mrb[154].mxu0 }
 0xc68   :  { %v7091_v6 = vpop.f32.mrb[155].mxu0 }
 0xc69   :  { %v9222_v39 = vpop.f32.mrb[156].mxu1 }
 0xc6a   :  { %v7096_v38 = vpop.f32.mrb[157].mxu1 }
 0xc6b   :  { %v4250_v20 = vpop.f32.mrb[158].mxu1 }
 0xc6c   :  { %v7097_v18 = vpop.f32.mrb[159].mxu1 }
 0xc6d   :  { %v9224_v41 = vpop.f32.mrb[156].mxu0 }
 0xc6e   :  { %v7102_v14 = vpop.f32.mrb[157].mxu0 }
 0xc6f   :  { %v4298_v61 = vpop.f32.mrb[158].mxu0 }
 0xc70   :  { %v7103_v43 = vpop.f32.mrb[159].mxu0 }
 0xc71   :  { %v4396_v30 = vpop.f32.mrb[160].mxu1 }
 0xc72   :  { %v9227_v12 = vadd.f32 %v4396_v30, %v8321_v55  ;;  %v7108_v11 = vpop.f32.mrb[161].mxu1 }
 0xc73   :  { %v4399_v4 = vpop.f32.mrb[162].mxu1 }
 0xc74   :  { %v7109_v47 = vpop.f32.mrb[163].mxu1  ;;  %v4852_v60 = vsel %vm998_vm3, %v9227_v12, -inf }
 0xc75   :  { %4853 = vmax.xlane.f32.xlu0 %v4852_v60 }
 0xc76   :  { %v4446_v57 = vpop.f32.mrb[160].mxu0 }
 0xc77   :  { %v9232_v25 = vadd.f32 %v4446_v57, %v8321_v55  ;;  %v7114_v33 = vpop.f32.mrb[161].mxu0 }
 0xc78   :  { %v4449_v63 = vpop.f32.mrb[162].mxu0 }
 0xc79   :  { %v7115_v45 = vpop.f32.mrb[163].mxu0  ;;  %v4496_v59 = vpop.f32.mrb[164].mxu1  ;;  %v4855_v8 = vsel %vm998_vm3, %v9232_v25, -inf }
 0xc7a   :  { %v9237_v16 = vadd.f32 %v4496_v59, %v8321_v55  ;;  %4856 = vmax.xlane.f32.xlu1 %v4855_v8  ;;  %v7120_v29 = vpop.f32.mrb[165].mxu1 }
 0xc7b   :  { %v4499_v46 = vpop.f32.mrb[166].mxu1 }
 0xc7c   :  { %v7121_v62 = vpop.f32.mrb[167].mxu1  ;;  %v4858_v22 = vsel %vm998_vm3, %v9237_v16, -inf }
 0xc7d   :  { %4859 = vmax.xlane.f32.xlu0 %v4858_v22 }
 0xc7e   :  { %v4546_v44 = vpop.f32.mrb[164].mxu0 }
 0xc7f   :  { %v9242_v31 = vadd.f32 %v4546_v44, %v8321_v55  ;;  %v7126_v49 = vpop.f32.mrb[165].mxu0 }
 0xc80   :  { %v4549_v26 = vpop.f32.mrb[166].mxu0 }
 0xc81   :  { %v7127_v7 = vpop.f32.mrb[167].mxu0  ;;  %v4596_v19 = vpop.f32.mrb[168].mxu1  ;;  %v4861_v10 = vsel %vm998_vm3, %v9242_v31, -inf }
 0xc82   :  { %v9247_v36 = vadd.f32 %v4596_v19, %v8321_v55  ;;  %4862 = vmax.xlane.f32.xlu0 %v4861_v10  ;;  %v7132_v23 = vpop.f32.mrb[169].mxu1 }
 0xc83   :  { %v4599_v13 = vpop.f32.mrb[170].mxu1 }
 0xc84   :  { %v7133_v35 = vpop.f32.mrb[171].mxu1  ;;  %v4864_v1 = vsel %vm998_vm3, %v9247_v36, -inf }
 0xc86   :  { %4865 = vmax.xlane.f32.xlu0 %v4864_v1  ;;  %v4646_v9 = vpop.f32.mrb[168].mxu0 }
 0xc87   :  { %v9252_v17 = vadd.f32 %v4646_v9, %v8321_v55  ;;  %v7138_v6 = vpop.f32.mrb[169].mxu0 }
 0xc88   :  { %v4649_v38 = vpop.f32.mrb[170].mxu0 }
 0xc89   :  { %v7139_v20 = vpop.f32.mrb[171].mxu0  ;;  %v4696_v18 = vpop.f32.mrb[172].mxu1  ;;  %v4867_v14 = vsel %vm998_vm3, %v9252_v17, -inf }
 0xc8a   :  { %v9257_v61 = vadd.f32 %v4696_v18, %v8321_v55  ;;  %4868 = vmax.xlane.f32.xlu1 %v4867_v14  ;;  %v7144_v43 = vpop.f32.mrb[173].mxu1 }
 0xc8b   :  { %v4699_v30 = vpop.f32.mrb[174].mxu1 }
 0xc8c   :  { %v7145_v11 = vpop.f32.mrb[175].mxu1  ;;  %v4870_v4 = vsel %vm998_vm3, %v9257_v61, -inf }
 0xc8d   :  { %4871 = vmax.xlane.f32.xlu0 %v4870_v4 }
 0xc8e   :  { %v4746_v47 = vpop.f32.mrb[172].mxu0 }
 0xc8f   :  { %v9262_v60 = vadd.f32 %v4746_v47, %v8321_v55  ;;  %v7150_v57 = vpop.f32.mrb[173].mxu0 }
 0xc90   :  { %v4749_v33 = vpop.f32.mrb[174].mxu0 }
 0xc91   :  { %v7151_v63 = vpop.f32.mrb[175].mxu0  ;;  %v4796_v45 = vpop.f32.mrb[176].mxu1  ;;  %v4873_v59 = vsel %vm998_vm3, %v9262_v60, -inf }
 0xc92   :  { %v9267_v8 = vadd.f32 %v4796_v45, %v8321_v55  ;;  %4874 = vmax.xlane.f32.xlu1 %v4873_v59  ;;  %v7156_v29 = vpop.f32.mrb[177].mxu1 }
 0xc93   :  { %v4799_v46 = vpop.f32.mrb[178].mxu1 }
 0xc94   :  { %v7157_v62 = vpop.f32.mrb[179].mxu1  ;;  %v4876_v22 = vsel %vm998_vm3, %v9267_v8, -inf }
 0xc95   :  { %4877 = vmax.xlane.f32.xlu0 %v4876_v22 }
 0xc96   :  { %v4846_v44 = vpop.f32.mrb[176].mxu0 }
 0xc97   :  { %v7162_v49 = vpop.f32.mrb[177].mxu0  ;;  %v9278_v19 = vadd.f32 %v4846_v44, %v8321_v55 }
 0xc98   :  { %v4849_v26 = vpop.f32.mrb[178].mxu0 }
 0xc99   :  { %v7163_v7 = vpop.f32.mrb[179].mxu0  ;;  %v4879_v10 = vsel %vm998_vm3, %v9278_v19, -inf }
 0xca3   :  { %5116 = vrot.lane.b32.xlu1 %v8457_v40, %s7635_s23 }
 0xca7   :  { %5164 = vrot.lane.b32.xlu1 %v8465_v52, %s7635_s23 }
 0xcab   :  { %5068 = vrot.lane.b32.xlu0 %v8473_v37, %s7635_s23 }
 0xccb   :  { %4880 = vmax.xlane.f32.xlu1 %v4879_v10 }
 0xcdc   :  { %5212 = vrot.lane.b32.xlu1 %v8477_v32, %s7635_s23 }
 0xd02   :  { %v4854_v23 = vpop.xlane.xlu0 %4853 }
 0xd03   :  { %v4882_v13 = vsub.f32 %v9227_v12, %v4854_v23 }
 0xd05   :  { %v4892_v40 = vmul.f32 1.442695, %v4882_v13 }
 0xd07   :  { %7529 = vpow2.f32 %v4892_v40  ;;  %v4857_v35 = vpop.xlane.xlu1 %4856 }
 0xd08   :  { %v4883_v52 = vsub.f32 %v9232_v25, %v4857_v35 }
 0xd0a   :  { %v4894_v1 = vmul.f32 1.442695, %v4883_v52  ;;  %v4860_v37 = vpop.xlane.xlu0 %4859 }
 0xd0b   :  { %v4884_v55 = vsub.f32 %v9237_v16, %v4860_v37 }
 0xd0c   :  { %7531 = vpow2.f32 %v4894_v1 }
 0xd0d   :  { %v4896_v9 = vmul.f32 1.442695, %v4884_v55 }
 0xd0f   :  { %7533 = vpow2.f32 %v4896_v9  ;;  %v4863_v6 = vpop.xlane.xlu0 %4862 }
 0xd10   :  { %v4885_v38 = vsub.f32 %v9242_v31, %v4863_v6 }
 0xd11   :  { %v9288_v20 = vpop.eup %7529 }
 0xd12   :  { %v4898_v32 = vmul.f32 1.442695, %v4885_v38  ;;  %v4912_v12 = vsel %vm998_vm3, %v9288_v20, 0.0 }
 0xd13   :  { %v4866_v18 = vpop.xlane.xlu0 %4865  ;;  %4913 = vadd.xlane.f32.xlu0 %v4912_v12 }
 0xd14   :  { %7535 = vpow2.f32 %v4898_v32  ;;  %v4886_v25 = vsub.f32 %v9247_v36, %v4866_v18 }
 0xd16   :  { %v9293_v14 = vpop.eup %7531  ;;  %v4900_v16 = vmul.f32 1.442695, %v4886_v25 }
 0xd17   :  { %v4915_v43 = vsel %vm998_vm3, %v9293_v14, 0.0  ;;  %v4869_v57 = vpop.xlane.xlu1 %4868 }
 0xd18   :  { %7537 = vpow2.f32 %v4900_v16  ;;  %4916 = vadd.xlane.f32.xlu1 %v4915_v43  ;;  %v4887_v33 = vsub.f32 %v9252_v17, %v4869_v57 }
 0xd19   :  { %v9297_v31 = vpop.eup %7533 }
 0xd1a   :  { %v4918_v30 = vsel %vm998_vm3, %v9297_v31, 0.0  ;;  %v4872_v63 = vpop.xlane.xlu0 %4871  ;;  %v4902_v29 = vmul.f32 1.442695, %v4887_v33 }
 0xd1b   :  { %4919 = vadd.xlane.f32.xlu0 %v4918_v30  ;;  %v4888_v59 = vsub.f32 %v9257_v61, %v4872_v63 }
 0xd1c   :  { %7539 = vpow2.f32 %v4902_v29 }
 0xd1d   :  { %v4904_v22 = vmul.f32 1.442695, %v4888_v59 }
 0xd1e   :  { %v9301_v11 = vpop.eup %7535 }
 0xd1f   :  { %v4921_v4 = vsel %vm998_vm3, %v9301_v11, 0.0  ;;  %v4875_v45 = vpop.xlane.xlu1 %4874  ;;  %7541 = vpow2.f32 %v4904_v22 }
 0xd20   :  { %4922 = vadd.xlane.f32.xlu1 %v4921_v4  ;;  %v4889_v46 = vsub.f32 %v9262_v60, %v4875_v45 }
 0xd22   :  { %v9305_v36 = vpop.eup %7537  ;;  %v4878_v62 = vpop.xlane.xlu0 %4877  ;;  %v4906_v44 = vmul.f32 1.442695, %v4889_v46 }
 0xd23   :  { %v4924_v47 = vsel %vm998_vm3, %v9305_v36, 0.0  ;;  %v4890_v49 = vsub.f32 %v9267_v8, %v4878_v62 }
 0xd24   :  { %4925 = vadd.xlane.f32.xlu0 %v4924_v47  ;;  %7543 = vpow2.f32 %v4906_v44 }
 0xd26   :  { %v9319_v17 = vpop.eup %7539 }
 0xd27   :  { %v4927_v60 = vsel %vm998_vm3, %v9319_v17, 0.0 }
 0xd29   :  { %v9321_v26 = vpop.eup %7541 }
 0xd2a   :  { %v4930_v8 = vsel %vm998_vm3, %v9321_v26, 0.0 }
 0xd2e   :  { %v9327_v7 = vpop.eup %7543 }
 0xd2f   :  { %v4933_v23 = vsel %vm998_vm3, %v9327_v7, 0.0 }
 0xd31   :  { %5308 = vrot.lane.b32.xlu1 %v8518_v48, %s7635_s23  ;;  %v4908_v48 = vmul.f32 1.442695, %v4890_v49 }
 0xd33   :  { %7545 = vpow2.f32 %v4908_v48 }
 0xd3a   :  { %5260 = vrot.lane.b32.xlu0 %v8514_v24, %s7635_s23  ;;  %v9317_v24 = vpop.permute.xlu1 %5116 }
 0xd3b   :  { %v5122_v38 = vsel %vm1582_vm4, %v9317_v24, 0 }
 0xd3d   :  { %v9333_v13 = vpop.eup %7545 }
 0xd3e   :  { %v9323_v61 = vpop.permute.xlu1 %5164  ;;  %v4936_v52 = vsel %vm998_vm3, %v9333_v13, 0.0 }
 0xd3f   :  { %v5170_v12 = vsel %vm1582_vm4, %v9323_v61, 0 }
 0xd55   :  { %4928 = vadd.xlane.f32.xlu1 %v4927_v60 }
 0xd58   :  { %v4881_v10 = vpop.xlane.xlu1 %4880 }
 0xd59   :  { %v4891_v40 = vsub.f32 %v9278_v19, %v4881_v10  ;;  %4931 = vadd.xlane.f32.xlu0 %v4930_v8  ;;  %4934 = vadd.xlane.f32.xlu1 %v4933_v23 }
 0xd5b   :  { %v4910_v35 = vmul.f32 1.442695, %v4891_v40 }
 0xd5d   :  { %7547 = vpow2.f32 %v4910_v35  ;;  %4937 = vadd.xlane.f32.xlu1 %v4936_v52 }
 0xd67   :  { %v9338_v1 = vpop.eup %7547 }
 0xd68   :  { %v4939_v37 = vsel %vm998_vm3, %v9338_v1, 0.0 }
 0xd69   :  { %4940 = vadd.xlane.f32.xlu0 %v4939_v37 }
 0xd6e   :  { %5404 = vrot.lane.b32.xlu1 %v8540_v50, %s7635_s23  ;;  %v5069_v50 = vpop.permute.xlu0 %5068 }
 0xd72   :  { %3162 = vrot.lane.b32.xlu1 %v8914_v2, %s7636_s24  ;;  %v5213_v2 = vpop.permute.xlu1 %5212 }
 0xd73   :  { %v5218_v16 = vsel %vm1582_vm4, %v5213_v2, 0 }
 0xd76   :  { %4313 = vrot.lane.b32.xlu1 %v9208_v53, %s7637_s25 }
 0xd7a   :  { %3166 = vrot.lane.b32.xlu1 %v8918_v21, %s7636_s24 }
 0xd7e   :  { %4317 = vrot.lane.b32.xlu1 %v9212_v15, %s7637_s25 }
 0xd7f   :  { %5356 = vrot.lane.b32.xlu0 %v8536_v27, %s7635_s23  ;;  %v9867_v27 = vld [vmem:[#allocation14_spill] sm:$0xff] }
 0xd82   :  { %3170 = vrot.lane.b32.xlu1 %v8922_v58, %s7636_s24 }
 0xd83   :  { %3160 = vrot.lane.b32.xlu0 %v8912_v56, %s7636_s24 }
 0xd86   :  { %4321 = vrot.lane.b32.xlu1 %v9216_v51, %s7637_s25  ;;  %v5074_v51 = vsel %vm1582_vm4, %v5069_v50, 0 }
 0xd87   :  { %4311 = vrot.lane.b32.xlu0 %v9206_v0, %s7637_s25 }
 0xd8b   :  { %3164 = vrot.lane.b32.xlu0 %v8916_v34, %s7636_s24 }
 0xd8f   :  { %4315 = vrot.lane.b32.xlu0 %v9210_v3, %s7637_s25 }
 0xd93   :  { %3168 = vrot.lane.b32.xlu0 %v9867_v27, %s7636_s24 }
 0xd97   :  { %4319 = vrot.lane.b32.xlu0 %v9214_v54, %s7637_s25 }
 0xda0   :  { %v4914_v56 = vpop.xlane.xlu0 %4913 }
 0xda1   :  { %7549 = vrcp.f32 %v4914_v56 }
 0xda5   :  { %v4917_v21 = vpop.xlane.xlu1 %4916 }
 0xda6   :  { %7551 = vrcp.f32 %v4917_v21 }
 0xda8   :  { %v4920_v58 = vpop.xlane.xlu0 %4919 }
 0xda9   :  { %7553 = vrcp.f32 %v4920_v58 }
 0xdab   :  { %v7550_v0 = vpop.eup %7549 }
 0xdac   :  { %v4943_v34 = vmul.f32 %v7550_v0, %v9288_v20 }
 0xdad   :  { %v4923_v53 = vpop.xlane.xlu1 %4922 }
 0xdae   :  { %7555 = vrcp.f32 %v4923_v53  ;;  %v4962_v3 = vpack.c.bf16 %v4943_v34, %v4943_v34  ;;  %v7357_v53 = vld [vmem:[%s9831_s7] sm:$0xff]  }
 0xdb0   :  { %v7552_v15 = vpop.eup %7551  ;;  %7167 = vmatmul.mubr.msk.bf16.vlgmr.msra.gmra.mrb[180].mxu1 %vm998_vm3, %v4962_v3  ;;  %v7358_v3 = vld [vmem:[%s9831_s7 + $0x8] sm:$0xff]  }
 0xdb1   :  { %v4945_v54 = vmul.f32 %v7552_v15, %v9293_v14  ;;  %7177 = vmatpush3.bf16.msra.mxu1 %v5074_v51  ;;  %v4926_v19 = vpop.xlane.xlu0 %4925  ;;  %7178 = vmatprep.mubr.msk.bf16.mxu1 %vm7632_vm2, %v9861_v28  ;;  %v5309_v4 = vpop.permute.xlu1 %5308 }
 0xdb2   :  { %7557 = vrcp.f32 %v4926_v19  ;;  %7188 = vmatprep.subr.bf16.mxu1 %v9861_v28  ;;  %v5314_v22 = vsel %vm1582_vm4, %v5309_v4, 0 }
 0xdb3   :  { %v7554_v55 = vpop.eup %7553  ;;  %v4963_v9 = vpack.c.bf16 %v4945_v54, %v4945_v54 }
 0xdb4   :  { %v4947_v6 = vmul.f32 %v7554_v55, %v9297_v31 }
 0xdb5   :  { %7173 = vmatmul.mubr.msk.bf16.vlgmr.msra.gmra.mrb[180].mxu0 %vm998_vm3, %v4963_v9  ;;  %v5261_v31 = vpop.permute.xlu0 %5260  ;;  %v9868_v9 = vld [vmem:[#allocation15_spill] sm:$0xff] }
 0xdb6   :  { %7183 = vmatpush3.bf16.msra.mxu0 %v5122_v38  ;;  %v4964_v20 = vpack.c.bf16 %v4947_v6, %v4947_v6  ;;  %7184 = vmatprep.mubr.msk.bf16.mxu0 %vm7632_vm2, %v9861_v28 }
 0xdb7   :  { %7194 = vmatprep.subr.bf16.mxu0 %v9861_v28 }
 0xdb8   :  { %v7556_v32 = vpop.eup %7555  ;;  %7179 = vmatmul.mubr.msk.bf16.vlgmr.msra.gmra.mrb[184].mxu1 %vm998_vm3, %v4964_v20 }
 0xdb9   :  { %v4949_v18 = vmul.f32 %v7556_v32, %v9301_v11  ;;  %7189 = vmatpush3.bf16.msra.mxu1 %v5170_v12  ;;  %7190 = vmatprep.mubr.msk.bf16.mxu1 %vm7632_vm2, %v9861_v28  ;;  %v5266_v11 = vsel %vm1582_vm4, %v5261_v31, 0 }
 0xdba   :  { %7200 = vmatprep.subr.bf16.mxu1 %v9861_v28 }
 0xdbb   :  { %v4965_v25 = vpack.c.bf16 %v4949_v18, %v4949_v18  ;;  %v9869_v18 = vld [vmem:[#allocation16_spill] sm:$0xff] }
 0xdbc   :  { %v7558_v14 = vpop.eup %7557 }
 0xdbd   :  { %v4951_v43 = vmul.f32 %v7558_v14, %v9305_v36  ;;  %7185 = vmatmul.mubr.msk.bf16.vlgmr.msra.gmra.mrb[184].mxu0 %vm998_vm3, %v4965_v25 }
 0xdbe   :  { %7195 = vmatpush3.bf16.msra.mxu0 %v5218_v16  ;;  %7196 = vmatprep.mubr.msk.bf16.mxu0 %vm7632_vm2, %v9861_v28 }
 0xdbf   :  { %v4966_v30 = vpack.c.bf16 %v4951_v43, %v4951_v43  ;;  %7206 = vmatprep.subr.bf16.mxu0 %v9861_v28 }
 0xdc1   :  { %7191 = vmatmul.mubr.msk.bf16.vlgmr.msra.gmra.mrb[188].mxu1 %vm998_vm3, %v4966_v30 }
 0xdc2   :  { %7201 = vmatpush3.bf16.msra.mxu1 %v5266_v11  ;;  %7202 = vmatprep.mubr.msk.bf16.mxu1 %vm7632_vm2, %v9861_v28 }
 0xdc3   :  { %7212 = vmatprep.subr.bf16.mxu1 %v9861_v28 }
 0xde2   :  { %v4929_v36 = vpop.xlane.xlu1 %4928 }
 0xde3   :  { %7559 = vrcp.f32 %v4929_v36 }
 0xde6   :  { %v4932_v47 = vpop.xlane.xlu0 %4931  ;;  %v4935_v57 = vpop.xlane.xlu1 %4934 }
 0xde7   :  { %7561 = vrcp.f32 %v4932_v47 }
 0xde8   :  { %7563 = vrcp.f32 %v4935_v57  ;;  %v9870_v57 = vld [vmem:[#allocation17_spill] sm:$0xff] }
 0xdea   :  { %v4938_v33 = vpop.xlane.xlu1 %4937 }
 0xdeb   :  { %7565 = vrcp.f32 %v4938_v33 }
 0xded   :  { %v7560_v63 = vpop.eup %7559 }
 0xdee   :  { %v4953_v45 = vmul.f32 %v7560_v63, %v9319_v17  ;;  %v5405_v59 = vpop.permute.xlu1 %5404 }
 0xdf0   :  { %v4967_v29 = vpack.c.bf16 %v4953_v45, %v4953_v45 }
 0xdf1   :  { %v7562_v46 = vpop.eup %7561 }
 0xdf2   :  { %v7564_v62 = vpop.eup %7563  ;;  %v4955_v44 = vmul.f32 %v7562_v46, %v9321_v26  ;;  %7197 = vmatmul.mubr.msk.bf16.vlgmr.msra.gmra.mrb[188].mxu0 %vm998_vm3, %v4967_v29  ;;  %v3163_v49 = vpop.permute.xlu1 %3162  ;;  %v9871_v46 = vld [vmem:[#allocation18_spill] sm:$0xff] }
 0xdf3   :  { %7207 = vmatpush3.bf16.msra.mxu0 %v5314_v22  ;;  %3192 = vst.msk [vmem:[#allocation2 + $0x8] sm:$0xff] %vm3190_vm6, %v3163_v49  ;;  %7208 = vmatprep.mubr.msk.bf16.mxu0 %vm7632_vm2, %v9861_v28  ;;  %v4957_v48 = vmul.f32 %v7564_v62, %v9327_v7  ;;  %v5410_v7 = vsel %vm1582_vm4, %v5405_v59, 0 }
 0xdf4   :  { %v4968_v24 = vpack.c.bf16 %v4955_v44, %v4955_v44  ;;  %7218 = vmatprep.subr.bf16.mxu0 %v9861_v28 }
 0xdf5   :  { %v7566_v17 = vpop.eup %7565  ;;  %v4969_v60 = vpack.c.bf16 %v4957_v48, %v4957_v48 }
 0xdf6   :  { %7203 = vmatmul.mubr.msk.bf16.vlgmr.msra.gmra.mrb[192].mxu1 %vm998_vm3, %v4968_v24  ;;  %v4941_v61 = vpop.xlane.xlu0 %4940  ;;  %v4314_v26 = vpop.permute.xlu1 %4313  ;;  %v4959_v10 = vmul.f32 %v7566_v17, %v9333_v13 }
 0xdf7   :  { %7567 = vrcp.f32 %v4941_v61  ;;  %4343 = vst.msk [vmem:[#allocation2 + $0x8] sm:$0xff] %vm4341_vm7, %v4314_v26  ;;  %7214 = vmatprep.mubr.msk.bf16.mxu1 %vm7632_vm2, %v9861_v28 }
 0xdf8   :  { %v4970_v35 = vpack.c.bf16 %v4959_v10, %v4959_v10 }
 0xdfa   :  { %v5357_v8 = vpop.permute.xlu0 %5356  ;;  %7209 = vmatmul.mubr.msk.bf16.vlgmr.msra.gmra.mrb[192].mxu0 %vm998_vm3, %v4969_v60  ;;  %v3167_v23 = vpop.permute.xlu1 %3166 }
 0xdfb   :  { %v5362_v40 = vsel %vm1582_vm4, %v5357_v8, 0  ;;  %7219 = vmatpush3.bf16.msra.mxu0 %v5410_v7  ;;  %3194 = vst.msk [vmem:[#allocation2 + $0x18] sm:$0xff] %vm3190_vm6, %v3167_v23  ;;  %7220 = vmatprep.mubr.msk.bf16.mxu0 %vm7632_vm2, %v9861_v28  ;;  %vm6234_vm4 = vcmask 1048324  }
 0xdfc   :  { %7213 = vmatpush3.bf16.msra.mxu1 %v5362_v40  ;;  %7248 = vmatprep.subr.bf16.mxu0 %v9861_v28 }
 0xdfd   :  { %7224 = vmatprep.subr.bf16.mxu1 %v9861_v28 }
 0xdfe   :  { %v3161_v13 = vpop.permute.xlu0 %3160  ;;  %v4318_v52 = vpop.permute.xlu1 %4317 }
 0xdff   :  { %3191 = vst.msk [vmem:[#allocation2] sm:$0xff] %vm3190_vm6, %v3161_v13  ;;  %7215 = vmatmul.mubr.msk.bf16.vlgmr.msra.gmra.mrb[196].mxu1 %vm998_vm3, %v4970_v35 }
 0xe00   :  { %4345 = vst.msk [vmem:[#allocation2 + $0x18] sm:$0xff] %vm4341_vm7, %v4318_v52  ;;  %7228 = vmatprep.mubr.msk.bf16.mxu1 %vm7632_vm2, %v9861_v28  ;;  %7225 = vmatpush3.bf16.msra.mxu1 %v7357_v53 }
 0xe01   :  { %v7568_v37 = vpop.eup %7567  ;;  %7226 = vmatprep.subr.bf16.mxu1 %v9861_v28 }
 0xe02   :  { %v4961_v27 = vmul.f32 %v7568_v37, %v9338_v1  ;;  %v4312_v50 = vpop.permute.xlu0 %4311  ;;  %v3171_v56 = vpop.permute.xlu1 %3170 }
 0xe03   :  { %4342 = vst.msk [vmem:[#allocation2] sm:$0xff] %vm4341_vm7, %v4312_v50 }
 0xe04   :  { %3196 = vst.msk [vmem:[#allocation2 + $0x28] sm:$0xff] %vm3190_vm6, %v3171_v56  ;;  %v4971_v2 = vpack.c.bf16 %v4961_v27, %v4961_v27  ;;  %7227 = vmatpush3.bf16.msra.mxu1 %v7358_v3 }
 0xe05   :  { %7272 = vmatprep.subr.bf16.mxu1 %v9861_v28 }
 0xe06   :  { %v3165_v21 = vpop.permute.xlu0 %3164  ;;  %7221 = vmatmul.mubr.msk.bf16.vlgmr.msra.gmra.mrb[196].mxu0 %vm998_vm3, %v4971_v2  ;;  %v4322_v58 = vpop.permute.xlu1 %4321  ;;  %vm6216_vm3 = vcmask 785923  }
 0xe07   :  { %3193 = vst.msk [vmem:[#allocation2 + $0x10] sm:$0xff] %vm3190_vm6, %v3165_v21  ;;  %7252 = vmatprep.mubr.msk.bf16.mxu0 %vm7632_vm2, %v9861_v28 }
 0xe08   :  { %4347 = vst.msk [vmem:[#allocation2 + $0x28] sm:$0xff] %vm4341_vm7, %v4322_v58 }
 0xe0a   :  { %v4316_v0 = vpop.permute.xlu0 %4315 }
 0xe0b   :  { %4344 = vst.msk [vmem:[#allocation2 + $0x10] sm:$0xff] %vm4341_vm7, %v4316_v0 }
 0xe0e   :  { %v3169_v1 = vpop.permute.xlu0 %3168 }
 0xe0f   :  { %3195 = vst.msk [vmem:[#allocation2 + $0x20] sm:$0xff] %vm3190_vm6, %v3169_v1 }
 0xe12   :  { %v4320_v34 = vpop.permute.xlu0 %4319 }
 0xe13   :  { %4346 = vst.msk [vmem:[#allocation2 + $0x20] sm:$0xff] %vm4341_vm7, %v4320_v34 }
 0xe83   :  { %v5014_v15 = vpop.f32.mrb[180].mxu1 }
 0xe84   :  { %v7168_v51 = vpop.f32.mrb[181].mxu1  ;;  %5462 = vrot.lane.b32.xlu0 %v5014_v15, %s7638_s0 }
 0xe85   :  { %v5017_v54 = vpop.f32.mrb[182].mxu1 }
 0xe86   :  { %v7169_v19 = vpop.f32.mrb[183].mxu1 }
 0xe88   :  { %v5062_v55 = vpop.f32.mrb[180].mxu0  ;;  %3172 = vrot.lane.b32.xlu0 %v9868_v9, %s7636_s24 }
 0xe89   :  { %5464 = vrot.lane.b32.xlu1 %v5062_v55, %s7638_s0  ;;  %v7174_v6 = vpop.f32.mrb[181].mxu0 }
 0xe8a   :  { %v5065_v38 = vpop.f32.mrb[182].mxu0 }
 0xe8b   :  { %v7175_v20 = vpop.f32.mrb[183].mxu0  ;;  %v5110_v32 = vpop.f32.mrb[184].mxu1 }
 0xe8c   :  { %v7180_v12 = vpop.f32.mrb[185].mxu1  ;;  %5466 = vrot.lane.b32.xlu0 %v5110_v32, %s7638_s0 }
 0xe8d   :  { %3174 = vrot.lane.b32.xlu1 %v9869_v18, %s7636_s24  ;;  %v5113_v25 = vpop.f32.mrb[186].mxu1 }
 0xe8e   :  { %v7181_v14 = vpop.f32.mrb[187].mxu1 }
 0xe90   :  { %v5158_v16 = vpop.f32.mrb[184].mxu0  ;;  %4323 = vrot.lane.b32.xlu0 %v9218_v42, %s7637_s25 }
 0xe91   :  { %5468 = vrot.lane.b32.xlu1 %v5158_v16, %s7638_s0  ;;  %v7186_v43 = vpop.f32.mrb[185].mxu0  ;;  %v9872_v16 = vld [vmem:[#allocation3_spill] sm:$0xff] }
 0xe92   :  { %v5161_v31 = vpop.f32.mrb[186].mxu0  ;;  %v5524_v43 = vsub.s32 5, %v9872_v16 }
 0xe93   :  { %v7187_v30 = vpop.f32.mrb[187].mxu0  ;;  %v9511_v31 = vld [vmem:[%s9830_s10] sm:$0xff] }
 0xe94   :  { %v5206_v11 = vpop.f32.mrb[188].mxu1  ;;  %v5525_v30 = vrot.slane %v9511_v31, %v5524_v43 }
 0xe95   :  { %v7192_v4 = vpop.f32.mrb[189].mxu1  ;;  %5470 = vrot.lane.b32.xlu0 %v5206_v11, %s7638_s0  ;;  %4325 = vrot.lane.b32.xlu1 %v9220_v5, %s7637_s25 }
 0xe96   :  { %v5209_v36 = vpop.f32.mrb[190].mxu1 }
 0xe97   :  { %v7193_v47 = vpop.f32.mrb[191].mxu1 }
 0xe99   :  { %3176 = vrot.lane.b32.xlu0 %v9870_v57, %s7636_s24  ;;  %v9873_v57 = vld [vmem:[#allocation10_spill] sm:$0xff] }
 0xec5   :  { %v5254_v33 = vpop.f32.mrb[188].mxu0 }
 0xec6   :  { %5472 = vrot.lane.b32.xlu1 %v5254_v33, %s7638_s0  ;;  %v7198_v42 = vpop.f32.mrb[189].mxu0 }
 0xec7   :  { %v5257_v63 = vpop.f32.mrb[190].mxu0 }
 0xec8   :  { %v7199_v45 = vpop.f32.mrb[191].mxu0 }
 0xec9   :  { %v5302_v59 = vpop.f32.mrb[192].mxu1  ;;  %v9874_v45 = vld [vmem:[#allocation11_spill] sm:$0xff] }
 0xeca   :  { %v7204_v29 = vpop.f32.mrb[193].mxu1  ;;  %5474 = vrot.lane.b32.xlu0 %v5302_v59, %s7638_s0  ;;  %3178 = vrot.lane.b32.xlu1 %v9871_v46, %s7636_s24 }
 0xecb   :  { %v5305_v62 = vpop.f32.mrb[194].mxu1 }
 0xecc   :  { %v7205_v5 = vpop.f32.mrb[195].mxu1 }
 0xecd   :  { %v5350_v22 = vpop.f32.mrb[192].mxu0 }
 0xece   :  { %4327 = vrot.lane.b32.xlu0 %v9222_v39, %s7637_s25  ;;  %5476 = vrot.lane.b32.xlu1 %v5350_v22, %s7638_s0  ;;  %v7210_v44 = vpop.f32.mrb[193].mxu0 }
 0xecf   :  { %v5353_v49 = vpop.f32.mrb[194].mxu0 }
 0xed0   :  { %v7211_v48 = vpop.f32.mrb[195].mxu0  ;;  %v9875_v49 = vld [vmem:[#allocation12_spill] sm:$0xff] }
 0xed2   :  { %v5398_v24 = vpop.f32.mrb[196].mxu1  ;;  %4329 = vrot.lane.b32.xlu1 %v9224_v41, %s7637_s25 }
 0xed3   :  { %5478 = vrot.lane.b32.xlu0 %v5398_v24, %s7638_s0  ;;  %v7216_v17 = vpop.f32.mrb[197].mxu1 }
 0xed4   :  { %v5401_v61 = vpop.f32.mrb[198].mxu1 }
 0xed5   :  { %v7217_v26 = vpop.f32.mrb[199].mxu1  ;;  %v9876_v61 = vld [vmem:[#allocation13_spill] sm:$0xff] }
 0xed9   :  { %v5446_v60 = vpop.f32.mrb[196].mxu0 }
 0xeda   :  { %5480 = vrot.lane.b32.xlu1 %v5446_v60, %s7638_s0  ;;  %v7222_v10 = vpop.f32.mrb[197].mxu0 }
 0xedb   :  { %v5449_v7 = vpop.f32.mrb[198].mxu0 }
 0xedc   :  { %v7223_v39 = vpop.f32.mrb[199].mxu0 }
 0xef6   :  { %v5463_v8 = vpop.permute.xlu0 %5462 }
 0xef7   :  { %5493 = vst.msk [vmem:[#allocation2] sm:$0xff] %vm5492_vm8, %v5463_v8 }
 0xefa   :  { %v3173_v23 = vpop.permute.xlu0 %3172 }
 0xefb   :  { %3197 = vst.msk [vmem:[#allocation2 + $0x30] sm:$0xff] %vm3190_vm6, %v3173_v23  ;;  %v5465_v40 = vpop.permute.xlu1 %5464 }
 0xefc   :  { %5494 = vst.msk [vmem:[#allocation2 + $0x8] sm:$0xff] %vm5492_vm8, %v5465_v40  ;;  %v9877_v40 = vld [vmem:[#allocation4_spill] sm:$0xff] }
 0xefe   :  { %v5467_v41 = vpop.permute.xlu0 %5466  ;;  %v5503_v37 = vld [vmem:[#allocation2] sm:$0xff] }
 0xeff   :  { %5495 = vst.msk [vmem:[#allocation2 + $0x10] sm:$0xff] %vm5492_vm8, %v5467_v41  ;;  %v3175_v35 = vpop.permute.xlu1 %3174 }
 0xf00   :  { %3198 = vst.msk [vmem:[#allocation2 + $0x38] sm:$0xff] %vm3190_vm6, %v3175_v35 }
 0xf02   :  { %v4324_v13 = vpop.permute.xlu0 %4323 }
 0xf03   :  { %4348 = vst.msk [vmem:[#allocation2 + $0x30] sm:$0xff] %vm4341_vm7, %v4324_v13  ;;  %v5469_v52 = vpop.permute.xlu1 %5468  ;;  %v5504_v27 = vld [vmem:[#allocation2 + $0x8] sm:$0xff] }
 0xf04   :  { %5496 = vst.msk [vmem:[#allocation2 + $0x18] sm:$0xff] %vm5492_vm8, %v5469_v52  ;;  %v5513_v50 = vpack.c.bf16 %v5504_v27, %v5503_v37  ;;  %v9878_v52 = vld [vmem:[#allocation5_spill] sm:$0xff] }
 0xf06   :  { %7229 = vmatmul.mubr.msk.bf16.vlgmr.msra.gmra.mrb[200].mxu1 %vm284_vm1, %v5513_v50  ;;  %v5505_v58 = vld [vmem:[#allocation2 + $0x10] sm:$0xff] }
 0xf07   :  { %v5471_v56 = vpop.permute.xlu0 %5470  ;;  %v4326_v2 = vpop.permute.xlu1 %4325  ;;  %7232 = vmatprep.mubr.msk.bf16.mxu1 %vm7632_vm2, %v9861_v28 }
 0xf08   :  { %5497 = vst.msk [vmem:[#allocation2 + $0x20] sm:$0xff] %vm5492_vm8, %v5471_v56 }
 0xf09   :  { %4349 = vst.msk [vmem:[#allocation2 + $0x38] sm:$0xff] %vm4341_vm7, %v4326_v2 }
 0xf0b   :  { %v3177_v21 = vpop.permute.xlu0 %3176  ;;  %v5506_v0 = vld [vmem:[#allocation2 + $0x18] sm:$0xff] }
 0xf0c   :  { %3199 = vst.msk [vmem:[#allocation2 + $0x40] sm:$0xff] %vm3190_vm6, %v3177_v21  ;;  %v5514_v1 = vpack.c.bf16 %v5506_v0, %v5505_v58  ;;  %v9879_v0 = vld [vmem:[#allocation6_spill] sm:$0xff] }
 0xf0e   :  { %7233 = vmatmul.mubr.msk.bf16.gmra.mrb[204].mxu1 %vm284_vm1, %v5514_v1 }
 0xf0f   :  { %7236 = vmatprep.mubr.msk.bf16.mxu1 %vm7632_vm2, %v9861_v28  ;;  %v5507_v54 = vld [vmem:[#allocation2 + $0x20] sm:$0xff] }
 0xf38   :  { %v5473_v34 = vpop.permute.xlu1 %5472 }
 0xf39   :  { %5498 = vst.msk [vmem:[#allocation2 + $0x28] sm:$0xff] %vm5492_vm8, %v5473_v34 }
 0xf3c   :  { %v5475_v53 = vpop.permute.xlu0 %5474  ;;  %v3179_v3 = vpop.permute.xlu1 %3178 }
 0xf3d   :  { %5499 = vst.msk [vmem:[#allocation2 + $0x30] sm:$0xff] %vm5492_vm8, %v5475_v53 }
 0xf3e   :  { %3200 = vst.msk [vmem:[#allocation2 + $0x48] sm:$0xff] %vm3190_vm6, %v3179_v3  ;;  %v9880_v3 = vld [vmem:[#allocation7_spill] sm:$0xff]  ;;  %vm6218_vm6 = vcmask 782848  }
 0xf40   :  { %v4328_v15 = vpop.permute.xlu0 %4327  ;;  %v5477_v51 = vpop.permute.xlu1 %5476  ;;  %v5508_v19 = vld [vmem:[#allocation2 + $0x28] sm:$0xff] }
 0xf41   :  { %4350 = vst.msk [vmem:[#allocation2 + $0x40] sm:$0xff] %vm4341_vm7, %v4328_v15  ;;  %v5515_v55 = vpack.c.bf16 %v5508_v19, %v5507_v54 }
 0xf42   :  { %5500 = vst.msk [vmem:[#allocation2 + $0x38] sm:$0xff] %vm5492_vm8, %v5477_v51 }
 0xf43   :  { %7237 = vmatmul.mubr.msk.bf16.gmra.mrb[208].mxu1 %vm284_vm1, %v5515_v55 }
 0xf44   :  { %v4330_v9 = vpop.permute.xlu1 %4329  ;;  %7240 = vmatprep.mubr.msk.bf16.mxu1 %vm7632_vm2, %v9861_v28  ;;  %v5509_v38 = vld [vmem:[#allocation2 + $0x30] sm:$0xff] }
 0xf45   :  { %4351 = vst.msk [vmem:[#allocation2 + $0x48] sm:$0xff] %vm4341_vm7, %v4330_v9  ;;  %v5479_v6 = vpop.permute.xlu0 %5478  ;;  %vm6236_vm7 = vcmask 1046272  }
 0xf46   :  { %5501 = vst.msk [vmem:[#allocation2 + $0x40] sm:$0xff] %vm5492_vm8, %v5479_v6 }
 0xf49   :  { %v5510_v20 = vld [vmem:[#allocation2 + $0x38] sm:$0xff] }
 0xf4a   :  { %v5516_v32 = vpack.c.bf16 %v5510_v20, %v5509_v38  ;;  %v9881_v38 = vld [vmem:[#allocation8_spill] sm:$0xff] }
 0xf4c   :  { %7241 = vmatmul.mubr.msk.bf16.gmra.mrb[212].mxu1 %vm284_vm1, %v5516_v32  ;;  %v5481_v12 = vpop.permute.xlu1 %5480 }
 0xf4d   :  { %7244 = vmatprep.mubr.msk.bf16.mxu1 %vm7632_vm2, %v9861_v28  ;;  %5502 = vst.msk [vmem:[#allocation2 + $0x48] sm:$0xff] %vm5492_vm8, %v5481_v12  ;;  %v5511_v18 = vld [vmem:[#allocation2 + $0x40] sm:$0xff] }
 0xf54   :  { %v5512_v25 = vld [vmem:[#allocation2 + $0x48] sm:$0xff] }
 0xf55   :  { %v5517_v14 = vpack.c.bf16 %v5512_v25, %v5511_v18  ;;  %v9882_v18 = vld [vmem:[#allocation9_spill] sm:$0xff] }
 0xf57   :  { %7245 = vmatmul.mubr.msk.bf16.gmra.mrb[216].mxu1 %vm284_vm1, %v5517_v14 }
 0xf58   :  { %7288 = vmatprep.mubr.msk.bf16.mxu1 %vm7632_vm2, %v9861_v28 }
 0xfd9   :  { %v5587_v11 = vpop.f32.mrb[200].mxu1 }
 0xfda   :  { %v5588_v4 = vadd.f32 %v5587_v11, %v5525_v30  ;;  %v7230_v36 = vpop.f32.mrb[201].mxu1 }
 0xfdb   :  { %v5590_v47 = vpop.f32.mrb[202].mxu1 }
 0xfdc   :  { %v9515_v33 = vadd.f32 %v5588_v4, %v9873_v57  ;;  %v5591_v42 = vadd.f32 %v5590_v47, %v5525_v30  ;;  %v7231_v63 = vpop.f32.mrb[203].mxu1 }
 0xfde   :  { %v9518_v59 = vadd.f32 %v5591_v42, %v9874_v45  ;;  %v5636_v29 = vsel %vm284_vm1, %v9515_v33, 0.0 }
 0xfdf   :  { %5637 = vadd.xlane.f32.xlu0 %v5636_v29 }
 0xfe0   :  { %v5639_v46 = vsel %vm284_vm1, %v9518_v59, 0.0 }
 0xfe1   :  { %v5595_v62 = vpop.f32.mrb[204].mxu1  ;;  %5640 = vadd.xlane.f32.xlu1 %v5639_v46 }
 0xfe2   :  { %v5596_v5 = vadd.f32 %v5595_v62, %v5525_v30  ;;  %v7234_v22 = vpop.f32.mrb[205].mxu1 }
 0xfe3   :  { %v5598_v44 = vpop.f32.mrb[206].mxu1 }
 0xfe4   :  { %v9525_v48 = vadd.f32 %v5596_v5, %v9875_v49  ;;  %v5599_v24 = vadd.f32 %v5598_v44, %v5525_v30  ;;  %v7235_v17 = vpop.f32.mrb[207].mxu1 }
 0xfe6   :  { %v9528_v26 = vadd.f32 %v5599_v24, %v9876_v61  ;;  %v5642_v60 = vsel %vm284_vm1, %v9525_v48, 0.0 }
 0xfe7   :  { %5643 = vadd.xlane.f32.xlu0 %v5642_v60 }
 0xfe8   :  { %v5645_v10 = vsel %vm284_vm1, %v9528_v26, 0.0 }
 0xfeb   :  { %5646 = vadd.xlane.f32.xlu0 %v5645_v10  ;;  %v7359_v10 = vld [vmem:[%s9832_s8] sm:$0xff]  }
 0xfec   :  { %7249 = vmatpush3.bf16.msra.mxu0 %v7359_v10 }
 0xfed   :  { %7250 = vmatprep.subr.bf16.mxu0 %v9861_v28 }
0x1016   :  { %v5603_v7 = vpop.f32.mrb[208].mxu1 }
0x1017   :  { %v5604_v39 = vadd.f32 %v5603_v7, %v5525_v30  ;;  %v7238_v8 = vpop.f32.mrb[209].mxu1  ;;  %v7360_v7 = vld [vmem:[%s9832_s8 + $0x8] sm:$0xff]  }
0x1018   :  { %v5606_v23 = vpop.f32.mrb[210].mxu1  ;;  %7251 = vmatpush3.bf16.msra.mxu0 %v7360_v7 }
0x1019   :  { %v9535_v41 = vadd.f32 %v5604_v39, %v9877_v40  ;;  %v5607_v35 = vadd.f32 %v5606_v23, %v5525_v30  ;;  %v7239_v13 = vpop.f32.mrb[211].mxu1 }
0x101b   :  { %v9538_v37 = vadd.f32 %v5607_v35, %v9878_v52  ;;  %v5648_v27 = vsel %vm284_vm1, %v9535_v41, 0.0 }
0x101c   :  { %5649 = vadd.xlane.f32.xlu0 %v5648_v27 }
0x101d   :  { %v5651_v50 = vsel %vm284_vm1, %v9538_v37, 0.0 }
0x101e   :  { %5652 = vadd.xlane.f32.xlu1 %v5651_v50 }
0x101f   :  { %v5611_v56 = vpop.f32.mrb[212].mxu1 }
0x1020   :  { %v5612_v2 = vadd.f32 %v5611_v56, %v5525_v30  ;;  %v7242_v21 = vpop.f32.mrb[213].mxu1 }
0x1021   :  { %v5614_v58 = vpop.f32.mrb[214].mxu1 }
0x1022   :  { %v9545_v1 = vadd.f32 %v5612_v2, %v9879_v0  ;;  %v5615_v34 = vadd.f32 %v5614_v58, %v5525_v30  ;;  %v7243_v53 = vpop.f32.mrb[215].mxu1 }
0x1024   :  { %v9548_v15 = vadd.f32 %v5615_v34, %v9880_v3  ;;  %v5654_v51 = vsel %vm284_vm1, %v9545_v1, 0.0 }
0x1025   :  { %5655 = vadd.xlane.f32.xlu0 %v5654_v51 }
0x1026   :  { %v5657_v54 = vsel %vm284_vm1, %v9548_v15, 0.0 }
0x1027   :  { %5658 = vadd.xlane.f32.xlu1 %v5657_v54 }
0x102a   :  { %v5619_v19 = vpop.f32.mrb[216].mxu1 }
0x102b   :  { %v5620_v55 = vadd.f32 %v5619_v19, %v5525_v30  ;;  %v7246_v9 = vpop.f32.mrb[217].mxu1 }
0x102c   :  { %v5622_v6 = vpop.f32.mrb[218].mxu1 }
0x102d   :  { %v9555_v20 = vadd.f32 %v5620_v55, %v9881_v38  ;;  %v5623_v32 = vadd.f32 %v5622_v6, %v5525_v30  ;;  %v7247_v12 = vpop.f32.mrb[219].mxu1 }
0x102f   :  { %v9558_v25 = vadd.f32 %v5623_v32, %v9882_v18  ;;  %v5660_v14 = vsel %vm284_vm1, %v9555_v20, 0.0 }
0x1030   :  { %5661 = vadd.xlane.f32.xlu0 %v5660_v14 }
0x1031   :  { %v5663_v43 = vsel %vm284_vm1, %v9558_v25, 0.0 }
0x1032   :  { %5664 = vadd.xlane.f32.xlu1 %v5663_v43 }
0x106c   :  { %v5638_v11 = vpop.xlane.xlu0 %5637 }
0x106d   :  { %v5666_v4 = vmul.f32 0.03125, %v5638_v11 }
0x106e   :  { %v5641_v36 = vpop.xlane.xlu1 %5640 }
0x106f   :  { %v9565_v47 = vsub.f32 %v9515_v33, %v5666_v4  ;;  %v5667_v57 = vmul.f32 0.03125, %v5641_v36 }
0x1071   :  { %v9568_v30 = vsub.f32 %v9518_v59, %v5667_v57  ;;  %v5686_v42 = vmul.f32 %v9565_v47, %v9565_v47 }
0x1073   :  { %v5696_v63 = vsel %vm284_vm1, %v5686_v42, 0.0  ;;  %v5687_v45 = vmul.f32 %v9568_v30, %v9568_v30 }
0x1074   :  { %v5644_v29 = vpop.xlane.xlu0 %5643  ;;  %5697 = vadd.xlane.f32.xlu0 %v5696_v63 }
0x1075   :  { %v5668_v46 = vmul.f32 0.03125, %v5644_v29  ;;  %v5699_v62 = vsel %vm284_vm1, %v5687_v45, 0.0 }
0x1076   :  { %5700 = vadd.xlane.f32.xlu1 %v5699_v62  ;;  %v5768_v62 = vsub.s32 6, %v9872_v16 }
0x1077   :  { %v9577_v5 = vsub.f32 %v9525_v48, %v5668_v46 }
0x1078   :  { %v5647_v22 = vpop.xlane.xlu0 %5646 }
0x1079   :  { %v5669_v44 = vmul.f32 0.03125, %v5647_v22  ;;  %v5688_v49 = vmul.f32 %v9577_v5, %v9577_v5 }
0x107b   :  { %v9582_v24 = vsub.f32 %v9528_v26, %v5669_v44  ;;  %v5702_v17 = vsel %vm284_vm1, %v5688_v49, 0.0 }
0x107c   :  { %5703 = vadd.xlane.f32.xlu0 %v5702_v17  ;;  %v9633_v17 = vrot.slane %v9511_v31, %v5768_v62 }
0x107d   :  { %v5689_v61 = vmul.f32 %v9582_v24, %v9582_v24 }
0x107f   :  { %v5705_v60 = vsel %vm284_vm1, %v5689_v61, 0.0  ;;  %v5782_v61 = vsub.s32 7, %v9872_v16 }
0x1080   :  { %5706 = vadd.xlane.f32.xlu1 %v5705_v60 }
0x10a9   :  { %v5650_v39 = vpop.xlane.xlu0 %5649 }
0x10aa   :  { %v5670_v8 = vmul.f32 0.03125, %v5650_v39 }
0x10ab   :  { %v5653_v23 = vpop.xlane.xlu1 %5652 }
0x10ac   :  { %v9596_v40 = vsub.f32 %v9535_v41, %v5670_v8  ;;  %v5671_v35 = vmul.f32 0.03125, %v5653_v23 }
0x10ae   :  { %v9599_v13 = vsub.f32 %v9538_v37, %v5671_v35  ;;  %v5690_v52 = vmul.f32 %v9596_v40, %v9596_v40  ;;  %v9640_v35 = vrot.slane %v9511_v31, %v5782_v61 }
0x10b0   :  { %v5708_v27 = vsel %vm284_vm1, %v5690_v52, 0.0  ;;  %v5691_v50 = vmul.f32 %v9599_v13, %v9599_v13 }
0x10b1   :  { %5709 = vadd.xlane.f32.xlu0 %v5708_v27 }
0x10b2   :  { %v5656_v56 = vpop.xlane.xlu0 %5655  ;;  %v5711_v21 = vsel %vm284_vm1, %v5691_v50, 0.0 }
0x10b3   :  { %v5672_v2 = vmul.f32 0.03125, %v5656_v56  ;;  %5712 = vadd.xlane.f32.xlu1 %v5711_v21 }
0x10b4   :  { %v5659_v58 = vpop.xlane.xlu1 %5658 }
0x10b5   :  { %v9608_v0 = vsub.f32 %v9545_v1, %v5672_v2  ;;  %v5673_v34 = vmul.f32 0.03125, %v5659_v58 }
0x10b7   :  { %v9611_v53 = vsub.f32 %v9548_v15, %v5673_v34  ;;  %v5692_v3 = vmul.f32 %v9608_v0, %v9608_v0 }
0x10b9   :  { %v5714_v51 = vsel %vm284_vm1, %v5692_v3, 0.0  ;;  %v5693_v54 = vmul.f32 %v9611_v53, %v9611_v53 }
0x10ba   :  { %5715 = vadd.xlane.f32.xlu0 %v5714_v51 }
0x10bb   :  { %v5717_v19 = vsel %vm284_vm1, %v5693_v54, 0.0 }
0x10bc   :  { %5718 = vadd.xlane.f32.xlu1 %v5717_v19 }
0x10bd   :  { %v5662_v55 = vpop.xlane.xlu0 %5661 }
0x10be   :  { %v5674_v9 = vmul.f32 0.03125, %v5662_v55 }
0x10bf   :  { %v5665_v6 = vpop.xlane.xlu1 %5664 }
0x10c0   :  { %v9620_v38 = vsub.f32 %v9555_v20, %v5674_v9  ;;  %v5675_v32 = vmul.f32 0.03125, %v5665_v6 }
0x10c2   :  { %v9623_v12 = vsub.f32 %v9558_v25, %v5675_v32  ;;  %v5694_v18 = vmul.f32 %v9620_v38, %v9620_v38 }
0x10c4   :  { %v5720_v14 = vsel %vm284_vm1, %v5694_v18, 0.0  ;;  %v5695_v43 = vmul.f32 %v9623_v12, %v9623_v12 }
0x10c5   :  { %5721 = vadd.xlane.f32.xlu0 %v5720_v14 }
0x10c6   :  { %v5723_v11 = vsel %vm284_vm1, %v5695_v43, 0.0 }
0x10c7   :  { %5724 = vadd.xlane.f32.xlu1 %v5723_v11 }
0x1101   :  { %v5698_v4 = vpop.xlane.xlu0 %5697 }
0x1102   :  { %v5726_v36 = vmul.f32 0.03125, %v5698_v4 }
0x1103   :  { %v5701_v57 = vpop.xlane.xlu1 %5700 }
0x1104   :  { %v5736_v42 = vadd.f32 1e-05, %v5726_v36  ;;  %v5727_v63 = vmul.f32 0.03125, %v5701_v57 }
0x1106   :  { %7569 = vrsqrt.f32 %v5736_v42  ;;  %v5737_v45 = vadd.f32 1e-05, %v5727_v63 }
0x1108   :  { %7571 = vrsqrt.f32 %v5737_v45 }
0x1109   :  { %v5704_v29 = vpop.xlane.xlu0 %5703 }
0x110a   :  { %v5728_v46 = vmul.f32 0.03125, %v5704_v29 }
0x110c   :  { %v5738_v22 = vadd.f32 1e-05, %v5728_v46 }
0x110d   :  { %v5707_v44 = vpop.xlane.xlu1 %5706 }
0x110e   :  { %7573 = vrsqrt.f32 %v5738_v22  ;;  %v5729_v49 = vmul.f32 0.03125, %v5707_v44 }
0x1110   :  { %v7570_v60 = vpop.eup %7569  ;;  %v5739_v10 = vadd.f32 1e-05, %v5729_v49 }
0x1111   :  { %v5756_v7 = vmul.f32 %v7570_v60, %v9565_v47 }
0x1112   :  { %v7572_v39 = vpop.eup %7571  ;;  %7575 = vrsqrt.f32 %v5739_v10 }
0x1113   :  { %v5770_v8 = vmul.f32 %v9633_v17, %v5756_v7  ;;  %v5757_v23 = vmul.f32 %v7572_v39, %v9568_v30 }
0x1115   :  { %v5771_v52 = vmul.f32 %v9633_v17, %v5757_v23  ;;  %v5784_v27 = vadd.f32 %v9640_v35, %v5770_v8 }
0x1117   :  { %v5785_v50 = vadd.f32 %v9640_v35, %v5771_v52 }
0x1118   :  { %v7574_v16 = vpop.eup %7573 }
0x1119   :  { %v5758_v56 = vmul.f32 %v7574_v16, %v9577_v5  ;;  %v5794_v2 = vpack.c.bf16 %v5785_v50, %v5784_v27 }
0x111b   :  { %7253 = vmatmul.mubr.msk.bf16.vlgmr.msra.gmra.mrb[200].mxu0 %vm284_vm1, %v5794_v2  ;;  %v5772_v31 = vmul.f32 %v9633_v17, %v5758_v56 }
0x111c   :  { %v7576_v47 = vpop.eup %7575  ;;  %7256 = vmatprep.mubr.msk.bf16.mxu0 %vm7632_vm2, %v9861_v28 }
0x111d   :  { %v5759_v30 = vmul.f32 %v7576_v47, %v9582_v24  ;;  %v5786_v58 = vadd.f32 %v9640_v35, %v5772_v31 }
0x111f   :  { %v5773_v21 = vmul.f32 %v9633_v17, %v5759_v30 }
0x1121   :  { %v5787_v34 = vadd.f32 %v9640_v35, %v5773_v21  ;;  %v7361_v21 = vld [vmem:[%s9833_s9] sm:$0xff]  }
0x1122   :  { %7273 = vmatpush3.bf16.msra.mxu1 %v7361_v21 }
0x1123   :  { %v5795_v3 = vpack.c.bf16 %v5787_v34, %v5786_v58  ;;  %7274 = vmatprep.subr.bf16.mxu1 %v9861_v28  ;;  %v7366_v58 = vld [vmem:[%s9833_s9 + $0x28] sm:$0xff]   ;;  %v7367_v34 = vld [vmem:[%s9833_s9 + $0x30] sm:$0xff]  }
0x1125   :  { %7257 = vmatmul.mubr.msk.bf16.gmra.mrb[204].mxu0 %vm284_vm1, %v5795_v3  ;;  %v7368_v3 = vld [vmem:[%s9833_s9 + $0x38] sm:$0xff]  }
0x1126   :  { %7260 = vmatprep.mubr.msk.bf16.mxu0 %vm7632_vm2, %v9861_v28 }
0x113e   :  { %v5710_v5 = vpop.xlane.xlu0 %5709 }
0x113f   :  { %v5730_v51 = vmul.f32 0.03125, %v5710_v5  ;;  %v9716_v5 = vld [vmem:[%s9834_s11] ss:$0 sm:$0xff] }
0x1140   :  { %v5713_v54 = vpop.xlane.xlu1 %5712 }
0x1141   :  { %v5740_v19 = vadd.f32 1e-05, %v5730_v51  ;;  %v5731_v55 = vmul.f32 0.03125, %v5713_v54 }
0x1143   :  { %7577 = vrsqrt.f32 %v5740_v19  ;;  %v5741_v24 = vadd.f32 1e-05, %v5731_v55 }
0x1145   :  { %7579 = vrsqrt.f32 %v5741_v24 }
0x1147   :  { %v5716_v9 = vpop.xlane.xlu0 %5715 }
0x1148   :  { %v5732_v6 = vmul.f32 0.03125, %v5716_v9 }
0x1149   :  { %v5719_v32 = vpop.xlane.xlu1 %5718 }
0x114a   :  { %v5742_v18 = vadd.f32 1e-05, %v5732_v6  ;;  %v5733_v14 = vmul.f32 0.03125, %v5719_v32 }
0x114c   :  { %7581 = vrsqrt.f32 %v5742_v18  ;;  %v5743_v43 = vadd.f32 1e-05, %v5733_v14 }
0x114d   :  { %v7578_v11 = vpop.eup %7577 }
0x114e   :  { %7583 = vrsqrt.f32 %v5743_v43  ;;  %v5760_v4 = vmul.f32 %v7578_v11, %v9596_v40 }
0x114f   :  { %v7580_v36 = vpop.eup %7579 }
0x1150   :  { %v5761_v57 = vmul.f32 %v7580_v36, %v9599_v13  ;;  %v5774_v42 = vmul.f32 %v9633_v17, %v5760_v4 }
0x1152   :  { %v5722_v63 = vpop.xlane.xlu0 %5721  ;;  %v5775_v45 = vmul.f32 %v9633_v17, %v5761_v57  ;;  %v5788_v62 = vadd.f32 %v9640_v35, %v5774_v42 }
0x1153   :  { %v5734_v29 = vmul.f32 0.03125, %v5722_v63 }
0x1154   :  { %v5725_v46 = vpop.xlane.xlu1 %5724  ;;  %v5789_v22 = vadd.f32 %v9640_v35, %v5775_v45 }
0x1155   :  { %v5744_v49 = vadd.f32 1e-05, %v5734_v29  ;;  %v5735_v61 = vmul.f32 0.03125, %v5725_v46 }
0x1156   :  { %v7582_v44 = vpop.eup %7581  ;;  %v5796_v40 = vpack.c.bf16 %v5789_v22, %v5788_v62 }
0x1157   :  { %v5762_v60 = vmul.f32 %v7582_v44, %v9608_v0  ;;  %7585 = vrsqrt.f32 %v5744_v49  ;;  %v5745_v13 = vadd.f32 1e-05, %v5735_v61 }
0x1158   :  { %v7584_v10 = vpop.eup %7583  ;;  %7261 = vmatmul.mubr.msk.bf16.gmra.mrb[208].mxu0 %vm284_vm1, %v5796_v40 }
0x1159   :  { %v5763_v7 = vmul.f32 %v7584_v10, %v9611_v53  ;;  %v5776_v39 = vmul.f32 %v9633_v17, %v5762_v60  ;;  %7587 = vrsqrt.f32 %v5745_v13  ;;  %7264 = vmatprep.mubr.msk.bf16.mxu0 %vm7632_vm2, %v9861_v28 }
0x115b   :  { %v5777_v8 = vmul.f32 %v9633_v17, %v5763_v7  ;;  %v5790_v23 = vadd.f32 %v9640_v35, %v5776_v39 }
0x115d   :  { %v5791_v0 = vadd.f32 %v9640_v35, %v5777_v8 }
0x115f   :  { %v5797_v52 = vpack.c.bf16 %v5791_v0, %v5790_v23 }
0x1161   :  { %7265 = vmatmul.mubr.msk.bf16.gmra.mrb[212].mxu0 %vm284_vm1, %v5797_v52  ;;  %v7586_v27 = vpop.eup %7585 }
0x1162   :  { %7268 = vmatprep.mubr.msk.bf16.mxu0 %vm7632_vm2, %v9861_v28  ;;  %v5764_v53 = vmul.f32 %v7586_v27, %v9620_v38  ;;  %v7362_v38 = vld [vmem:[%s9833_s9 + $0x8] sm:$0xff]  }
0x1163   :  { %v7588_v50 = vpop.eup %7587  ;;  %7275 = vmatpush3.bf16.msra.mxu1 %v7362_v38 }
0x1164   :  { %v5765_v16 = vmul.f32 %v7588_v50, %v9623_v12  ;;  %v5778_v56 = vmul.f32 %v9633_v17, %v5764_v53  ;;  %7276 = vmatprep.subr.bf16.mxu1 %v9861_v28  ;;  %v7363_v12 = vld [vmem:[%s9833_s9 + $0x10] sm:$0xff]  }
0x1166   :  { %v5779_v2 = vmul.f32 %v9633_v17, %v5765_v16  ;;  %v5792_v47 = vadd.f32 %v9640_v35, %v5778_v56  ;;  %v7364_v17 = vld [vmem:[%s9833_s9 + $0x18] sm:$0xff]  }
0x1167   :  { %7277 = vmatpush3.bf16.msra.mxu1 %v7363_v12 }
0x1168   :  { %v5793_v30 = vadd.f32 %v9640_v35, %v5779_v2  ;;  %7278 = vmatprep.subr.bf16.mxu1 %v9861_v28  ;;  %v7365_v35 = vld [vmem:[%s9833_s9 + $0x20] sm:$0xff]  }
0x116a   :  { %v5798_v31 = vpack.c.bf16 %v5793_v30, %v5792_v47 }
0x116b   :  { %7279 = vmatpush3.bf16.msra.mxu1 %v7364_v17 }
0x116c   :  { %7269 = vmatmul.mubr.msk.bf16.gmra.mrb[216].mxu0 %vm284_vm1, %v5798_v31  ;;  %7280 = vmatprep.subr.bf16.mxu1 %v9861_v28  ;;  %vm6182_vm1 = vcmask 256000  }
0x116f   :  { %7281 = vmatpush3.bf16.msra.mxu1 %v7365_v35 }
0x1170   :  { %7282 = vmatprep.subr.bf16.mxu1 %v9861_v28 }
0x1173   :  { %7283 = vmatpush3.bf16.msra.mxu1 %v7366_v58 }
0x1174   :  { %7284 = vmatprep.subr.bf16.mxu1 %v9861_v28 }
0x1177   :  { %7285 = vmatpush3.bf16.msra.mxu1 %v7367_v34 }
0x1178   :  { %7286 = vmatprep.subr.bf16.mxu1 %v9861_v28 }
0x117b   :  { %7287 = vmatpush3.bf16.msra.mxu1 %v7368_v3 }
0x11ee   :  { %v5870_v51 = vpop.f32.mrb[200].mxu0 }
0x11ef   :  { %v5871_v54 = vadd.f32 %v9716_v5, %v5870_v51  ;;  %v7254_v19 = vpop.f32.mrb[201].mxu0 }
0x11f0   :  { %v5873_v55 = vpop.f32.mrb[202].mxu0 }
0x11f1   :  { %v6415_v24 = vmul.f32 -1.702, %v5871_v54  ;;  %v5874_v9 = vadd.f32 %v9716_v5, %v5873_v55  ;;  %v7255_v6 = vpop.f32.mrb[203].mxu0 }
0x11f3   :  { %v5929_v32 = vmul.f32 1.442695, %v6415_v24  ;;  %v6416_v18 = vmul.f32 -1.702, %v5874_v9 }
0x11f5   :  { %7589 = vpow2.f32 %v5929_v32  ;;  %v5931_v14 = vmul.f32 1.442695, %v6416_v18 }
0x11f7   :  { %7591 = vpow2.f32 %v5931_v14 }
0x11f8   :  { %v5878_v43 = vpop.f32.mrb[204].mxu0 }
0x11f9   :  { %v5879_v11 = vadd.f32 %v9716_v5, %v5878_v43  ;;  %v7258_v4 = vpop.f32.mrb[205].mxu0 }
0x11fa   :  { %v5881_v36 = vpop.f32.mrb[206].mxu0 }
0x11fb   :  { %v6417_v57 = vmul.f32 -1.702, %v5879_v11  ;;  %v5882_v42 = vadd.f32 %v9716_v5, %v5881_v36  ;;  %v7259_v63 = vpop.f32.mrb[207].mxu0 }
0x11fd   :  { %v5933_v45 = vmul.f32 1.442695, %v6417_v57  ;;  %v6418_v29 = vmul.f32 -1.702, %v5882_v42 }
0x11ff   :  { %v7590_v46 = vpop.eup %7589  ;;  %7593 = vpow2.f32 %v5933_v45  ;;  %v5935_v62 = vmul.f32 1.442695, %v6418_v29 }
0x1200   :  { %v5949_v22 = vadd.f32 1.0, %v7590_v46 }
0x1201   :  { %v7592_v44 = vpop.eup %7591  ;;  %7595 = vpow2.f32 %v5935_v62 }
0x1202   :  { %7597 = vrcp.f32 %v5949_v22  ;;  %v5950_v49 = vadd.f32 1.0, %v7592_v44 }
0x1204   :  { %7599 = vrcp.f32 %v5950_v49 }
0x1209   :  { %v7594_v61 = vpop.eup %7593 }
0x120a   :  { %v5951_v60 = vadd.f32 1.0, %v7594_v61 }
0x120b   :  { %v7596_v40 = vpop.eup %7595 }
0x120c   :  { %v7598_v10 = vpop.eup %7597  ;;  %7601 = vrcp.f32 %v5951_v60  ;;  %v5952_v13 = vadd.f32 1.0, %v7596_v40 }
0x120d   :  { %v5979_v39 = vmul.f32 %v7598_v10, %v5871_v54 }
0x120e   :  { %v7600_v7 = vpop.eup %7599  ;;  %7603 = vrcp.f32 %v5952_v13 }
0x120f   :  { %v5980_v8 = vmul.f32 %v7600_v7, %v5874_v9 }
0x1211   :  { %v5989_v23 = vpack.c.bf16 %v5980_v8, %v5979_v39 }
0x1213   :  { %7289 = vmatmul.mubr.bf16.vlgmr.msra.gmra.mrb[220].mxu1 %v5989_v23 }
0x1214   :  { %7292 = vmatprep.mubr.msk.bf16.mxu1 %vm7632_vm2, %v9861_v28 }
0x1216   :  { %v7602_v0 = vpop.eup %7601 }
0x1217   :  { %v5981_v27 = vmul.f32 %v7602_v0, %v5879_v11 }
0x1218   :  { %v7604_v52 = vpop.eup %7603 }
0x1219   :  { %v5982_v53 = vmul.f32 %v7604_v52, %v5882_v42 }
0x121b   :  { %v5990_v50 = vpack.c.bf16 %v5982_v53, %v5981_v27 }
0x121d   :  { %7293 = vmatmul.mubr.bf16.gmra.mrb[224].mxu1 %v5990_v50 }
0x121e   :  { %7296 = vmatprep.mubr.msk.bf16.mxu1 %vm7632_vm2, %v9861_v28 }
0x122b   :  { %v5886_v16 = vpop.f32.mrb[208].mxu0 }
0x122c   :  { %v5887_v56 = vadd.f32 %v9716_v5, %v5886_v16  ;;  %v7262_v2 = vpop.f32.mrb[209].mxu0 }
0x122d   :  { %v5889_v47 = vpop.f32.mrb[210].mxu0 }
0x122e   :  { %v6419_v30 = vmul.f32 -1.702, %v5887_v56  ;;  %v5890_v31 = vadd.f32 %v9716_v5, %v5889_v47  ;;  %v7263_v21 = vpop.f32.mrb[211].mxu0 }
0x1230   :  { %v5937_v38 = vmul.f32 1.442695, %v6419_v30  ;;  %v6420_v12 = vmul.f32 -1.702, %v5890_v31  ;;  %v9739_v30 = vld [vmem:[%s9830_s10 + $0x8] ss:$0 sm:$0xff] }
0x1231   :  { %s7639_s10 = smov 64  }
0x1232   :  { %7605 = vpow2.f32 %v5937_v38  ;;  %v5939_v17 = vmul.f32 1.442695, %v6420_v12 }
0x1234   :  { %v5894_v35 = vpop.f32.mrb[212].mxu0  ;;  %7607 = vpow2.f32 %v5939_v17 }
0x1235   :  { %v5895_v58 = vadd.f32 %v9716_v5, %v5894_v35  ;;  %v7266_v34 = vpop.f32.mrb[213].mxu0 }
0x1236   :  { %v5897_v3 = vpop.f32.mrb[214].mxu0 }
0x1237   :  { %v6421_v51 = vmul.f32 -1.702, %v5895_v58  ;;  %v5898_v54 = vadd.f32 %v9716_v5, %v5897_v3  ;;  %v7267_v19 = vpop.f32.mrb[215].mxu0 }
0x1239   :  { %v5941_v55 = vmul.f32 1.442695, %v6421_v51  ;;  %v6422_v24 = vmul.f32 -1.702, %v5898_v54 }
0x123b   :  { %7609 = vpow2.f32 %v5941_v55  ;;  %v5943_v9 = vmul.f32 1.442695, %v6422_v24 }
0x123c   :  { %v7606_v6 = vpop.eup %7605 }
0x123d   :  { %7611 = vpow2.f32 %v5943_v9  ;;  %v5953_v32 = vadd.f32 1.0, %v7606_v6 }
0x123e   :  { %v7608_v18 = vpop.eup %7607 }
0x123f   :  { %7613 = vrcp.f32 %v5953_v32  ;;  %v5954_v14 = vadd.f32 1.0, %v7608_v18  ;;  %v5902_v43 = vpop.f32.mrb[216].mxu0 }
0x1240   :  { %v5903_v11 = vadd.f32 %v9716_v5, %v5902_v43  ;;  %v7270_v4 = vpop.f32.mrb[217].mxu0 }
0x1241   :  { %7615 = vrcp.f32 %v5954_v14  ;;  %v5905_v36 = vpop.f32.mrb[218].mxu0 }
0x1242   :  { %v6423_v57 = vmul.f32 -1.702, %v5903_v11  ;;  %v5906_v42 = vadd.f32 %v9716_v5, %v5905_v36  ;;  %v7271_v63 = vpop.f32.mrb[219].mxu0 }
0x1244   :  { %v5945_v29 = vmul.f32 1.442695, %v6423_v57  ;;  %v6424_v46 = vmul.f32 -1.702, %v5906_v42 }
0x1245   :  { %v7610_v45 = vpop.eup %7609 }
0x1246   :  { %v5955_v62 = vadd.f32 1.0, %v7610_v45  ;;  %7617 = vpow2.f32 %v5945_v29  ;;  %v5947_v44 = vmul.f32 1.442695, %v6424_v46 }
0x1247   :  { %v7612_v22 = vpop.eup %7611 }
0x1248   :  { %7619 = vrcp.f32 %v5955_v62  ;;  %v5956_v49 = vadd.f32 1.0, %v7612_v22 }
0x1249   :  { %7621 = vpow2.f32 %v5947_v44  ;;  %v7614_v61 = vpop.eup %7613 }
0x124a   :  { %7623 = vrcp.f32 %v5956_v49  ;;  %v5983_v40 = vmul.f32 %v7614_v61, %v5887_v56 }
0x124b   :  { %v7616_v60 = vpop.eup %7615 }
0x124c   :  { %v5984_v10 = vmul.f32 %v7616_v60, %v5890_v31 }
0x124e   :  { %v5991_v13 = vpack.c.bf16 %v5984_v10, %v5983_v40 }
0x1250   :  { %v7618_v7 = vpop.eup %7617  ;;  %7297 = vmatmul.mubr.bf16.gmra.mrb[228].mxu1 %v5991_v13 }
0x1251   :  { %v5957_v39 = vadd.f32 1.0, %v7618_v7  ;;  %7300 = vmatprep.mubr.msk.bf16.mxu1 %vm7632_vm2, %v9861_v28 }
0x1252   :  { %v7620_v5 = vpop.eup %7619 }
0x1253   :  { %v7622_v8 = vpop.eup %7621  ;;  %7625 = vrcp.f32 %v5957_v39  ;;  %v5985_v52 = vmul.f32 %v7620_v5, %v5895_v58 }
0x1254   :  { %v7624_v23 = vpop.eup %7623  ;;  %v5958_v0 = vadd.f32 1.0, %v7622_v8 }
0x1255   :  { %v5986_v27 = vmul.f32 %v7624_v23, %v5898_v54 }
0x1256   :  { %7627 = vrcp.f32 %v5958_v0 }
0x1257   :  { %v5992_v53 = vpack.c.bf16 %v5986_v27, %v5985_v52 }
0x1259   :  { %7301 = vmatmul.mubr.bf16.gmra.mrb[232].mxu1 %v5992_v53 }
0x125a   :  { %7304 = vmatprep.mubr.msk.bf16.mxu1 %vm7632_vm2, %v9861_v28  ;;  %vm6198_vm2 = vcmask 523522  }
0x125d   :  { %v7626_v50 = vpop.eup %7625 }
0x125e   :  { %v5987_v56 = vmul.f32 %v7626_v50, %v5903_v11 }
0x1260   :  { %v7628_v16 = vpop.eup %7627 }
0x1261   :  { %v5988_v2 = vmul.f32 %v7628_v16, %v5906_v42 }
0x1263   :  { %v5993_v47 = vpack.c.bf16 %v5988_v2, %v5987_v56 }
0x1265   :  { %7305 = vmatmul.mubr.bf16.gmra.mrb[236].mxu1 %v5993_v47 }
0x12e6   :  { %v6096_v31 = vpop.f32.mrb[220].mxu1 }
0x12e7   :  { %v7290_v21 = vpop.f32.mrb[221].mxu1  ;;  %v6097_v12 = vadd.f32 %v9739_v30, %v6096_v31 }
0x12e8   :  { %v6099_v38 = vpop.f32.mrb[222].mxu1 }
0x12e9   :  { %v6100_v17 = vadd.f32 %v9739_v30, %v6099_v38  ;;  %v7291_v35 = vpop.f32.mrb[223].mxu1  ;;  %v6135_v58 = vadd.f32 %v6097_v12, %v9515_v33 }
0x12eb   :  { %v6136_v28 = vadd.f32 %v6100_v17, %v9518_v59 }
0x12ed   :  { %v6155_v34 = vrot.slane %v6136_v28, 7 }
0x12ef   :  { %v6157_v3 = vsel %vm6156_vm9, %v6155_v34, %v6135_v58  ;;  %v6184_v51 = vsel %vm6159_vm10, %v6155_v34, %v6135_v58  ;;  %v6202_v54 = vsel %vm6162_vm11, %v6155_v34, %v6135_v58  ;;  %v6220_v19 = vsel %vm6165_vm12, %v6155_v34, %v6135_v58 }
0x12f0   :  { %v6104_v55 = vpop.f32.mrb[224].mxu1 }
0x12f1   :  { %v6105_v24 = vadd.f32 %v9739_v30, %v6104_v55  ;;  %v7294_v9 = vpop.f32.mrb[225].mxu1 }
0x12f2   :  { %v6107_v59 = vpop.f32.mrb[226].mxu1 }
0x12f3   :  { %v6137_v6 = vadd.f32 %v6105_v24, %v9525_v48  ;;  %v6108_v32 = vadd.f32 %v9739_v30, %v6107_v59  ;;  %v7295_v18 = vpop.f32.mrb[227].mxu1 }
0x12f5   :  { %v6158_v33 = vrot.slane %v6137_v6, 6  ;;  %v6138_v14 = vadd.f32 %v6108_v32, %v9528_v26 }
0x12f7   :  { %v6160_v43 = vsel %vm6159_vm10, %v6158_v33, %v6157_v3  ;;  %v6161_v11 = vrot.slane %v6138_v14, 5  ;;  %v6203_v4 = vsel %vm6165_vm12, %v6158_v33, %v6202_v54  ;;  %v6185_v36 = vsel %vm6162_vm11, %v6158_v33, %v6184_v51 }
0x12f8   :  { %v6221_v57 = vsel %vm6168_vm13, %v6158_v33, %v6220_v19 }
0x12f9   :  { %v6163_v42 = vsel %vm6162_vm11, %v6161_v11, %v6160_v43  ;;  %v6204_v48 = vsel %vm6168_vm13, %v6161_v11, %v6203_v4  ;;  %v6186_v63 = vsel %vm6165_vm12, %v6161_v11, %v6185_v36  ;;  %v6222_v45 = vsel %vm6171_vm14, %v6161_v11, %v6221_v57 }
0x1323   :  { %v6112_v26 = vpop.f32.mrb[228].mxu1 }
0x1324   :  { %v6113_v29 = vadd.f32 %v9739_v30, %v6112_v26  ;;  %v7298_v46 = vpop.f32.mrb[229].mxu1 }
0x1325   :  { %v6115_v62 = vpop.f32.mrb[230].mxu1 }
0x1326   :  { %v6139_v22 = vadd.f32 %v6113_v29, %v9535_v41  ;;  %v6116_v44 = vadd.f32 %v9739_v30, %v6115_v62  ;;  %v7299_v49 = vpop.f32.mrb[231].mxu1 }
0x1328   :  { %v6164_v61 = vrot.slane %v6139_v22, 4  ;;  %v6140_v60 = vadd.f32 %v6116_v44, %v9538_v37 }
0x132a   :  { %v6166_v40 = vsel %vm6165_vm12, %v6164_v61, %v6163_v42  ;;  %v6167_v10 = vrot.slane %v6140_v60, 3  ;;  %v6205_v13 = vsel %vm6171_vm14, %v6164_v61, %v6204_v48  ;;  %v6187_v7 = vsel %vm6168_vm13, %v6164_v61, %v6186_v63 }
0x132b   :  { %6210 = vrot.lane.b32.xlu1 %v6205_v13, %s7639_s10 }
0x132c   :  { %v6120_v5 = vpop.f32.mrb[232].mxu1  ;;  %v6223_v41 = vsel %vm6174_vm15, %v6167_v10, %v6164_v61  ;;  %v6188_v23 = vsel %vm6171_vm14, %v6167_v10, %v6187_v7  ;;  %v6169_v37 = vsel %vm6168_vm13, %v6167_v10, %v6166_v40 }
0x132d   :  { %v6121_v39 = vadd.f32 %v9739_v30, %v6120_v5  ;;  %v7302_v8 = vpop.f32.mrb[233].mxu1  ;;  %6192 = vrot.lane.b32.xlu0 %v6188_v23, %s7640_s28 }
0x132e   :  { %v6123_v0 = vpop.f32.mrb[234].mxu1 }
0x132f   :  { %v6141_v52 = vadd.f32 %v6121_v39, %v9545_v1  ;;  %v6124_v27 = vadd.f32 %v9739_v30, %v6123_v0  ;;  %v7303_v53 = vpop.f32.mrb[235].mxu1 }
0x1331   :  { %v6170_v50 = vrot.slane %v6141_v52, 2  ;;  %v6142_v16 = vadd.f32 %v6124_v27, %v9548_v15  ;;  %6228 = vrot.lane.b32.xlu0 %v6222_v45, %s7641_s29 }
0x1333   :  { %v6173_v56 = vrot.slane %v6142_v16, 1  ;;  %v6206_v2 = vsel %vm6174_vm15, %v6170_v50, %v6167_v10  ;;  %v6224_v47 = vsel %vm6156_vm9, %v6170_v50, %v6223_v41  ;;  %v6172_v31 = vsel %vm6171_vm14, %v6170_v50, %v6169_v37 }
0x1334   :  { %6181 = vst.msk [vmem:[%s9835_s12 - $0x1] sm:$0xfe] %vm6180_vm0, %v6172_v31 }
0x1335   :  { %v6189_v1 = vsel %vm6174_vm15, %v6173_v56, %v6170_v50  ;;  %v6207_v21 = vsel %vm6156_vm9, %v6173_v56, %v6206_v2  ;;  %v6225_v15 = vsel %vm6159_vm10, %v6173_v56, %v6224_v47 }
0x1338   :  { %v6128_v38 = vpop.f32.mrb[236].mxu1 }
0x1339   :  { %v6129_v12 = vadd.f32 %v9739_v30, %v6128_v38  ;;  %v7306_v17 = vpop.f32.mrb[237].mxu1 }
0x133a   :  { %v6131_v35 = vpop.f32.mrb[238].mxu1 }
0x133b   :  { %v6143_v28 = vadd.f32 %v6129_v12, %v9555_v20  ;;  %v6132_v58 = vadd.f32 %v9739_v30, %v6131_v35  ;;  %v7307_v34 = vpop.f32.mrb[239].mxu1 }
0x133d   :  { %v6175_v3 = vsel %vm6174_vm15, %v6143_v28, %v6173_v56  ;;  %v6144_v51 = vadd.f32 %v6132_v58, %v9558_v25  ;;  %v6190_v54 = vsel %vm6156_vm9, %v6143_v28, %v6189_v1  ;;  %v6208_v19 = vsel %vm6159_vm10, %v6143_v28, %v6207_v21 }
0x133e   :  { %v6226_v55 = vsel %vm6162_vm11, %v6143_v28, %v6225_v15 }
0x133f   :  { %v6176_v24 = vrot.slane %v6144_v51, 7 }
0x1341   :  { %v6177_v9 = vsel %vm6156_vm9, %v6176_v24, %v6175_v3  ;;  %v6191_v59 = vsel %vm6159_vm10, %v6176_v24, %v6190_v54  ;;  %v6209_v20 = vsel %vm6162_vm11, %v6176_v24, %v6208_v19  ;;  %v6227_v30 = vsel %vm6165_vm12, %v6176_v24, %v6226_v55 }
0x1342   :  { %6194 = vrot.lane.b32.xlu1 %v6191_v59, %s7640_s28  ;;  %6183 = vst.msk [vmem:[%s9835_s12 + $0x7] sm:$0x7] %vm6182_vm1, %v6177_v9 }
0x1346   :  { %6212 = vrot.lane.b32.xlu1 %v6209_v20, %s7639_s10 }
0x134a   :  { %6230 = vrot.lane.b32.xlu1 %v6227_v30, %s7641_s29 }
0x139d   :  { %v6211_v6 = vpop.permute.xlu1 %6210 }
0x139f   :  { %v6193_v25 = vpop.permute.xlu0 %6192 }
0x13a0   :  { %6199 = vst.msk [vmem:[%s9835_s12 - $0x2] sm:$0xfc] %vm6198_vm2, %v6193_v25 }
0x13a1   :  { %6217 = vst.msk [vmem:[%s9835_s12 - $0x3] sm:$0xf8] %vm6216_vm3, %v6211_v6 }
0x13a3   :  { %v6229_v32 = vpop.permute.xlu0 %6228 }
0x13a4   :  { %6235 = vst.msk [vmem:[%s9835_s12 - $0x4] sm:$0xf0] %vm6234_vm4, %v6229_v32 }
0x13b4   :  { %v6195_v18 = vpop.permute.xlu1 %6194 }
0x13b5   :  { %6201 = vst.msk [vmem:[%s9835_s12 + $0x6] sm:$0xf] %vm6200_vm5, %v6195_v18 }
0x13b8   :  { %v6213_v33 = vpop.permute.xlu1 %6212 }
0x13b9   :  { %6219 = vst.msk [vmem:[%s9835_s12 + $0x5] sm:$0x1f] %vm6218_vm6, %v6213_v33 }
0x13bc   :  { %v6231_v14 = vpop.permute.xlu1 %6230 }
0x13bd   :  { %6237 = vst.msk [vmem:[%s9835_s12 + $0x4] sm:$0x3f] %vm6236_vm7, %v6231_v14 }

</bundles_post_ra>
